<compile_context>
chip_gen: v5e
topology: v5e:2x2
jax: 0.10.0
libtpu: 0.0.40
codegen_flags: <defaults>
</compile_context>

<pallas_src>
import math
import jax
import jax.numpy as jnp
from jax.experimental import pallas as pl
from jax.experimental.pallas import tpu as pltpu


def _round_up(v, m):
    return (v + m - 1) // m * m


# ----------------------------- Pallas kernel -------------------------------

def _make_kan_kernel(in_features: int, spline_order: int, c0: int):
    """Kernel body with static in_features / spline_order / c0 baked in.

    c0 = grid_size + 2*spline_order  (number of order-0 bases).
    """
    n_lvls = spline_order

    def kan_kernel(x_ref, bnd_ref, *rest):
        lvl_refs = rest[:n_lvls]          # each (4, (c0-k)*IN): aL, bL, aR, bR
        w_ref = rest[n_lvls]              # ((C+1)*IN, TOUT) fused weight
        o_ref = rest[n_lvls + 1]          # (TN, TOUT)

        x = x_ref[...].astype(jnp.float32)                       # (TN, IN)

        # x replicated along the flattened (c-major) knot axis -> lane dense.
        xt = jnp.concatenate([x] * c0, axis=1)                   # (TN, c0*IN)

        # order-0 bases: 1[x in [g_c, g_{c+1})]  (flattened, c-major)
        g_lo = bnd_ref[0:1, :]                                   # (1, c0*IN)
        g_hi = bnd_ref[1:2, :]
        bases = ((xt >= g_lo) & (xt < g_hi)).astype(jnp.float32)  # (TN, c0*IN)

        # Cox-de-Boor recursion on 2-D lane-dense tiles, divides precomputed:
        #   b_new = (x*aL + bL) * b[:, :w] + (x*aR + bR) * b[:, IN:IN+w]
        for k in range(1, spline_order + 1):
            w = (c0 - k) * in_features
            lref = lvl_refs[k - 1]
            a_l = lref[0:1, :]
            b_l = lref[1:2, :]
            a_r = lref[2:3, :]
            b_r = lref[3:4, :]
            xk = xt[:, :w]
            bases = ((xk * a_l + b_l) * bases[:, :w]
                     + (xk * a_r + b_r) * bases[:, in_features:in_features + w])
        # bases: (TN, C*IN) with C = grid_size + spline_order

        act = x * jax.nn.sigmoid(x)                               # SiLU (VPU/EUP)

        # Single fused contraction: [SiLU(x) | bases] @ [bw_t ; sw]   K=(C+1)*IN
        a_full = jnp.concatenate([act, bases], axis=1)            # (TN, (C+1)*IN)
        out = jnp.dot(a_full.astype(w_ref.dtype), w_ref[...],
                      preferred_element_type=jnp.float32)         # (TN, TOUT)
        o_ref[...] = out.astype(o_ref.dtype)

    return kan_kernel


# ------------------------------ wrapper -------------------------------------

def kan_linear_forward(x, grid, base_weight, spline_weight, spline_scaler, *,
                       grid_size, spline_order, tile_n=128, tile_out=128,
                       mxu_dtype=jnp.float32):
    """Pallas-backed KANLinear.forward.

    x             : (N, in_features)
    grid          : (in_features, P),  P = grid_size + 2*spline_order + 1
    base_weight   : (out_features, in_features)
    spline_weight : (out_features, in_features, C), C = grid_size + spline_order
    spline_scaler : (out_features, in_features)
    """
    N, in_features = x.shape
    out_features = base_weight.shape[0]
    C = grid_size + spline_order
    P = grid.shape[1]
    c0 = P - 1                           # = grid_size + 2*spline_order

    f32 = jnp.float32
    g = grid.astype(f32)

    # c-major flatten of a per-(feature, coeff) array: column j = c*IN + i.
    def cmajor(a):                       # (IN, Ck) -> (1, Ck*IN)
        return a.T.reshape(1, -1)

    # Order-0 interval bounds.
    bnd = jnp.concatenate([cmajor(g[:, :-1]), cmajor(g[:, 1:])], axis=0)  # (2, c0*IN)

    # Per-level affine coefficients (reciprocals precomputed; safe-divide on
    # repeated knots so an adaptive grid never produces inf/NaN in-kernel).
    lvls = []
    for k in range(1, spline_order + 1):
        ck = c0 - k
        gl = g[:, :ck]
        gl_k = g[:, k:k + ck]
        gr = g[:, k + 1:k + 1 + ck]
        g1 = g[:, 1:1 + ck]
        dl = gl_k - gl
        dr = gr - g1
        inv_l = jnp.where(dl == 0, 0.0, 1.0 / jnp.where(dl == 0, 1.0, dl))
        inv_r = jnp.where(dr == 0, 0.0, 1.0 / jnp.where(dr == 0, 1.0, dr))
        lvl = jnp.concatenate([cmajor(inv_l), cmajor(-gl * inv_l),
                               cmajor(-inv_r), cmajor(gr * inv_r)], axis=0)  # (4, ck*IN)
        lvls.append(lvl)

    # Fused weight: base branch stacked on top of the c-major spline branch,
    # zero-padded on the output dim so stores are lane-dense (multiple of 128).
    bw_t = base_weight.astype(f32).T                                       # (IN, OUT)
    sw = (spline_weight * spline_scaler[..., None]).astype(f32)            # (OUT, IN, C)
    sw_k = jnp.transpose(sw, (2, 1, 0)).reshape(C * in_features, out_features)
    w_full = jnp.concatenate([bw_t, sw_k], axis=0).astype(mxu_dtype)       # (K, OUT)
    K = (C + 1) * in_features

    out_pad = _round_up(out_features, 128)
    if out_pad != out_features:
        w_full = jnp.pad(w_full, ((0, 0), (0, out_pad - out_features)))

    # Batch tiling: no divisibility assert — pad instead. Clamp tile for tiny N.
    tile_n = max(8, min(tile_n, _round_up(N, 8)))
    n_pad = _round_up(N, tile_n)
    x_p = x if n_pad == N else jnp.pad(x, ((0, n_pad - N), (0, 0)))

    tile_out = min(tile_out, out_pad)
    assert out_pad % tile_out == 0

    kernel = _make_kan_kernel(in_features, spline_order, c0)

    lvl_specs = [pl.BlockSpec((4, (c0 - k) * in_features), lambda i, j: (0, 0))
                 for k in range(1, spline_order + 1)]

    out = pl.pallas_call(
        kernel,
        out_shape=jax.ShapeDtypeStruct((n_pad, out_pad), x.dtype),
        grid_spec=pltpu.PrefetchScalarGridSpec(
            num_scalar_prefetch=0,
            grid=(n_pad // tile_n, out_pad // tile_out),
            in_specs=[
                pl.BlockSpec((tile_n, in_features), lambda i, j: (i, 0)),   # x tile
                pl.BlockSpec((2, c0 * in_features), lambda i, j: (0, 0)),   # interval bounds
                *lvl_specs,                                                 # recursion coeffs
                pl.BlockSpec((K, tile_out), lambda i, j: (0, j)),           # fused weight
            ],
            out_specs=pl.BlockSpec((tile_n, tile_out), lambda i, j: (i, j)),
        ),
        compiler_params=pltpu.CompilerParams(
            dimension_semantics=("parallel", "parallel"),
            vmem_limit_bytes=32 * 1024 * 1024),
    )(x_p, bnd, *lvls, w_full)

    return out[:N, :out_features]


# ------------------------- pure-JAX reference -------------------------------

def kan_linear_reference(x, grid, base_weight, spline_weight, spline_scaler,
                         *, grid_size, spline_order):
    xe = x[:, :, None]
    ge = grid[None, :, :]
    bases = ((xe >= ge[:, :, :-1]) & (xe < ge[:, :, 1:])).astype(x.dtype)
    for k in range(1, spline_order + 1):
        bases = ((xe - ge[:, :, :-(k + 1)]) / (ge[:, :, k:-1] - ge[:, :, :-(k + 1)])
                 * bases[:, :, :-1]
                 + (ge[:, :, k + 1:] - xe) / (ge[:, :, k + 1:] - ge[:, :, 1:-k])
                 * bases[:, :, 1:])
    silu = x * jax.nn.sigmoid(x)
    base_out = silu @ base_weight.T
    scaled_sw = spline_weight * spline_scaler[..., None]        # (OUT, IN, C)
    spline_out = bases.reshape(x.shape[0], -1) @ scaled_sw.reshape(base_weight.shape[0], -1).T
    return base_out + spline_out


# --------------------------------- main -------------------------------------

if __name__ == "__main__":
    # Small node-classification-style layer.
    N = 256            # batch of nodes (2 batch tiles -> both v7x TensorCores busy)
    IN_FEATURES = 32
    OUT_FEATURES = 64
    GRID_SIZE = 5
    SPLINE_ORDER = 3
    GRID_RANGE = (-1.0, 1.0)

    key = jax.random.PRNGKey(0)
    k_x, k_bw, k_sw, k_sc = jax.random.split(key, 4)

    # Knot grid (same construction as the PyTorch module's registered buffer).
    h = (GRID_RANGE[1] - GRID_RANGE[0]) / GRID_SIZE
    knots = (jnp.arange(-SPLINE_ORDER, GRID_SIZE + SPLINE_ORDER + 1,
                        dtype=jnp.float32) * h + GRID_RANGE[0])
    grid = jnp.broadcast_to(knots, (IN_FEATURES, knots.shape[0]))          # (IN, 12)

    # Deterministic parameter init (shapes match the module; kaiming-uniform-like
    # bounds — the module's lstsq-based spline init is a data-dependent init, not
    # part of the forward semantics, so a plain random init is used here).
    a_base = math.sqrt(5) * 1.0
    bound_base = math.sqrt(2.0 / (1.0 + a_base ** 2)) * math.sqrt(3.0 / IN_FEATURES)
    base_weight = jax.random.uniform(k_bw, (OUT_FEATURES, IN_FEATURES),
                                     jnp.float32, -bound_base, bound_base)
    spline_weight = 0.1 * jax.random.normal(
        k_sw, (OUT_FEATURES, IN_FEATURES, GRID_SIZE + SPLINE_ORDER), jnp.float32)
    a_sp = math.sqrt(5) * 1.0
    bound_sp = math.sqrt(2.0 / (1.0 + a_sp ** 2)) * math.sqrt(3.0 / IN_FEATURES)
    spline_scaler = jax.random.uniform(k_sc, (OUT_FEATURES, IN_FEATURES),
                                       jnp.float32, -bound_sp, bound_sp)

    x = jax.random.normal(k_x, (N, IN_FEATURES), jnp.float32)

    out = kan_linear_forward(x, grid, base_weight, spline_weight, spline_scaler,
                             grid_size=GRID_SIZE, spline_order=SPLINE_ORDER,
                             tile_n=128, tile_out=128)
    out = jax.block_until_ready(out)

    ref = kan_linear_reference(x, grid, base_weight, spline_weight, spline_scaler,
                               grid_size=GRID_SIZE, spline_order=SPLINE_ORDER)
    ref = jax.block_until_ready(ref)

    assert out.shape == (N, OUT_FEATURES)
    assert jnp.allclose(out, ref, rtol=1e-2, atol=1e-2), \
        f"max abs err = {jnp.max(jnp.abs(out - ref))}"

    print("KERNEL_OK")
</pallas_src>

<mosaic_0001>
module attributes {stable_mosaic.version = 11 : i64} {
  func.func @kan_kernel(%arg0: i32, %arg1: i32, %arg2: memref<128x32xf32, #tpu.memory_space<vmem>>, %arg3: memref<2x352xf32, #tpu.memory_space<vmem>>, %arg4: memref<4x320xf32, #tpu.memory_space<vmem>>, %arg5: memref<4x288xf32, #tpu.memory_space<vmem>>, %arg6: memref<4x256xf32, #tpu.memory_space<vmem>>, %arg7: memref<288x128xf32, #tpu.memory_space<vmem>>, %arg8: memref<128x128xf32, #tpu.memory_space<vmem>>) attributes {dimension_semantics = [#tpu.dimension_semantics<parallel>, #tpu.dimension_semantics<parallel>], iteration_bounds = array<i64: 2, 1>, scalar_prefetch = 0 : i64, scratch_operands = 0 : i64, tpu.core_type = #tpu.core_type<tc>, window_params = [{transform_indices = @transform_0, window_bounds = array<i64: 128, 32>}, {pipeline_mode = #tpu.pipeline_mode<synchronous>, transform_indices = @transform_1, window_bounds = array<i64: 2, 352>}, {pipeline_mode = #tpu.pipeline_mode<synchronous>, transform_indices = @transform_2, window_bounds = array<i64: 4, 320>}, {pipeline_mode = #tpu.pipeline_mode<synchronous>, transform_indices = @transform_3, window_bounds = array<i64: 4, 288>}, {pipeline_mode = #tpu.pipeline_mode<synchronous>, transform_indices = @transform_4, window_bounds = array<i64: 4, 256>}, {transform_indices = @transform_5, window_bounds = array<i64: 288, 128>}, {transform_indices = @transform_6, window_bounds = array<i64: 128, 128>}]} {
    %c0 = arith.constant 0 : index
    %c0_0 = arith.constant 0 : index
    %0 = vector.load %arg2[%c0, %c0_0] : memref<128x32xf32, #tpu.memory_space<vmem>>, vector<128x32xf32>
    %1 = tpu.concatenate %0, %0, %0, %0, %0, %0, %0, %0, %0, %0, %0 in 1 : vector<128x32xf32>, vector<128x32xf32>, vector<128x32xf32>, vector<128x32xf32>, vector<128x32xf32>, vector<128x32xf32>, vector<128x32xf32>, vector<128x32xf32>, vector<128x32xf32>, vector<128x32xf32>, vector<128x32xf32> -> vector<128x352xf32>
    %c0_1 = arith.constant 0 : index
    %c0_2 = arith.constant 0 : index
    %2 = vector.load %arg3[%c0_1, %c0_2] : memref<2x352xf32, #tpu.memory_space<vmem>>, vector<1x352xf32>
    %c1 = arith.constant 1 : index
    %c0_3 = arith.constant 0 : index
    %3 = vector.load %arg3[%c1, %c0_3] : memref<2x352xf32, #tpu.memory_space<vmem>>, vector<1x352xf32>
    %4 = vector.broadcast %2 : vector<1x352xf32> to vector<128x352xf32>
    %5 = arith.cmpf oge, %1, %4 : vector<128x352xf32>
    %6 = vector.broadcast %3 : vector<1x352xf32> to vector<128x352xf32>
    %7 = arith.cmpf olt, %1, %6 : vector<128x352xf32>
    %8 = arith.andi %5, %7 : vector<128x352xi1>
    %9 = arith.extui %8 : vector<128x352xi1> to vector<128x352xi32>
    %10 = arith.sitofp %9 : vector<128x352xi32> to vector<128x352xf32>
    %c0_4 = arith.constant 0 : index
    %c0_5 = arith.constant 0 : index
    %11 = vector.load %arg4[%c0_4, %c0_5] : memref<4x320xf32, #tpu.memory_space<vmem>>, vector<1x320xf32>
    %c1_6 = arith.constant 1 : index
    %c0_7 = arith.constant 0 : index
    %12 = vector.load %arg4[%c1_6, %c0_7] : memref<4x320xf32, #tpu.memory_space<vmem>>, vector<1x320xf32>
    %c2 = arith.constant 2 : index
    %c0_8 = arith.constant 0 : index
    %13 = vector.load %arg4[%c2, %c0_8] : memref<4x320xf32, #tpu.memory_space<vmem>>, vector<1x320xf32>
    %c3 = arith.constant 3 : index
    %c0_9 = arith.constant 0 : index
    %14 = vector.load %arg4[%c3, %c0_9] : memref<4x320xf32, #tpu.memory_space<vmem>>, vector<1x320xf32>
    %15 = vector.extract_strided_slice %1 {offsets = [0, 0], sizes = [128, 320], strides = [1, 1]} : vector<128x352xf32> to vector<128x320xf32>
    %16 = vector.broadcast %11 : vector<1x320xf32> to vector<128x320xf32>
    %17 = arith.mulf %15, %16 : vector<128x320xf32>
    %18 = vector.broadcast %12 : vector<1x320xf32> to vector<128x320xf32>
    %19 = arith.addf %17, %18 : vector<128x320xf32>
    %20 = vector.extract_strided_slice %10 {offsets = [0, 0], sizes = [128, 320], strides = [1, 1]} : vector<128x352xf32> to vector<128x320xf32>
    %21 = arith.mulf %19, %20 : vector<128x320xf32>
    %22 = vector.broadcast %13 : vector<1x320xf32> to vector<128x320xf32>
    %23 = arith.mulf %15, %22 : vector<128x320xf32>
    %24 = vector.broadcast %14 : vector<1x320xf32> to vector<128x320xf32>
    %25 = arith.addf %23, %24 : vector<128x320xf32>
    %26 = vector.extract_strided_slice %10 {offsets = [0, 32], sizes = [128, 320], strides = [1, 1]} : vector<128x352xf32> to vector<128x320xf32>
    %27 = arith.mulf %25, %26 : vector<128x320xf32>
    %28 = arith.addf %21, %27 : vector<128x320xf32>
    %c0_10 = arith.constant 0 : index
    %c0_11 = arith.constant 0 : index
    %29 = vector.load %arg5[%c0_10, %c0_11] : memref<4x288xf32, #tpu.memory_space<vmem>>, vector<1x288xf32>
    %c1_12 = arith.constant 1 : index
    %c0_13 = arith.constant 0 : index
    %30 = vector.load %arg5[%c1_12, %c0_13] : memref<4x288xf32, #tpu.memory_space<vmem>>, vector<1x288xf32>
    %c2_14 = arith.constant 2 : index
    %c0_15 = arith.constant 0 : index
    %31 = vector.load %arg5[%c2_14, %c0_15] : memref<4x288xf32, #tpu.memory_space<vmem>>, vector<1x288xf32>
    %c3_16 = arith.constant 3 : index
    %c0_17 = arith.constant 0 : index
    %32 = vector.load %arg5[%c3_16, %c0_17] : memref<4x288xf32, #tpu.memory_space<vmem>>, vector<1x288xf32>
    %33 = vector.extract_strided_slice %1 {offsets = [0, 0], sizes = [128, 288], strides = [1, 1]} : vector<128x352xf32> to vector<128x288xf32>
    %34 = vector.broadcast %29 : vector<1x288xf32> to vector<128x288xf32>
    %35 = arith.mulf %33, %34 : vector<128x288xf32>
    %36 = vector.broadcast %30 : vector<1x288xf32> to vector<128x288xf32>
    %37 = arith.addf %35, %36 : vector<128x288xf32>
    %38 = vector.extract_strided_slice %28 {offsets = [0, 0], sizes = [128, 288], strides = [1, 1]} : vector<128x320xf32> to vector<128x288xf32>
    %39 = arith.mulf %37, %38 : vector<128x288xf32>
    %40 = vector.broadcast %31 : vector<1x288xf32> to vector<128x288xf32>
    %41 = arith.mulf %33, %40 : vector<128x288xf32>
    %42 = vector.broadcast %32 : vector<1x288xf32> to vector<128x288xf32>
    %43 = arith.addf %41, %42 : vector<128x288xf32>
    %44 = vector.extract_strided_slice %28 {offsets = [0, 32], sizes = [128, 288], strides = [1, 1]} : vector<128x320xf32> to vector<128x288xf32>
    %45 = arith.mulf %43, %44 : vector<128x288xf32>
    %46 = arith.addf %39, %45 : vector<128x288xf32>
    %c0_18 = arith.constant 0 : index
    %c0_19 = arith.constant 0 : index
    %47 = vector.load %arg6[%c0_18, %c0_19] : memref<4x256xf32, #tpu.memory_space<vmem>>, vector<1x256xf32>
    %c1_20 = arith.constant 1 : index
    %c0_21 = arith.constant 0 : index
    %48 = vector.load %arg6[%c1_20, %c0_21] : memref<4x256xf32, #tpu.memory_space<vmem>>, vector<1x256xf32>
    %c2_22 = arith.constant 2 : index
    %c0_23 = arith.constant 0 : index
    %49 = vector.load %arg6[%c2_22, %c0_23] : memref<4x256xf32, #tpu.memory_space<vmem>>, vector<1x256xf32>
    %c3_24 = arith.constant 3 : index
    %c0_25 = arith.constant 0 : index
    %50 = vector.load %arg6[%c3_24, %c0_25] : memref<4x256xf32, #tpu.memory_space<vmem>>, vector<1x256xf32>
    %51 = vector.extract_strided_slice %1 {offsets = [0, 0], sizes = [128, 256], strides = [1, 1]} : vector<128x352xf32> to vector<128x256xf32>
    %52 = vector.broadcast %47 : vector<1x256xf32> to vector<128x256xf32>
    %53 = arith.mulf %51, %52 : vector<128x256xf32>
    %54 = vector.broadcast %48 : vector<1x256xf32> to vector<128x256xf32>
    %55 = arith.addf %53, %54 : vector<128x256xf32>
    %56 = vector.extract_strided_slice %46 {offsets = [0, 0], sizes = [128, 256], strides = [1, 1]} : vector<128x288xf32> to vector<128x256xf32>
    %57 = arith.mulf %55, %56 : vector<128x256xf32>
    %58 = vector.broadcast %49 : vector<1x256xf32> to vector<128x256xf32>
    %59 = arith.mulf %51, %58 : vector<128x256xf32>
    %60 = vector.broadcast %50 : vector<1x256xf32> to vector<128x256xf32>
    %61 = arith.addf %59, %60 : vector<128x256xf32>
    %62 = vector.extract_strided_slice %46 {offsets = [0, 32], sizes = [128, 256], strides = [1, 1]} : vector<128x288xf32> to vector<128x256xf32>
    %63 = arith.mulf %61, %62 : vector<128x256xf32>
    %64 = arith.addf %57, %63 : vector<128x256xf32>
    %65 = arith.negf %0 : vector<128x32xf32>
    %66 = math.exp %65 : vector<128x32xf32>
    %cst = arith.constant 1.000000e+00 : f32
    %67 = vector.broadcast %cst : f32 to vector<128x32xf32>
    %68 = arith.addf %67, %66 : vector<128x32xf32>
    %69 = arith.divf %67, %68 : vector<128x32xf32>
    %70 = arith.mulf %0, %69 : vector<128x32xf32>
    %71 = tpu.concatenate %70, %64 in 1 : vector<128x32xf32>, vector<128x256xf32> -> vector<128x288xf32>
    %c0_26 = arith.constant 0 : index
    %c0_27 = arith.constant 0 : index
    %72 = vector.load %arg7[%c0_26, %c0_27] : memref<288x128xf32, #tpu.memory_space<vmem>>, vector<288x128xf32>
    %cst_28 = arith.constant dense<0.000000e+00> : vector<128x128xf32>
    %73 = tpu.matmul %71, %72, %cst_28 {dimension_numbers = #tpu.dot_dimension_numbers<[1], [0], [0], [1], [0, 0, 1, 1], [], []>} : vector<128x288xf32>, vector<288x128xf32>, vector<128x128xf32> -> vector<128x128xf32>
    %c0_29 = arith.constant 0 : index
    %c0_30 = arith.constant 0 : index
    %74 = vector.load %arg8[%c0_29, %c0_30] : memref<128x128xf32, #tpu.memory_space<vmem>>, vector<128x128xf32>
    tpu.vector_store %arg8[%c0_29, %c0_30], %73 {strides = array<i32>} : memref<128x128xf32, #tpu.memory_space<vmem>>, vector<128x128xf32>,
    return
  }
  func.func @transform_0(%arg0: i32, %arg1: i32) -> (i32, i32) {
    %c0_i32 = arith.constant 0 : i32
    %c0_i32_0 = arith.constant 0 : i32
    return %arg0, %c0_i32 : i32, i32
  }
  func.func @transform_1(%arg0: i32, %arg1: i32) -> (i32, i32) {
    %c0_i32 = arith.constant 0 : i32
    %c0_i32_0 = arith.constant 0 : i32
    %c0_i32_1 = arith.constant 0 : i32
    return %c0_i32, %c0_i32_0 : i32, i32
  }
  func.func @transform_2(%arg0: i32, %arg1: i32) -> (i32, i32) {
    %c0_i32 = arith.constant 0 : i32
    %c0_i32_0 = arith.constant 0 : i32
    %c0_i32_1 = arith.constant 0 : i32
    return %c0_i32, %c0_i32_0 : i32, i32
  }
  func.func @transform_3(%arg0: i32, %arg1: i32) -> (i32, i32) {
    %c0_i32 = arith.constant 0 : i32
    %c0_i32_0 = arith.constant 0 : i32
    %c0_i32_1 = arith.constant 0 : i32
    return %c0_i32, %c0_i32_0 : i32, i32
  }
  func.func @transform_4(%arg0: i32, %arg1: i32) -> (i32, i32) {
    %c0_i32 = arith.constant 0 : i32
    %c0_i32_0 = arith.constant 0 : i32
    %c0_i32_1 = arith.constant 0 : i32
    return %c0_i32, %c0_i32_0 : i32, i32
  }
  func.func @transform_5(%arg0: i32, %arg1: i32) -> (i32, i32) {
    %c0_i32 = arith.constant 0 : i32
    %c0_i32_0 = arith.constant 0 : i32
    return %c0_i32, %arg1 : i32, i32
  }
  func.func @transform_6(%arg0: i32, %arg1: i32) -> (i32, i32) {
    %c0_i32 = arith.constant 0 : i32
    return %arg0, %arg1 : i32, i32
  }
}

</mosaic_0001>

<bundles_post_ra>
// kernel: tpu_custom_call.1
= control target key start
LH: loop header
LB: loop body
LE: loop exit
PB: predicated region body
PF: predicated region fallthrough
CT: control target
= control target key end

     0   :  { %11 = vsyncpa [#allocation3], 0  ;;  %s7733_s0 = inlined_call_operand.vmem [shape: f32[256,32], index: 0, kind: input, shape index: {}]   ;;  %s7734_s1 = inlined_call_operand.hbm [shape: f32[2,352], index: 1, kind: input, shape index: {}]   ;;  %s7735_s2 = inlined_call_operand.vmem [shape: f32[4,320], index: 2, kind: input, shape index: {}]   ;;  %s7736_s3 = inlined_call_operand.vmem [shape: f32[4,288], index: 3, kind: input, shape index: {}]   ;;  %s7737_s4 = inlined_call_operand.vmem [shape: f32[4,256], index: 4, kind: input, shape index: {}]   ;;  %s7738_s5 = inlined_call_operand.vmem [shape: f32[288,128], index: 5, kind: input, shape index: {}]   ;;  %s7739_s6 = inlined_call_operand.hbm [shape: f32[256,128], index: 6, kind: output, shape index: {}]  }
   0x1   :  { %12 = vsyncpa [#allocation4], 0 }
   0x2   :  { %14 = vsyncpa [#allocation4 + $0x1], 0  ;;  %s3906_s21 = smov 0   ;;  %s3908_s22 = smov 0  }
   0x3   :  { %s3910_s23 = smov 0   ;;  %s3912_s24 = smov 0  }
   0x4   :  { %s3914_s25 = smov 0   ;;  %s3916_s26 = smov 0  }
   0x5 LB: > { %s3307_s27 = sadd.s32 4294967295, %s3862_s26   ;;  %s3308_s28 = sadd.s32 4294967294, %s3862_s26   ;;  %s3862_s26 = sphi %s3916_s26, %s20_s26   ;;  %s3858_s25 = sphi %s3914_s25, %s8568_s25   ;;  %s3854_s24 = sphi %s3912_s24, %s8567_s24   ;;  %s3850_s23 = sphi %s3910_s23, %s8566_s23   ;;  %s3846_s22 = sphi %s3908_s22, %s8565_s22   ;;  %s3842_s21 = sphi %s3906_s21, %s8564_s21  }
   0x6   : > { %s32_s29 = sadd.s32 1, %s3858_s25  ;;  %s177_s30 = sadd.s32 1, %s3850_s23 }
   0x7   : > { %p34_p0 = scmp.ge.s32.totalorder %s32_s29, 2  ;;  %p187_p1 = scmp.ne.s32.totalorder %s3850_s23, %s3846_s22 }
   0x8   : > { %p188_p2 = scmp.eq.s32.totalorder %s3307_s27, 1  ;;  %p193_p3 = scmp.ne.s32.totalorder %s3846_s22, %s3842_s21 }
   0x9   : > { %s8570_s29 = smov (%p34_p0, %s32_s29), 0  ;;  %p194_p5 = scmp.eq.s32.totalorder %s3308_s28, 1 }
   0xa   : > { %p3946_p4 = por %p188_p2, %p187_p1  ;;  %s172_s8 = ssub.s32 %s3858_s25, %s8570_s29 }
   0xb   : > { %p3309_p6 = scmp.ge.s32.totalorder %s3862_s26, 1  ;;  %p175_p7 = scmp.eq.s32.totalorder %s172_s8, 0 }
   0xc   : > { %p3953_p8 = por %p194_p5, %p193_p3  ;;  %p201_p9 = scmp.lt.s32.totalorder %s3862_s26, 3 }
   0xd   : > { %s3959_s10 = scalar_select %p175_p7, %s3850_s23, %s177_s30  }
   0xe   : > { %p202_p10 = pnand %p3309_p6, %p201_p9  ;;  %p3463_p11 = scmp.eq.s32.totalorder %s3307_s27, 0 }
   0xf   : > { %s213_s13 = sshll.u32 %s7734_s1, 4  ;;  %s3864_s14 = smov [#allocation2]   ;;  %s214_s13 = int_to_ptr.hbm [resolvable:$true] %s213_s13 }
  0x10   : > { %p3455_p12 = pneg %p202_p10  ;;  %s215_s15 = sshll.u32 %s3864_s14, 4  ;;  %s216_s15 = int_to_ptr.vmem [resolvable:$true] %s215_s15 }
  0x11   : > { %253 = sbr.rel (%p202_p10) target bundleno = 1111 (0x457), region = 44 }
  0x12   : > { %p3456_p13 = pnand %p3463_p11, %p3455_p12 }
  0x14   : > { %3458 = dma.hbm_to_vmem [thread:$0]  (!%p3456_p13), %s214_s13, 96, %s216_s15, [#allocation3]  }
  0x16   : > { %3833 = dma.done.wait (%p3463_p11), [#allocation3], 96  }
  0x17   : > { %3835 = vsyncadd (%p3463_p11), [#allocation3], 4294967200  ;;  %s3316_s16 = sshll.u32 %s3854_s24, 4  ;;  %s3865_s27 = smov 32   ;;  %vm7746_vm0 = vcmask 261120   ;;  %vm7759_vm1 = vcmask 523264  }
  0x18   : > { %p289_p0 = scmp.lt.s32.totalorder %s3316_s16, 31  ;;  %s3866_s28 = smov 64   ;;  %v526_v34 = vld [vmem:[#allocation2] ss:$2 sm:$0x7]  ;;  %v7740_v48 = vmov 0.0  }
  0x19   : > { %s3867_s30 = smov 96   ;;  %v528_v35 = vld [vmem:[#allocation2 + $0x1] ss:$2 sm:$0x7]  ;;  %v4137_v40 = vperm.slane %v526_v34, 2  ;;  %vm509_vm5 = vcmask 785408  }
  0x1a   : > { %s8572_s16 = smov (!%p289_p0, %s3316_s16), 31  ;;  %v4131_v36 = vld [vmem:[%s7735_s2] ss:$4 sm:$0x7]  ;;  %v4139_v41 = vperm.slane %v528_v35, 2  ;;  %v4172_v55 = vperm.slane %v526_v34, 0 }
  0x1b   : > { %s3317_s17 = sshll.u32 %s8572_s16, 3  ;;  %v4144_v42 = vld [vmem:[%s7735_s2 + $0x1] ss:$4 sm:$0x7]  ;;  %v4152_v45 = vperm.slane %v4131_v36, 2  ;;  %v4174_v56 = vperm.slane %v526_v34, 1 }
  0x1c   : > { %s3968_s20 = scalar_lea.vmem %s7733_s0, %s3317_s17  ;;  %v4161_v47 = vperm.slane %v4144_v42, 2  ;;  %v4176_v57 = vperm.slane %v528_v35, 0  ;;  %v4178_v58 = vperm.slane %v528_v35, 1  ;;  %s3412_s11 = sshll.u32 %s3854_s24, 7 }
  0x1d   : > { %v3971_v0 = vld [vmem:[%s3968_s20 + $0x20] sm:$0xff]  ;;  %v3974_v1 = vld [vmem:[%s3968_s20 + $0x10] sm:$0xff]  ;;  %v3986_v3 = vld [vmem:[%s3968_s20 + $0x28] sm:$0xff]  ;;  %7985 = vst [vmem:[#allocation9_spill] sm:$0xff] %v4152_v45  ;;  %s3204_s14 = scalar_lea.hbm %s7739_s6, %s3412_s11 }
  0x1e   : > { %v3977_v2 = vld [vmem:[%s3968_s20] sm:$0xff]  ;;  %339 = vrot.lane.b32.xlu2 %v3971_v0, %s3865_s27  ;;  %335 = vrot.lane.b32.xlu1 %v3974_v1, %s3865_s27  ;;  %v3989_v4 = vld [vmem:[%s3968_s20 + $0x18] sm:$0xff]  ;;  %7986 = vst [vmem:[#allocation10_spill] sm:$0xff] %v4161_v47 }
  0x1f   : > { %331 = vrot.lane.b32.xlu0 %v3977_v2, %s3865_s27  ;;  %v3992_v5 = vld [vmem:[%s3968_s20 + $0x8] sm:$0xff]  ;;  %v4001_v6 = vld [vmem:[%s3968_s20 + $0x40] sm:$0xff]  ;;  %v4004_v7 = vld [vmem:[%s3968_s20 + $0x38] sm:$0xff] }
  0x20   : > { %v4007_v8 = vld [vmem:[%s3968_s20 + $0x30] sm:$0xff]  ;;  %v4016_v9 = vld [vmem:[%s3968_s20 + $0x58] sm:$0xff]  ;;  %v4022_v11 = vld [vmem:[%s3968_s20 + $0x48] sm:$0xff] }
  0x21   : > { %v4019_v10 = vld [vmem:[%s3968_s20 + $0x50] sm:$0xff]  ;;  %v4034_v13 = vld [vmem:[%s3968_s20 + $0x68] sm:$0xff]  ;;  %v4037_v14 = vld [vmem:[%s3968_s20 + $0x60] sm:$0xff] }
  0x22   : > { %v4031_v12 = vld [vmem:[%s3968_s20 + $0x70] sm:$0xff]  ;;  %v4046_v15 = vld [vmem:[%s3968_s20 + $0x78] sm:$0xff] }
  0x26   : > { %341 = vrot.lane.b32.xlu2 %v3986_v3, %s3865_s27  ;;  %337 = vrot.lane.b32.xlu1 %v3989_v4, %s3865_s27 }
  0x27   : > { %333 = vrot.lane.b32.xlu0 %v3992_v5, %s3865_s27 }
  0x2e   : > { %347 = vrot.lane.b32.xlu2 %v4001_v6, %s3865_s27  ;;  %345 = vrot.lane.b32.xlu1 %v4004_v7, %s3865_s27 }
  0x2f   : > { %343 = vrot.lane.b32.xlu0 %v4007_v8, %s3865_s27 }
  0x36   : > { %353 = vrot.lane.b32.xlu2 %v4016_v9, %s3865_s27  ;;  %351 = vrot.lane.b32.xlu1 %v4019_v10, %s3865_s27 }
  0x37   : > { %349 = vrot.lane.b32.xlu0 %v4022_v11, %s3865_s27 }
  0x3e   : > { %359 = vrot.lane.b32.xlu2 %v4031_v12, %s3865_s27  ;;  %357 = vrot.lane.b32.xlu1 %v4034_v13, %s3865_s27 }
  0x3f   : > { %355 = vrot.lane.b32.xlu0 %v4037_v14, %s3865_s27 }
  0x46   : > { %381 = vrot.lane.b32.xlu2 %v3992_v5, %s3866_s28  ;;  %379 = vrot.lane.b32.xlu1 %v3977_v2, %s3866_s28 }
  0x47   : > { %361 = vrot.lane.b32.xlu0 %v4046_v15, %s3865_s27 }
  0x4e   : > { %387 = vrot.lane.b32.xlu2 %v3971_v0, %s3866_s28  ;;  %385 = vrot.lane.b32.xlu1 %v3989_v4, %s3866_s28 }
  0x4f   : > { %383 = vrot.lane.b32.xlu0 %v3974_v1, %s3866_s28 }
  0x56   : > { %393 = vrot.lane.b32.xlu2 %v4004_v7, %s3866_s28  ;;  %391 = vrot.lane.b32.xlu1 %v4007_v8, %s3866_s28 }
  0x57   : > { %389 = vrot.lane.b32.xlu0 %v3986_v3, %s3866_s28 }
  0x5e   : > { %399 = vrot.lane.b32.xlu2 %v4019_v10, %s3866_s28  ;;  %397 = vrot.lane.b32.xlu1 %v4022_v11, %s3866_s28 }
  0x5f   : > { %395 = vrot.lane.b32.xlu0 %v4001_v6, %s3866_s28 }
  0x66   : > { %405 = vrot.lane.b32.xlu2 %v4034_v13, %s3866_s28  ;;  %403 = vrot.lane.b32.xlu1 %v4037_v14, %s3866_s28 }
  0x67   : > { %401 = vrot.lane.b32.xlu0 %v4016_v9, %s3866_s28 }
  0x6e   : > { %427 = vrot.lane.b32.xlu2 %v3977_v2, %s3867_s30  ;;  %409 = vrot.lane.b32.xlu1 %v4046_v15, %s3866_s28 }
  0x6f   : > { %407 = vrot.lane.b32.xlu0 %v4031_v12, %s3866_s28  ;;  %s3800_s28 = scalar_lea.hbm %s7739_s6, 256 }
  0x76   : > { %433 = vrot.lane.b32.xlu2 %v3989_v4, %s3867_s30  ;;  %431 = vrot.lane.b32.xlu1 %v3974_v1, %s3867_s30 }
  0x77   : > { %429 = vrot.lane.b32.xlu0 %v3992_v5, %s3867_s30 }
  0x78   : > { %v4074_v16 = vpop.permute.xlu2 %339 }
  0x7e   : > { %439 = vrot.lane.b32.xlu2 %v4007_v8, %s3867_s30  ;;  %437 = vrot.lane.b32.xlu1 %v3986_v3, %s3867_s30 }
  0x7f   : > { %435 = vrot.lane.b32.xlu0 %v3971_v0, %s3867_s30 }
  0x80   : > { %v4082_v17 = vpop.permute.xlu2 %341 }
  0x86   : > { %445 = vrot.lane.b32.xlu2 %v4022_v11, %s3867_s30  ;;  %443 = vrot.lane.b32.xlu1 %v4001_v6, %s3867_s30 }
  0x87   : > { %441 = vrot.lane.b32.xlu0 %v4004_v7, %s3867_s30 }
  0x88   : > { %v4090_v18 = vpop.permute.xlu2 %347 }
  0x8e   : > { %451 = vrot.lane.b32.xlu2 %v4037_v14, %s3867_s30  ;;  %449 = vrot.lane.b32.xlu1 %v4016_v9, %s3867_s30 }
  0x8f   : > { %447 = vrot.lane.b32.xlu0 %v4019_v10, %s3867_s30 }
  0x90   : > { %v4098_v19 = vpop.permute.xlu2 %353  ;;  %v4100_v20 = vpop.permute.xlu1 %335 }
  0x91   : > { %v332_v21 = vpop.permute.xlu0 %331 }
  0x92   : > { %v476_v37 = vsel %vm7746_vm0, %v3977_v2, %v332_v21 }
  0x96   : > { %457 = vrot.lane.b32.xlu2 %v4046_v15, %s3867_s30  ;;  %455 = vrot.lane.b32.xlu1 %v4031_v12, %s3867_s30 }
  0x97   : > { %453 = vrot.lane.b32.xlu0 %v4034_v13, %s3867_s30 }
  0x98   : > { %v4108_v22 = vpop.permute.xlu2 %359  ;;  %v4110_v23 = vpop.permute.xlu1 %337 }
  0x99   : > { %v334_v24 = vpop.permute.xlu0 %333 }
  0xa0   : > { %v4112_v25 = vpop.permute.xlu1 %345  ;;  %v382_v26 = vpop.permute.xlu2 %381 }
  0xa1   : > { %v4114_v27 = vpop.permute.xlu0 %343 }
  0xa8   : > { %v4116_v28 = vpop.permute.xlu1 %351  ;;  %v4118_v29 = vpop.permute.xlu2 %387 }
  0xa9   : > { %v4120_v30 = vpop.permute.xlu0 %349 }
  0xb0   : > { %v4122_v31 = vpop.permute.xlu1 %357  ;;  %v4124_v32 = vpop.permute.xlu2 %393 }
  0xb1   : > { %v4126_v33 = vpop.permute.xlu0 %355 }
  0xb8   : > { %v4135_v38 = vpop.permute.xlu2 %399  ;;  %v380_v39 = vpop.permute.xlu1 %379 }
  0xb9   : > { %v4147_v43 = vsel %vm7759_vm1, %v476_v37, %v380_v39  ;;  %v4149_v44 = vpop.permute.xlu0 %361 }
  0xba   : > { %7984 = vst [vmem:[#allocation8_spill] sm:$0xff] %v4147_v43  ;;  %vm538_vm2 = vcmp.ge.f32.partialorder %v4147_v43, %v4137_v40  ;;  %vm593_vm3 = vcmp.lt.f32.partialorder %v4147_v43, %v4139_v41  ;;  %v799_v46 = vmul.f32 %v4152_v45, %v4147_v43 }
  0xbb   : > { %vm641_vm4 = vmand %vm538_vm2, %vm593_vm3 }
  0xbc   : > { %v4164_v49 = vsel %vm641_vm4, 1.0, %v7740_v48  ;;  %v854_v50 = vadd.f32 %v4161_v47, %v799_v46 }
  0xbe   : > { %v4168_v51 = vmul.f32 %v4164_v49, %v854_v50 }
  0xc0   : > { %v4170_v52 = vpop.permute.xlu2 %405  ;;  %v386_v53 = vpop.permute.xlu1 %385 }
  0xc1   : > { %v384_v54 = vpop.permute.xlu0 %383 }
  0xc8   : > { %v428_v59 = vpop.permute.xlu2 %427  ;;  %v4180_v60 = vpop.permute.xlu1 %391 }
  0xc9   : > { %v4184_v61 = vsel %vm509_vm5, %v4147_v43, %v428_v59  ;;  %v4186_v62 = vpop.permute.xlu0 %389  ;;  %v477_v59 = vsel %vm7746_vm0, %v3992_v5, %v334_v24  ;;  %v480_v5 = vsel %vm7746_vm0, %v3971_v0, %v4074_v16 }
  0xca   : > { %7987 = vst [vmem:[#allocation11_spill] sm:$0xff] %v4184_v61  ;;  %vm536_vm6 = vcmp.ge.f32.partialorder %v4184_v61, %v4172_v55  ;;  %vm537_vm7 = vcmp.ge.f32.partialorder %v4184_v61, %v4174_v56  ;;  %vm591_vm8 = vcmp.lt.f32.partialorder %v4184_v61, %v4176_v57  ;;  %vm592_vm9 = vcmp.lt.f32.partialorder %v4184_v61, %v4178_v58 }
  0xcb   : > { %vm639_vm10 = vmand %vm536_vm6, %vm591_vm8  ;;  %v481_v61 = vsel %vm7746_vm0, %v3986_v3, %v4082_v17  ;;  %v482_v3 = vsel %vm7746_vm0, %v4007_v8, %v4114_v27 }
  0xcc   : > { %vm640_vm11 = vmand %vm537_vm7, %vm592_vm9  ;;  %v4197_v63 = vsel %vm639_vm10, 1.0, %v7740_v48 }
  0xcd   : > { %7988 = vst [vmem:[#allocation12_spill] sm:$0xff] %v4197_v63  ;;  %v4200_v2 = vsel %vm640_vm11, 1.0, %v7740_v48  ;;  %v4220_v48 = vsel %vm7759_vm1, %v477_v59, %v382_v26 }
  0xce   : > { %7989 = vst [vmem:[#allocation13_spill] sm:$0xff] %v4200_v2  ;;  %v3521_v21 = vpack.i.bf16 %v4200_v2, %v4197_v63  ;;  %vm541_vm12 = vcmp.ge.f32.partialorder %v4220_v48, %v4137_v40  ;;  %vm596_vm13 = vcmp.lt.f32.partialorder %v4220_v48, %v4139_v41  ;;  %v479_v63 = vsel %vm7746_vm0, %v3989_v4, %v4110_v23 }
  0xcf   : > { %7990 = vst [vmem:[#allocation14_spill] sm:$0xff] %v4220_v48  ;;  %v4236_v24 = vsel %vm7759_vm1, %v479_v63, %v386_v53  ;;  %vm644_vm14 = vmand %vm541_vm12, %vm596_vm13  ;;  %v4288_v23 = vsel %vm7759_vm1, %v480_v5, %v4118_v29 }
  0xd0   : > { %3522 = vrot.lane.b32.xlu0 %v3521_v21, %s3867_s30  ;;  %v4205_v34 = vpop.permute.xlu1 %397  ;;  %v434_v2 = vpop.permute.xlu2 %433  ;;  %v478_v21 = vsel %vm7746_vm0, %v3974_v1, %v4100_v20  ;;  %7991 = vst [vmem:[#allocation15_spill] sm:$0xff] %v4236_v24  ;;  %v4247_v1 = vsel %vm7746_vm0, %v4001_v6, %v4090_v18  ;;  %v7996_v6 = vmov 0.0   ;;  %vm547_vm13 = vcmp.ge.f32.partialorder %v4236_v24, %v4137_v40 }
  0xd1   : > { %v4207_v35 = vpop.permute.xlu0 %395  ;;  %v4239_v26 = vsel %vm7759_vm1, %v478_v21, %v384_v54  ;;  %v4251_v4 = vsel %vm509_vm5, %v4236_v24, %v434_v2  ;;  %v4282_v18 = vsel %vm644_vm14, 1.0, %v7996_v6  ;;  %7998 = vst [vmem:[#allocation21_spill] sm:$0xff] %v4288_v23  ;;  %v4317_v2 = vsel %vm7759_vm1, %v482_v3, %v4180_v60 }
  0xd2   : > { %7992 = vst [vmem:[#allocation16_spill] sm:$0xff] %v4239_v26  ;;  %v4341_v60 = vsel %vm7759_vm1, %v481_v61, %v4186_v62 }
  0xd3   : > { %7993 = vst [vmem:[#allocation17_spill] sm:$0xff] %v4251_v4 }
  0xd4   : > { %8001 = vst [vmem:[#allocation24_spill] sm:$0xff] %v4317_v2 }
  0xd5   : > { %8004 = vst [vmem:[#allocation25_spill] sm:$0xff] %v4341_v60 }
  0xd8   : > { %v4209_v37 = vpop.permute.xlu1 %403  ;;  %v440_v8 = vpop.permute.xlu2 %439 }
  0xd9   : > { %v4211_v39 = vpop.permute.xlu0 %401 }
  0xe0   : > { %v4213_v46 = vpop.permute.xlu1 %409 }
  0xe1   : > { %v4215_v50 = vpop.permute.xlu0 %407 }
  0xe8   : > { %v432_v59 = vpop.permute.xlu1 %431 }
  0xe9   : > { %v4255_v0 = vsel %vm509_vm5, %v4239_v26, %v432_v59  ;;  %v430_v16 = vpop.permute.xlu0 %429 }
  0xea   : > { %7994 = vst [vmem:[#allocation18_spill] sm:$0xff] %v4255_v0  ;;  %v4259_v20 = vsel %vm509_vm5, %v4220_v48, %v430_v16  ;;  %vm542_vm15 = vcmp.ge.f32.partialorder %v4255_v0, %v4172_v55  ;;  %vm543_vm2 = vcmp.ge.f32.partialorder %v4255_v0, %v4174_v56  ;;  %vm597_vm3 = vcmp.lt.f32.partialorder %v4255_v0, %v4176_v57 }
  0xeb   : > { %7995 = vst [vmem:[#allocation19_spill] sm:$0xff] %v4259_v20  ;;  %vm598_vm4 = vcmp.lt.f32.partialorder %v4255_v0, %v4178_v58  ;;  %vm645_vm6 = vmand %vm542_vm15, %vm597_vm3  ;;  %vm540_vm7 = vcmp.ge.f32.partialorder %v4259_v20, %v4174_v56  ;;  %vm595_vm8 = vcmp.lt.f32.partialorder %v4259_v20, %v4178_v58  ;;  %vm539_vm9 = vcmp.ge.f32.partialorder %v4259_v20, %v4172_v55 }
  0xec   : > { %vm646_vm10 = vmand %vm543_vm2, %vm598_vm4  ;;  %v4279_v17 = vsel %vm645_vm6, 1.0, %v7996_v6  ;;  %vm594_vm11 = vcmp.lt.f32.partialorder %v4259_v20, %v4176_v57  ;;  %vm602_vm15 = vcmp.lt.f32.partialorder %v4236_v24, %v4139_v41  ;;  %vm546_vm2 = vcmp.ge.f32.partialorder %v4251_v4, %v4174_v56 }
  0xed   : > { %7997 = vst [vmem:[#allocation20_spill] sm:$0xff] %v4279_v17  ;;  %v4291_v53 = vsel %vm646_vm10, 1.0, %v7996_v6  ;;  %vm643_vm12 = vmand %vm540_vm7, %vm595_vm8  ;;  %vm601_vm3 = vcmp.lt.f32.partialorder %v4251_v4, %v4178_v58  ;;  %vm545_vm4 = vcmp.ge.f32.partialorder %v4251_v4, %v4172_v55  ;;  %vm600_vm6 = vcmp.lt.f32.partialorder %v4251_v4, %v4176_v57 }
  0xee   : > { %7999 = vst [vmem:[#allocation22_spill] sm:$0xff] %v4291_v53  ;;  %v3536_v27 = vpack.i.bf16 %v4291_v53, %v4279_v17  ;;  %v4300_v54 = vsel %vm643_vm12, 1.0, %v7996_v6  ;;  %vm642_vm14 = vmand %vm539_vm9, %vm594_vm11  ;;  %vm544_vm8 = vcmp.ge.f32.partialorder %v4239_v26, %v4137_v40  ;;  %vm599_vm9 = vcmp.lt.f32.partialorder %v4239_v26, %v4139_v41 }
  0xef   : > { %8000 = vst [vmem:[#allocation23_spill] sm:$0xff] %v4300_v54  ;;  %v3531_v29 = vpack.i.bf16 %v4282_v18, %v4300_v54  ;;  %v4309_v63 = vsel %vm642_vm14, 1.0, %v7996_v6  ;;  %vm4328_vm7 = vmand %vm547_vm13, %vm602_vm15  ;;  %v4345_v16 = vsel %vm509_vm5, %v4317_v2, %v440_v8  ;;  %vm550_vm11 = vcmp.ge.f32.partialorder %v4288_v23, %v4137_v40 }
  0xf0   : > { %3537 = vrot.lane.b32.xlu0 %v3536_v27, %s3867_s30  ;;  %v3526_v21 = vpack.i.bf16 %v4309_v63, %v4164_v49  ;;  %v438_v5 = vpop.permute.xlu1 %437  ;;  %v483_v49 = vsel %vm7746_vm0, %v4004_v7, %v4112_v25  ;;  %8005 = vst [vmem:[#allocation26_spill] sm:$0xff] %v4345_v16  ;;  %vm649_vm10 = vmand %vm546_vm2, %vm601_vm3  ;;  %vm605_vm13 = vcmp.lt.f32.partialorder %v4288_v23, %v4139_v41  ;;  %v4394_v62 = vsel %vm4328_vm7, 1.0, %v7996_v6 }
  0xf1   : > { %3532 = vrot.lane.b32.xlu2 %v3531_v29, %s3867_s30  ;;  %v436_v3 = vpop.permute.xlu0 %435  ;;  %v4358_v7 = vsel %vm7759_vm1, %v483_v49, %v4124_v32  ;;  %v4363_v25 = vsel %vm509_vm5, %v4341_v60, %v438_v5  ;;  %vm648_vm12 = vmand %vm545_vm4, %vm600_vm6  ;;  %v4389_v32 = vsel %vm649_vm10, 1.0, %v7996_v6  ;;  %vm554_vm6 = vcmp.ge.f32.partialorder %v4345_v16, %v4172_v55 }
  0xf2   : > { %8006 = vst [vmem:[#allocation27_spill] sm:$0xff] %v4358_v7  ;;  %3527 = vrot.lane.b32.xlu1 %v3526_v21, %s3867_s30  ;;  %v4367_v61 = vsel %vm509_vm5, %v4288_v23, %v436_v3  ;;  %vm647_vm15 = vmand %vm544_vm8, %vm599_vm9  ;;  %vm609_vm8 = vcmp.lt.f32.partialorder %v4345_v16, %v4176_v57  ;;  %v4401_v8 = vsel %vm648_vm12, 1.0, %v7996_v6  ;;  %vm555_vm10 = vcmp.ge.f32.partialorder %v4345_v16, %v4174_v56 }
  0xf3   : > { %8007 = vst [vmem:[#allocation28_spill] sm:$0xff] %v4363_v25  ;;  %vm548_vm14 = vcmp.ge.f32.partialorder %v4367_v61, %v4172_v55  ;;  %vm549_vm2 = vcmp.ge.f32.partialorder %v4367_v61, %v4174_v56  ;;  %vm603_vm3 = vcmp.lt.f32.partialorder %v4367_v61, %v4176_v57  ;;  %vm604_vm0 = vcmp.lt.f32.partialorder %v4367_v61, %v4178_v58 }
  0xf4   : > { %8008 = vst [vmem:[#allocation29_spill] sm:$0xff] %v4367_v61  ;;  %vm651_vm4 = vmand %vm548_vm14, %vm603_vm3  ;;  %vm610_vm7 = vcmp.lt.f32.partialorder %v4345_v16, %v4178_v58  ;;  %v4411_v29 = vsel %vm647_vm15, 1.0, %v7996_v6  ;;  %vm552_vm12 = vcmp.ge.f32.partialorder %v4363_v25, %v4174_v56  ;;  %v3546_v59 = vpack.i.bf16 %v4394_v62, %v4389_v32 }
  0xf5   : > { %8009 = vst [vmem:[#allocation30_spill] sm:$0xff] %v4389_v32  ;;  %vm652_vm9 = vmand %vm549_vm2, %vm604_vm0  ;;  %v4404_v27 = vsel %vm651_vm4, 1.0, %v7996_v6  ;;  %vm607_vm0 = vcmp.lt.f32.partialorder %v4363_v25, %v4178_v58  ;;  %vm551_vm15 = vcmp.ge.f32.partialorder %v4363_v25, %v4172_v55  ;;  %vm606_vm2 = vcmp.lt.f32.partialorder %v4363_v25, %v4176_v57 }
  0xf6   : > { %8010 = vst [vmem:[#allocation31_spill] sm:$0xff] %v4401_v8  ;;  %v4414_v21 = vsel %vm652_vm9, 1.0, %v7996_v6  ;;  %vm4426_vm14 = vmand %vm550_vm11, %vm605_vm13  ;;  %v3541_v32 = vpack.i.bf16 %v4401_v8, %v4411_v29  ;;  %vm553_vm13 = vcmp.ge.f32.partialorder %v4341_v60, %v4137_v40  ;;  %vm608_vm3 = vcmp.lt.f32.partialorder %v4341_v60, %v4139_v41 }
  0xf7   : > { %8011 = vst [vmem:[#allocation32_spill] sm:$0xff] %v4404_v27  ;;  %v3551_v49 = vpack.i.bf16 %v4414_v21, %v4404_v27  ;;  %vm4444_vm11 = vmand %vm554_vm6, %vm609_vm8  ;;  %vm8021_vm8 = vcmask 261120  }
  0xf8   : > { %8012 = vst [vmem:[#allocation33_spill] sm:$0xff] %v4414_v21  ;;  %v4451_v21 = vsel %vm7759_vm1, %v4247_v1, %v4207_v35  ;;  %v444_v53 = vpop.permute.xlu1 %443  ;;  %vm4465_vm4 = vmand %vm555_vm10, %vm610_vm7  ;;  %v486_v54 = vsel %vm8021_vm8, %v4019_v10, %v4116_v28  ;;  %v4501_v10 = vsel %vm4444_vm11, 1.0, %v7996_v6 }
  0xf9   : > { %8017 = vst [vmem:[#allocation34_spill] sm:$0xff] %v4451_v21  ;;  %3547 = vrot.lane.b32.xlu2 %v3546_v59, %s3867_s30  ;;  %3552 = vrot.lane.b32.xlu0 %v3551_v49, %s3867_s30  ;;  %v4473_v35 = vsel %vm509_vm5, %v4451_v21, %v444_v53  ;;  %v442_v1 = vpop.permute.xlu0 %441  ;;  %vm655_vm6 = vmand %vm552_vm12, %vm607_vm0  ;;  %vm559_vm12 = vcmp.ge.f32.partialorder %v4358_v7, %v4137_v40 }
  0xfa   : > { %8020 = vst [vmem:[#allocation35_spill] sm:$0xff] %v4473_v35  ;;  %vm8022_vm9 = vmmov %vm8021_vm8  ;;  %3542 = vrot.lane.b32.xlu1 %v3541_v32, %s3867_s30  ;;  %v4496_v53 = vsel %vm509_vm5, %v4358_v7, %v442_v1  ;;  %vm614_vm0 = vcmp.lt.f32.partialorder %v4358_v7, %v4139_v41  ;;  %v4508_v28 = vsel %vm655_vm6, 1.0, %v7996_v6  ;;  %v4522_v32 = vsel %vm4426_vm14, 1.0, %v7996_v6 }
  0xfb   : > { %v485_v59 = vsel %vm8022_vm9, %v4022_v11, %v4120_v30  ;;  %vm654_vm10 = vmand %vm551_vm15, %vm606_vm2  ;;  %v446_v11 = vpop.permute.xlu2 %445  ;;  %8023 = vst [vmem:[#allocation36_spill] sm:$0xff] %v4508_v28  ;;  %v4513_v30 = vsel %vm4465_vm4, 1.0, %v7996_v6  ;;  %vm560_vm15 = vcmp.ge.f32.partialorder %v4473_v35, %v4172_v55  ;;  %vm615_vm2 = vcmp.lt.f32.partialorder %v4473_v35, %v4176_v57 }
  0xfc   : > { %vm656_vm7 = vmand %vm553_vm13, %vm608_vm3  ;;  %8024 = vst [vmem:[#allocation37_spill] sm:$0xff] %v4513_v30  ;;  %v4525_v49 = vsel %vm654_vm10, 1.0, %v7996_v6  ;;  %vm561_vm11 = vcmp.ge.f32.partialorder %v4473_v35, %v4174_v56  ;;  %vm616_vm13 = vcmp.lt.f32.partialorder %v4473_v35, %v4178_v58  ;;  %v4533_v27 = vsel %vm7759_vm1, %v485_v59, %v4205_v34 }
  0xfd   : > { %8025 = vst [vmem:[#allocation38_spill] sm:$0xff] %v4525_v49  ;;  %v4536_v3 = vsel %vm656_vm7, 1.0, %v7996_v6  ;;  %vm558_vm14 = vcmp.ge.f32.partialorder %v4496_v53, %v4174_v56  ;;  %vm613_vm3 = vcmp.lt.f32.partialorder %v4496_v53, %v4178_v58  ;;  %vm4545_vm4 = vmand %vm559_vm12, %vm614_vm0  ;;  %v3566_v1 = vpack.i.bf16 %v4513_v30, %v4501_v10 }
  0xfe   : > { %8026 = vst [vmem:[#allocation39_spill] sm:$0xff] %v4533_v27  ;;  %v3561_v34 = vpack.i.bf16 %v4536_v3, %v4508_v28  ;;  %vm4553_vm6 = vmand %vm560_vm15, %vm615_vm2  ;;  %vm557_vm8 = vcmp.ge.f32.partialorder %v4496_v53, %v4172_v55  ;;  %vm612_vm9 = vcmp.lt.f32.partialorder %v4496_v53, %v4176_v57  ;;  %v4563_v7 = vsel %vm509_vm5, %v4533_v27, %v446_v11 }
  0xff   : > { %8031 = vst [vmem:[#allocation40_spill] sm:$0xff] %v4563_v7  ;;  %v3556_v28 = vpack.i.bf16 %v4525_v49, %v4522_v32  ;;  %vm4567_vm10 = vmand %vm561_vm11, %vm616_vm13  ;;  %vm556_vm7 = vcmp.ge.f32.partialorder %v4317_v2, %v4137_v40  ;;  %vm611_vm12 = vcmp.lt.f32.partialorder %v4317_v2, %v4139_v41  ;;  %v4577_v8 = vsel %vm7759_vm1, %v486_v54, %v4135_v38 }
 0x100   : > { %8034 = vst [vmem:[#allocation41_spill] sm:$0xff] %v4577_v8  ;;  %vm661_vm0 = vmand %vm558_vm14, %vm613_vm3  ;;  %vm564_vm11 = vcmp.ge.f32.partialorder %v4563_v7, %v4174_v56  ;;  %vm565_vm13 = vcmp.ge.f32.partialorder %v4533_v27, %v4137_v40  ;;  %vm620_vm1 = vcmp.lt.f32.partialorder %v4533_v27, %v4139_v41  ;;  %v450_v38 = vpop.permute.xlu1 %449  ;;  %v4601_v54 = vsel %vm4553_vm6, 1.0, %v7996_v6 }
 0x101   : > { %3562 = vrot.lane.b32.xlu2 %v3561_v34, %s3867_s30  ;;  %3567 = vrot.lane.b32.xlu0 %v3566_v1, %s3867_s30  ;;  %v448_v11 = vpop.permute.xlu0 %447  ;;  %vm660_vm15 = vmand %vm557_vm8, %vm612_vm9  ;;  %8036 = vst [vmem:[#allocation43_spill] sm:$0xff] %v4601_v54  ;;  %v4609_v34 = vsel %vm661_vm0, 1.0, %v7996_v6  ;;  %vm619_vm14 = vcmp.lt.f32.partialorder %v4563_v7, %v4178_v58  ;;  %vm8039_vm3 = vcmask 261120   ;;  %v4626_v59 = vsel %vm4545_vm4, 1.0, %v7996_v6 }
 0x102   : > { %3557 = vrot.lane.b32.xlu1 %v3556_v28, %s3867_s30  ;;  %v4590_v49 = vsel %vm509_vm5, %v4577_v8, %v448_v11  ;;  %vm659_vm2 = vmand %vm556_vm7, %vm611_vm12  ;;  %v4606_v28 = vsel %vm4567_vm10, 1.0, %v7996_v6  ;;  %8038 = vst [vmem:[#allocation45_spill] sm:$0xff] %v4609_v34  ;;  %v488_v1 = vsel %vm8039_vm3, %v4037_v14, %v4126_v33  ;;  %v4617_v11 = vsel %vm660_vm15, 1.0, %v7996_v6 }
 0x103   : > { %8035 = vst [vmem:[#allocation42_spill] sm:$0xff] %v4590_v49  ;;  %vm566_vm6 = vcmp.ge.f32.partialorder %v4590_v49, %v4172_v55  ;;  %vm621_vm8 = vcmp.lt.f32.partialorder %v4590_v49, %v4176_v57  ;;  %v452_v61 = vpop.permute.xlu2 %451  ;;  %v4629_v27 = vsel %vm659_vm2, 1.0, %v7996_v6  ;;  %vm4631_vm9 = vmand %vm565_vm13, %vm620_vm1  ;;  %vm567_vm10 = vcmp.ge.f32.partialorder %v4590_v49, %v4174_v56 }
 0x104   : > { %8037 = vst [vmem:[#allocation44_spill] sm:$0xff] %v4606_v28  ;;  %vm622_vm7 = vcmp.lt.f32.partialorder %v4590_v49, %v4178_v58  ;;  %v3581_v33 = vpack.i.bf16 %v4606_v28, %v4601_v54  ;;  %v3576_v5 = vpack.i.bf16 %v4626_v59, %v4609_v34  ;;  %vm4646_vm4 = vmand %vm564_vm11, %vm619_vm14  ;;  %vm563_vm1 = vcmp.ge.f32.partialorder %v4563_v7, %v4172_v55 }
 0x105   : > { %8040 = vst [vmem:[#allocation46_spill] sm:$0xff] %v4617_v11  ;;  %vm618_vm12 = vcmp.lt.f32.partialorder %v4563_v7, %v4176_v57  ;;  %vm8046_vm0 = vcmask 523264   ;;  %v3571_v54 = vpack.i.bf16 %v4617_v11, %v4629_v27  ;;  %vm562_vm15 = vcmp.ge.f32.partialorder %v4451_v21, %v4137_v40  ;;  %vm4670_vm11 = vmand %vm566_vm6, %vm621_vm8 }
 0x106   : > { %8041 = vst [vmem:[#allocation47_spill] sm:$0xff] %v4626_v59  ;;  %v4656_v17 = vsel %vm8046_vm0, %v488_v1, %v4209_v37  ;;  %vm617_vm2 = vcmp.lt.f32.partialorder %v4451_v21, %v4139_v41  ;;  %vm8050_vm13 = vmmov %vm8039_vm3  ;;  %v490_v59 = vsel %vm8039_vm3, %v4031_v12, %v4108_v22  ;;  %v4725_v22 = vsel %vm4670_vm11, 1.0, %v7996_v6 }
 0x107   : > { %8047 = vst [vmem:[#allocation48_spill] sm:$0xff] %v4656_v17  ;;  %v487_v37 = vsel %vm8050_vm13, %v4016_v9, %v4098_v19  ;;  %v4679_v1 = vsel %vm509_vm5, %v4656_v17, %v452_v61  ;;  %vm670_vm14 = vmand %vm567_vm10, %vm622_vm7  ;;  %vm623_vm13 = vcmp.lt.f32.partialorder %v4577_v8, %v4139_v41 }
 0x108   : > { %8051 = vst [vmem:[#allocation49_spill] sm:$0xff] %v4679_v1  ;;  %vm8052_vm6 = vmmov %vm8039_vm3 }
 0x109   : > { %3582 = vrot.lane.b32.xlu0 %v3581_v33, %s3867_s30  ;;  %3577 = vrot.lane.b32.xlu2 %v3576_v5, %s3867_s30  ;;  %v489_v9 = vsel %vm8052_vm6, %v4034_v13, %v4122_v31  ;;  %vm8053_vm8 = vmmov %vm8046_vm0  ;;  %v4713_v13 = vsel %vm4646_vm4, 1.0, %v7996_v6  ;;  %vm568_vm0 = vcmp.ge.f32.partialorder %v4577_v8, %v4137_v40  ;;  %8057 = vst [vmem:[#allocation53_spill] sm:$0xff] %v4725_v22  ;;  %v4728_v31 = vsel %vm670_vm14, 1.0, %v7996_v6 }
 0x10a   : > { %v4697_v19 = vsel %vm8053_vm8, %v487_v37, %v4211_v39  ;;  %3572 = vrot.lane.b32.xlu1 %v3571_v54, %s3867_s30  ;;  %vm666_vm10 = vmand %vm563_vm1, %vm618_vm12  ;;  %8056 = vst [vmem:[#allocation52_spill] sm:$0xff] %v4713_v13  ;;  %vm572_vm4 = vcmp.ge.f32.partialorder %v4679_v1, %v4172_v55  ;;  %vm627_vm1 = vcmp.lt.f32.partialorder %v4679_v1, %v4176_v57  ;;  %v4748_v54 = vsel %vm4631_vm9, 1.0, %v7996_v6  ;;  %v454_v37 = vpop.permute.xlu0 %453 }
 0x10b   : > { %8054 = vst [vmem:[#allocation50_spill] sm:$0xff] %v4697_v19  ;;  %v4708_v12 = vsel %vm509_vm5, %v4697_v19, %v450_v38  ;;  %vm665_vm7 = vmand %vm562_vm15, %vm617_vm2  ;;  %v4739_v30 = vsel %vm666_vm10, 1.0, %v7996_v6  ;;  %vm573_vm15 = vcmp.ge.f32.partialorder %v4679_v1, %v4174_v56  ;;  %vm628_vm2 = vcmp.lt.f32.partialorder %v4679_v1, %v4178_v58  ;;  %v456_v38 = vpop.permute.xlu1 %455 }
 0x10c   : > { %8055 = vst [vmem:[#allocation51_spill] sm:$0xff] %v4708_v12  ;;  %vm8059_vm12 = vmmov %vm8053_vm8  ;;  %v4751_v28 = vsel %vm665_vm7, 1.0, %v7996_v6  ;;  %vm570_vm11 = vcmp.ge.f32.partialorder %v4708_v12, %v4174_v56  ;;  %vm625_vm14 = vcmp.lt.f32.partialorder %v4708_v12, %v4178_v58  ;;  %v3591_v61 = vpack.i.bf16 %v4748_v54, %v4713_v13 }
 0x10d   : > { %8058 = vst [vmem:[#allocation54_spill] sm:$0xff] %v4728_v31  ;;  %v4736_v39 = vsel %vm8059_vm12, %v489_v9, %v4170_v52  ;;  %vm4760_vm3 = vmand %vm568_vm0, %vm623_vm13  ;;  %v3596_v14 = vpack.i.bf16 %v4728_v31, %v4725_v22  ;;  %vm569_vm9 = vcmp.ge.f32.partialorder %v4708_v12, %v4172_v55  ;;  %vm624_vm6 = vcmp.lt.f32.partialorder %v4708_v12, %v4176_v57  ;;  %v458_v31 = vpop.permute.xlu2 %457 }
 0x10e   : > { %8060 = vst [vmem:[#allocation55_spill] sm:$0xff] %v4736_v39  ;;  %vm4778_vm8 = vmand %vm572_vm4, %vm627_vm1  ;;  %v3586_v9 = vpack.i.bf16 %v4739_v30, %v4751_v28  ;;  %vm571_vm7 = vcmp.ge.f32.partialorder %v4697_v19, %v4137_v40  ;;  %vm626_vm0 = vcmp.lt.f32.partialorder %v4697_v19, %v4139_v41 }
 0x10f   : > { %8061 = vst [vmem:[#allocation56_spill] sm:$0xff] %v4739_v30  ;;  %vm8068_vm10 = vmmov %vm8059_vm12 }
 0x110   : > { %8062 = vst [vmem:[#allocation57_spill] sm:$0xff] %v4748_v54  ;;  %v4784_v5 = vsel %vm8068_vm10, %v490_v59, %v4215_v50  ;;  %vm676_vm13 = vmand %vm573_vm15, %vm628_vm2  ;;  %v4813_v59 = vsel %vm509_vm5, %v4736_v39, %v454_v37  ;;  %vm577_vm15 = vcmp.ge.f32.partialorder %v4736_v39, %v4137_v40  ;;  %vm632_vm2 = vcmp.lt.f32.partialorder %v4736_v39, %v4139_v41 }
 0x111   : > { %8063 = vst [vmem:[#allocation58_spill] sm:$0xff] %v4751_v28  ;;  %v4800_v50 = vsel %vm509_vm5, %v4784_v5, %v456_v38  ;;  %3592 = vrot.lane.b32.xlu2 %v3591_v61, %s3867_s30  ;;  %3597 = vrot.lane.b32.xlu0 %v3596_v14, %s3867_s30  ;;  %vm673_vm4 = vmand %vm570_vm11, %vm625_vm14  ;;  %v4818_v38 = vsel %vm4778_vm8, 1.0, %v7996_v6  ;;  %v4828_v14 = vsel %vm676_vm13, 1.0, %v7996_v6  ;;  %vm576_vm8 = vcmp.ge.f32.partialorder %v4813_v59, %v4174_v56 }
 0x112   : > { %8069 = vst [vmem:[#allocation59_spill] sm:$0xff] %v4784_v5  ;;  %3587 = vrot.lane.b32.xlu1 %v3586_v9, %s3867_s30  ;;  %vm672_vm1 = vmand %vm569_vm9, %vm624_vm6  ;;  %v4825_v61 = vsel %vm673_vm4, 1.0, %v7996_v6  ;;  %vm578_vm11 = vcmp.ge.f32.partialorder %v4800_v50, %v4172_v55  ;;  %vm633_vm14 = vcmp.lt.f32.partialorder %v4800_v50, %v4176_v57  ;;  %vm579_vm9 = vcmp.ge.f32.partialorder %v4800_v50, %v4174_v56 }
 0x113   : > { %8070 = vst [vmem:[#allocation60_spill] sm:$0xff] %v4800_v50  ;;  %vm674_vm12 = vmand %vm571_vm7, %vm626_vm0  ;;  %v4835_v33 = vsel %vm672_vm1, 1.0, %v7996_v6  ;;  %vm634_vm6 = vcmp.lt.f32.partialorder %v4800_v50, %v4178_v58  ;;  %v4847_v9 = vsel %vm4760_vm3, 1.0, %v7996_v6  ;;  %vm631_vm10 = vcmp.lt.f32.partialorder %v4813_v59, %v4178_v58 }
 0x114   : > { %8071 = vst [vmem:[#allocation61_spill] sm:$0xff] %v4813_v59  ;;  %v4842_v37 = vsel %vm674_vm12, 1.0, %v7996_v6  ;;  %vm4853_vm7 = vmand %vm577_vm15, %vm632_vm2  ;;  %v3611_v54 = vpack.i.bf16 %v4828_v14, %v4818_v38  ;;  %vm575_vm3 = vcmp.ge.f32.partialorder %v4813_v59, %v4172_v55  ;;  %vm630_vm13 = vcmp.lt.f32.partialorder %v4813_v59, %v4176_v57 }
 0x115   : > { %8072 = vst [vmem:[#allocation62_spill] sm:$0xff] %v4818_v38  ;;  %v3606_v30 = vpack.i.bf16 %v4842_v37, %v4825_v61  ;;  %vm4861_vm0 = vmand %vm578_vm11, %vm633_vm14  ;;  %v3601_v13 = vpack.i.bf16 %v4835_v33, %v4847_v9  ;;  %vm574_vm1 = vcmp.ge.f32.partialorder %v4656_v17, %v4137_v40  ;;  %vm629_vm12 = vcmp.lt.f32.partialorder %v4656_v17, %v4139_v41 }
 0x116   : > { %8073 = vst [vmem:[#allocation63_spill] sm:$0xff] %v4825_v61  ;;  %vm682_vm4 = vmand %vm579_vm9, %vm634_vm6  ;;  %vm8082_vm15 = vcmask 261120   ;;  %vm8083_vm11 = vcmask 523264  }
 0x117   : > { %8074 = vst [vmem:[#allocation64_spill] sm:$0xff] %v4828_v14  ;;  %v491_v61 = vsel %vm8082_vm15, %v4046_v15, %v4149_v44  ;;  %vm679_vm2 = vmand %vm576_vm8, %vm631_vm10  ;;  %v4898_v44 = vsel %vm4861_vm0, 1.0, %v7996_v6 }
 0x118   : > { %8075 = vst [vmem:[#allocation65_spill] sm:$0xff] %v4835_v33  ;;  %v4888_v33 = vsel %vm8083_vm11, %v491_v61, %v4213_v46  ;;  %vm678_vm14 = vmand %vm575_vm3, %vm630_vm13  ;;  %vm8465_vm11 = vcmask 261120  }
 0x119   : > { %8076 = vst [vmem:[#allocation66_spill] sm:$0xff] %v4842_v37  ;;  %3607 = vrot.lane.b32.xlu2 %v3606_v30, %s3867_s30  ;;  %3612 = vrot.lane.b32.xlu0 %v3611_v54, %s3867_s30  ;;  %v4893_v15 = vsel %vm509_vm5, %v4888_v33, %v458_v31  ;;  %vm677_vm9 = vmand %vm574_vm1, %vm629_vm12  ;;  %v4901_v30 = vsel %vm682_vm4, 1.0, %v7996_v6  ;;  %v4904_v54 = vsel %vm679_vm2, 1.0, %v7996_v6  ;;  %v4907_v46 = vsel %vm678_vm14, 1.0, %v7996_v6 }
 0x11a   : > { %8077 = vst [vmem:[#allocation67_spill] sm:$0xff] %v4847_v9  ;;  %3602 = vrot.lane.b32.xlu1 %v3601_v13, %s3867_s30  ;;  %v4912_v13 = vsel %vm4853_vm7, 1.0, %v7996_v6  ;;  %v4915_v31 = vsel %vm677_vm9, 1.0, %v7996_v6  ;;  %vm582_vm6 = vcmp.ge.f32.partialorder %v4893_v15, %v4174_v56  ;;  %vm637_vm8 = vcmp.lt.f32.partialorder %v4893_v15, %v4178_v58 }
 0x11b   : > { %8084 = vst [vmem:[#allocation68_spill] sm:$0xff] %v4888_v33  ;;  %v3626_v61 = vpack.i.bf16 %v4901_v30, %v4898_v44  ;;  %v3621_v52 = vpack.i.bf16 %v4912_v13, %v4904_v54  ;;  %vm581_vm10 = vcmp.ge.f32.partialorder %v4893_v15, %v4172_v55  ;;  %vm636_vm7 = vcmp.lt.f32.partialorder %v4893_v15, %v4176_v57  ;;  %vm685_vm13 = vmand %vm582_vm6, %vm637_vm8 }
 0x11c   : > { %8085 = vst [vmem:[#allocation69_spill] sm:$0xff] %v4893_v15  ;;  %v3616_v22 = vpack.i.bf16 %v4907_v46, %v4915_v31  ;;  %vm583_vm0 = vcmp.ge.f32.partialorder %v4888_v33, %v4137_v40  ;;  %vm638_vm3 = vcmp.lt.f32.partialorder %v4888_v33, %v4139_v41  ;;  %vm580_vm4 = vcmp.ge.f32.partialorder %v4784_v5, %v4137_v40  ;;  %vm684_vm12 = vmand %vm581_vm10, %vm636_vm7 }
 0x11d   : > { %8086 = vst [vmem:[#allocation70_spill] sm:$0xff] %v4898_v44  ;;  %vm635_vm1 = vcmp.lt.f32.partialorder %v4784_v5, %v4139_v41  ;;  %vm686_vm15 = vmand %vm583_vm0, %vm638_vm3  ;;  %v4943_v55 = vsel %vm685_vm13, 1.0, %v7996_v6  ;;  %v4946_v56 = vsel %vm684_vm12, 1.0, %v7996_v6 }
 0x11e   : > { %8087 = vst [vmem:[#allocation71_spill] sm:$0xff] %v4901_v30  ;;  %vm683_vm2 = vmand %vm580_vm4, %vm635_vm1  ;;  %v4949_v57 = vsel %vm686_vm15, 1.0, %v7996_v6 }
 0x11f   : > { %8088 = vst [vmem:[#allocation72_spill] sm:$0xff] %v4904_v54  ;;  %v3636_v40 = vpack.i.bf16 %v4949_v57, %v4943_v55  ;;  %v4954_v58 = vsel %vm683_vm2, 1.0, %v7996_v6  ;;  %vm8479_vm13 = vmmov %vm8465_vm11 }
 0x120   : > { %8089 = vst [vmem:[#allocation73_spill] sm:$0xff] %v4907_v46  ;;  %v3631_v41 = vpack.i.bf16 %v4946_v56, %v4954_v58  ;;  %v3369_v46 = vld [vmem:[%s7736_s3 + $0x1] ss:$4 sm:$0x7]  ;;  %vm8480_vm4 = vmmov %vm8465_vm11 }
 0x121   : > { %8090 = vst [vmem:[#allocation74_spill] sm:$0xff] %v4912_v13  ;;  %3627 = vrot.lane.b32.xlu0 %v3626_v61, %s3867_s30  ;;  %3622 = vrot.lane.b32.xlu2 %v3621_v52, %s3867_s30  ;;  %v4963_v61 = vld [vmem:[%s7736_s3 + $0x2] ss:$4 sm:$0x7]  ;;  %vm8481_vm1 = vmmov %vm8480_vm4 }
 0x122   : > { %3617 = vrot.lane.b32.xlu1 %v3616_v22, %s3867_s30  ;;  %8091 = vst [vmem:[#allocation75_spill] sm:$0xff] %v4943_v55  ;;  %v4966_v52 = vperm.slane %v4963_v61, 1  ;;  %v3367_v55 = vld [vmem:[%s7735_s2 + $0x2] ss:$4 sm:$0x7]  ;;  %vm8484_vm12 = vmmov %vm8481_vm1 }
 0x123   : > { %8092 = vst [vmem:[#allocation76_spill] sm:$0xff] %v4946_v56  ;;  %v5000_v34 = vperm.slane %v3367_v55, 2 }
 0x124   : > { %8093 = vst [vmem:[#allocation77_spill] sm:$0xff] %v4949_v57  ;;  %v1596_v22 = vmul.f32 %v4966_v52, %v4893_v15  ;;  %v4975_v57 = vld [vmem:[%s7736_s3 + $0x3] ss:$4 sm:$0x7]  ;;  %v1575_v44 = vmul.f32 %v4966_v52, %v4473_v35  ;;  %v1593_v8 = vmul.f32 %v4966_v52, %v4800_v50 }
 0x125   : > { %8094 = vst [vmem:[#allocation78_spill] sm:$0xff] %v4954_v58 }
 0x126   : > { %8095 = vst [vmem:[#allocation79_spill] sm:$0xff] %v4963_v61 }
 0x127   : > { %8096 = vst [vmem:[#allocation80_spill] sm:$0xff] %v4966_v52 }
 0x128   : > { %8097 = vst [vmem:[#allocation81_spill] sm:$0xff] %v4975_v57 }
 0x129   : > { %3637 = vrot.lane.b32.xlu2 %v3636_v40, %s3867_s30  ;;  %v4978_v40 = vperm.slane %v4975_v57, 1  ;;  %8102 = vst [vmem:[#allocation86_spill] sm:$0xff] %v5000_v34 }
 0x12a   : > { %3632 = vrot.lane.b32.xlu1 %v3631_v41, %s3867_s30  ;;  %v1578_v41 = vmul.f32 %v4966_v52, %v4563_v7 }
 0x12b   : > { %8098 = vst [vmem:[#allocation82_spill] sm:$0xff] %v4978_v40  ;;  %v4987_v9 = vadd.f32 %v4978_v40, %v1596_v22  ;;  %v4995_v58 = vadd.f32 %v4978_v40, %v1575_v44  ;;  %v5003_v5 = vadd.f32 %v4978_v40, %v1593_v8  ;;  %v5008_v22 = vld [vmem:[%s7735_s2 + $0x3] ss:$4 sm:$0x7]  ;;  %v957_v44 = vmul.f32 %v5000_v34, %v4147_v43 }
 0x12c   : > { %v4998_v54 = vadd.f32 %v4978_v40, %v1578_v41  ;;  %v1581_v8 = vmul.f32 %v4966_v52, %v4590_v49  ;;  %v972_v49 = vmul.f32 %v5000_v34, %v4341_v60  ;;  %v5141_v59 = vperm.slane %v5008_v22, 1 }
 0x12d   : > { %8099 = vst [vmem:[#allocation83_spill] sm:$0xff] %v4987_v9  ;;  %v1378_v9 = vld [vmem:[%s7736_s3] ss:$4 sm:$0x7] }
 0x12e   : > { %8100 = vst [vmem:[#allocation84_spill] sm:$0xff] %v4995_v58  ;;  %v5026_v37 = vperm.slane %v1378_v9, 2  ;;  %v5034_v56 = vadd.f32 %v4978_v40, %v1581_v8  ;;  %v960_v9 = vmul.f32 %v5000_v34, %v4220_v48  ;;  %v802_v8 = vmul.f32 %v4152_v45, %v4220_v48 }
 0x12f   : > { %8101 = vst [vmem:[#allocation85_spill] sm:$0xff] %v4998_v54  ;;  %v1584_v54 = vmul.f32 %v4966_v52, %v4708_v12  ;;  %v5081_v48 = vperm.slane %v4144_v42, 0  ;;  %v5126_v12 = vperm.slane %v4144_v42, 1 }
 0x130   : > { %8103 = vst [vmem:[#allocation87_spill] sm:$0xff] %v5003_v5  ;;  %v5024_v5 = vperm.slane %v5008_v22, 2  ;;  %v1394_v52 = vmul.f32 %v5026_v37, %v4147_v43 }
 0x131   : > { %8105 = vst [vmem:[#allocation89_spill] sm:$0xff] %v5026_v37  ;;  %v5041_v14 = vadd.f32 %v4978_v40, %v1584_v54  ;;  %v811_v54 = vmul.f32 %v4152_v45, %v4288_v23 }
 0x132   : > { %8104 = vst [vmem:[#allocation88_spill] sm:$0xff] %v5024_v5  ;;  %v1012_v19 = vadd.f32 %v5024_v5, %v957_v44 }
 0x133   : > { %8106 = vst [vmem:[#allocation90_spill] sm:$0xff] %v5034_v56  ;;  %v5049_v56 = vperm.slane %v3369_v46, 2 }
 0x134   : > { %8107 = vst [vmem:[#allocation91_spill] sm:$0xff] %v5041_v14  ;;  %v1015_v14 = vadd.f32 %v5024_v5, %v960_v9  ;;  %v866_v9 = vadd.f32 %v4161_v47, %v811_v54  ;;  %v808_v54 = vmul.f32 %v4152_v45, %v4236_v24 }
 0x135   : > { %8108 = vst [vmem:[#allocation92_spill] sm:$0xff] %v5049_v56  ;;  %v1449_v37 = vadd.f32 %v5049_v56, %v1394_v52  ;;  %v969_v52 = vmul.f32 %v5000_v34, %v4288_v23  ;;  %v5073_v56 = vperm.slane %v4131_v36, 0 }
 0x136   : > { %8113 = vst [vmem:[#allocation96_spill] sm:$0xff] %v5081_v48 }
 0x137   : > { %8112 = vst [vmem:[#allocation95_spill] sm:$0xff] %v5073_v56  ;;  %v5089_v23 = vadd.f32 %v5024_v5, %v969_v52 }
 0x142   : > { %v4982_v33 = vpop.permute.xlu0 %3522 }
 0x14b   : > { %v4970_v6 = vpop.permute.xlu2 %3532 }
 0x153   : > { %v5015_v58 = vpop.permute.xlu2 %3547 }
 0x15b   : > { %v5063_v46 = vpop.permute.xlu2 %3562 }
 0x162   : > { %v5017_v41 = vpop.permute.xlu0 %3537 }
 0x163   : > { %v5130_v50 = vpop.permute.xlu2 %3577 }
 0x164   : > { %v5028_v57 = vpop.permute.xlu1 %3527 }
 0x165   : > { %v7803_v61 = vunpack.i.l.bf16 %v5028_v57 }
 0x167   : > { %v1284_v28 = vmul.f32 %v7803_v61, %v1012_v19  ;;  %v857_v19 = vadd.f32 %v4161_v47, %v802_v8  ;;  %v963_v8 = vmul.f32 %v5000_v34, %v4239_v26 }
 0x169   : > { %v1332_v30 = vadd.f32 %v1284_v28, %v4168_v51  ;;  %v8111_v51 = vunpack.i.h.bf16 %v4970_v6 }
 0x16b   : > { %1705 = vrot.lane.b32.xlu2 %v1332_v30, %s3867_s30  ;;  %v5058_v40 = vpop.permute.xlu0 %3552  ;;  %v5061_v61 = vmul.f32 %v1449_v37, %v1332_v30  ;;  %v1287_v28 = vmul.f32 %v8111_v51, %v1015_v14  ;;  %v905_v37 = vmul.f32 %v4282_v18, %v857_v19  ;;  %v805_v30 = vmul.f32 %v4152_v45, %v4239_v26  ;;  %v8116_v14 = vld [vmem:[#allocation11_spill] sm:$0xff] }
 0x16c   : > { %8109 = vst [vmem:[#allocation93_spill] sm:$0xff] %v5058_v40  ;;  %v5065_v44 = vpop.permute.xlu1 %3542  ;;  %v5094_v18 = vmul.f32 %v4522_v32, %v866_v9  ;;  %v5096_v19 = vperm.slane %v3367_v55, 0  ;;  %v966_v26 = vmul.f32 %v5000_v34, %v4236_v24  ;;  %v797_v43 = vmul.f32 %v5073_v56, %v8116_v14 }
 0x16d   : > { %8110 = vst [vmem:[#allocation94_spill] sm:$0xff] %v5061_v61  ;;  %v5084_v51 = vadd.f32 %v1287_v28, %v905_v37  ;;  %v817_v61 = vmul.f32 %v4152_v45, %v4317_v2  ;;  %v1018_v28 = vadd.f32 %v5024_v5, %v963_v8  ;;  %v860_v52 = vadd.f32 %v4161_v47, %v805_v30 }
 0x16e   : > { %8115 = vst [vmem:[#allocation98_spill] sm:$0xff] %v5096_v19  ;;  %v5111_v32 = vperm.slane %v5008_v22, 0  ;;  %v814_v9 = vmul.f32 %v4152_v45, %v4341_v60  ;;  %v5116_v8 = vperm.slane %v4131_v36, 1  ;;  %v5118_v24 = vperm.slane %v3367_v55, 1 }
 0x16f   : > { %8114 = vst [vmem:[#allocation97_spill] sm:$0xff] %v5084_v51  ;;  %v996_v30 = vmul.f32 %v5000_v34, %v4736_v39  ;;  %v863_v40 = vadd.f32 %v4161_v47, %v808_v54  ;;  %v975_v36 = vmul.f32 %v5000_v34, %v4317_v2  ;;  %v872_v55 = vadd.f32 %v4161_v47, %v817_v61 }
 0x170   : > { %8117 = vst [vmem:[#allocation99_spill] sm:$0xff] %v5111_v32  ;;  %v908_v54 = vmul.f32 %v4411_v29, %v860_v52  ;;  %v852_v42 = vadd.f32 %v5081_v48, %v797_v43  ;;  %v869_v60 = vadd.f32 %v4161_v47, %v814_v9  ;;  %v798_v11 = vmul.f32 %v5116_v8, %v8116_v14 }
 0x171   : > { %8118 = vst [vmem:[#allocation100_spill] sm:$0xff] %v5116_v8  ;;  %v956_v61 = vmul.f32 %v5118_v24, %v8116_v14  ;;  %v5150_v2 = vmul.f32 %v4152_v45, %v4736_v39  ;;  %v5156_v43 = vadd.f32 %v5024_v5, %v996_v30  ;;  %v911_v22 = vmul.f32 %v4394_v62, %v863_v40  ;;  %v8125_v30 = vld [vmem:[#allocation12_spill] sm:$0xff] }
 0x172   : > { %8119 = vst [vmem:[#allocation101_spill] sm:$0xff] %v5118_v24  ;;  %v5160_v52 = vadd.f32 %v5024_v5, %v972_v49  ;;  %v1030_v9 = vadd.f32 %v5024_v5, %v975_v36  ;;  %v900_v62 = vmul.f32 %v8125_v30, %v852_v42  ;;  %v993_v49 = vmul.f32 %v5000_v34, %v4656_v17 }
 0x173   : > { %1711 = vrot.lane.b32.xlu2 %v5084_v51, %s3867_s30  ;;  %v5103_v37 = vpop.permute.xlu0 %3567  ;;  %v8120_v51 = vunpack.i.l.bf16 %v5065_v44  ;;  %8121 = vst [vmem:[#allocation102_spill] sm:$0xff] %v5150_v2  ;;  %v5180_v36 = vmul.f32 %v4536_v3, %v869_v60  ;;  %v8127_v42 = vunpack.i.h.bf16 %v5015_v58  ;;  %v5199_v60 = vmul.f32 %v5096_v19, %v4251_v4  ;;  %v3374_v3 = vld [vmem:[%s7737_s4 + $0x3] ss:$4 sm:$0x3] }
 0x174   : > { %v5108_v21 = vpop.permute.xlu1 %3557  ;;  %8123 = vst [vmem:[#allocation104_spill] sm:$0xff] %v5156_v43  ;;  %v8129_v39 = vunpack.i.h.bf16 %v4982_v33  ;;  %v5224_v34 = vadd.f32 %v5024_v5, %v993_v49  ;;  %v5226_v43 = vpop.permute.xlu2 %3592  ;;  %v958_v2 = vmul.f32 %v5096_v19, %v4259_v20 }
 0x175   : > { %v1290_v13 = vmul.f32 %v8120_v51, %v1018_v28  ;;  %v955_v51 = vmul.f32 %v5096_v19, %v8116_v14  ;;  %v1021_v28 = vadd.f32 %v5024_v5, %v966_v26  ;;  %v920_v14 = vmul.f32 %v4629_v27, %v872_v55  ;;  %v3373_v27 = vld [vmem:[%s7737_s4 + $0x2] ss:$4 sm:$0x3]  ;;  %8131 = vst [vmem:[#allocation107_spill] sm:$0xff] %v5226_v43 }
 0x176   : > { %v3524_v26 = vunpack.i.l.bf16 %v4982_v33  ;;  %v835_v55 = vmul.f32 %v4152_v45, %v4656_v17  ;;  %v800_v45 = vmul.f32 %v5073_v56, %v4259_v20  ;;  %v833_v20 = vmul.f32 %v5073_v56, %v4679_v1 }
 0x177   : > { %v5153_v29 = vadd.f32 %v1290_v13, %v908_v54  ;;  %v1010_v38 = vadd.f32 %v5111_v32, %v955_v51  ;;  %v5185_v51 = vadd.f32 %v5126_v12, %v798_v11  ;;  %v5188_v54 = vadd.f32 %v5141_v59, %v956_v61 }
 0x178   : > { %v1293_v30 = vmul.f32 %v8127_v42, %v1021_v28  ;;  %v5206_v11 = vmul.f32 %v5116_v8, %v4345_v16  ;;  %v5210_v28 = vmul.f32 %v5118_v24, %v4345_v16  ;;  %v815_v61 = vmul.f32 %v5073_v56, %v4345_v16 }
 0x179   : > { %8122 = vst [vmem:[#allocation103_spill] sm:$0xff] %v5153_v29  ;;  %v5214_v42 = vperm.slane %v3373_v27, 1  ;;  %v1202_v17 = vsel %vm509_vm5, %v3524_v26, %v8129_v39  ;;  %v5231_v24 = vadd.f32 %v4161_v47, %v835_v55  ;;  %v5233_v8 = vperm.slane %v3374_v3, 1 }
 0x17a   : > { %8126 = vst [vmem:[#allocation12_spill] sm:$0xff] %v5185_v51  ;;  %v1282_v5 = vmul.f32 %v1202_v17, %v1010_v38  ;;  %v870_v55 = vadd.f32 %v5081_v48, %v815_v61  ;;  %v991_v17 = vmul.f32 %v5096_v19, %v4679_v1  ;;  %v1013_v26 = vadd.f32 %v5111_v32, %v958_v2 }
 0x17b   : > { %1717 = vrot.lane.b32.xlu2 %v5153_v29, %s3867_s30  ;;  %v5169_v13 = vpop.permute.xlu0 %3582  ;;  %v5195_v29 = vmul.f32 %v5073_v56, %v4251_v4  ;;  %8128 = vst [vmem:[#allocation106_spill] sm:$0xff] %v5214_v42  ;;  %v2102_v39 = vmul.f32 %v5214_v42, %v4363_v25  ;;  %v2104_v49 = vmul.f32 %v5214_v42, %v4345_v16 }
 0x17c   : > { %8124 = vst [vmem:[#allocation105_spill] sm:$0xff] %v5169_v13  ;;  %v5177_v40 = vpop.permute.xlu1 %3572  ;;  %v5275_v51 = vadd.f32 %v1282_v5, %v900_v62  ;;  %v5278_v2 = vadd.f32 %v5081_v48, %v833_v20  ;;  %v3569_v20 = vunpack.i.l.bf16 %v5103_v37  ;;  %v973_v62 = vmul.f32 %v5096_v19, %v4345_v16 }
 0x17d   : > { %v8130_v13 = vunpack.i.l.bf16 %v5177_v40  ;;  %8132 = vst [vmem:[#allocation108_spill] sm:$0xff] %v5233_v8  ;;  %v5248_v47 = vadd.f32 %v5233_v8, %v2102_v39  ;;  %v5258_v38 = vadd.f32 %v5233_v8, %v2104_v49  ;;  %v2106_v49 = vmul.f32 %v5214_v42, %v4496_v53 }
 0x17e   : > { %8140 = vst [vmem:[#allocation115_spill] sm:$0xff] %v5275_v51 }
 0x17f   : > { %v1302_v4 = vmul.f32 %v8130_v13, %v1030_v9  ;;  %v5240_v13 = vadd.f32 %v1293_v30, %v911_v22  ;;  %8135 = vst [vmem:[#allocation111_spill] sm:$0xff] %v5248_v47  ;;  %v3530_v22 = vunpack.i.h.bf16 %v5028_v57  ;;  %v7863_v47 = vunpack.i.l.bf16 %v5226_v43 }
 0x180   : > { %8136 = vst [vmem:[#allocation112_spill] sm:$0xff] %v5258_v38  ;;  %v7864_v38 = vunpack.i.l.bf16 %v4970_v6 }
 0x181   : > { %v5238_v9 = vadd.f32 %v1302_v4, %v920_v14  ;;  %8134 = vst [vmem:[#allocation110_spill] sm:$0xff] %v5240_v13  ;;  %v855_v14 = vadd.f32 %v5081_v48, %v800_v45 }
 0x182   : > { %v1204_v5 = vsel %vm509_vm5, %v3530_v22, %v7864_v38  ;;  %v1046_v38 = vadd.f32 %v5111_v32, %v991_v17  ;;  %v8149_v17 = vunpack.i.h.bf16 %v5063_v46 }
 0x183   : > { %8133 = vst [vmem:[#allocation109_spill] sm:$0xff] %v5238_v9  ;;  %1741 = vrot.lane.b32.xlu0 %v5238_v9, %s3867_s30  ;;  %1723 = vrot.lane.b32.xlu2 %v5240_v13, %s3867_s30  ;;  %v3598_v4 = vpop.permute.xlu0 %3597  ;;  %v8138_v9 = vunpack.i.l.bf16 %v5108_v21  ;;  %v903_v22 = vmul.f32 %v4309_v63, %v855_v14 }
 0x184   : > { %v5261_v30 = vpop.permute.xlu1 %3587  ;;  %v3600_v61 = vunpack.i.h.bf16 %v3598_v4  ;;  %v3599_v39 = vunpack.i.l.bf16 %v3598_v4 }
 0x185   : > { %8137 = vst [vmem:[#allocation113_spill] sm:$0xff] %v5261_v30  ;;  %v1296_v45 = vmul.f32 %v8138_v9, %v5089_v23  ;;  %v3590_v13 = vunpack.i.h.bf16 %v5261_v30  ;;  %v5286_v9 = vperm.slane %v3373_v27, 0  ;;  %v5289_v30 = vadd.f32 %v5233_v8, %v2106_v49 }
 0x186   : > { %v5273_v25 = vsel %vm509_vm5, %v3599_v39, %v3600_v61  ;;  %v2108_v39 = vmul.f32 %v5214_v42, %v4473_v35  ;;  %v2110_v27 = vmul.f32 %v5214_v42, %v4563_v7 }
 0x187   : > { %8139 = vst [vmem:[#allocation114_spill] sm:$0xff] %v5273_v25  ;;  %v5284_v23 = vsel %vm509_vm5, %v3590_v13, %v7863_v47  ;;  %v5299_v4 = vadd.f32 %v1296_v45, %v5094_v18  ;;  %v5301_v13 = vperm.slane %v3374_v3, 0  ;;  %v2103_v49 = vmul.f32 %v5286_v9, %v4345_v16  ;;  %v5307_v47 = vpop.permute.xlu2 %3607 }
 0x188   : > { %8141 = vst [vmem:[#allocation116_spill] sm:$0xff] %v5284_v23  ;;  %v5314_v18 = vadd.f32 %v5233_v8, %v2108_v39  ;;  %v803_v45 = vmul.f32 %v5073_v56, %v4255_v0  ;;  %v5325_v63 = vadd.f32 %v5233_v8, %v2110_v27  ;;  %v1299_v39 = vmul.f32 %v8149_v17, %v5160_v52 }
 0x189   : > { %8142 = vst [vmem:[#allocation117_spill] sm:$0xff] %v5286_v9  ;;  %v5328_v14 = vadd.f32 %v5301_v13, %v2103_v49  ;;  %v961_v25 = vmul.f32 %v5096_v19, %v4255_v0  ;;  %v8150_v27 = vunpack.i.h.bf16 %v5103_v37  ;;  %v8152_v23 = vunpack.i.l.bf16 %v5307_v47 }
 0x18a   : > { %8143 = vst [vmem:[#allocation118_spill] sm:$0xff] %v5289_v30  ;;  %v1285_v30 = vmul.f32 %v1204_v5, %v1013_v26  ;;  %v1028_v5 = vadd.f32 %v5111_v32, %v973_v62  ;;  %v918_v52 = vmul.f32 %v4501_v10, %v870_v55  ;;  %v976_v16 = vmul.f32 %v5096_v19, %v4496_v53 }
 0x18b   : > { %8144 = vst [vmem:[#allocation119_spill] sm:$0xff] %v5299_v4  ;;  %1729 = vrot.lane.b32.xlu2 %v5299_v4, %s3867_s30  ;;  %1701 = vrot.lane.b32.xlu0 %v5275_v51, %s3867_s30  ;;  %v5320_v3 = vpop.permute.xlu0 %3612  ;;  %v2116_v51 = vmul.f32 %v5214_v42, %v4679_v1  ;;  %v1214_v49 = vsel %vm509_vm5, %v3569_v20, %v8150_v27  ;;  %v3539_v4 = vunpack.i.l.bf16 %v5017_v41 }
 0x18c   : > { %8145 = vst [vmem:[#allocation120_spill] sm:$0xff] %v5301_v13  ;;  %v3614_v26 = vunpack.i.l.bf16 %v5320_v3  ;;  %v1300_v62 = vmul.f32 %v1214_v49, %v1028_v5  ;;  %v5370_v43 = vadd.f32 %v1299_v39, %v5180_v36  ;;  %v2107_v49 = vmul.f32 %v5286_v9, %v4473_v35 }
 0x18d   : > { %8146 = vst [vmem:[#allocation121_spill] sm:$0xff] %v5314_v18  ;;  %v5333_v18 = vpop.permute.xlu1 %3602  ;;  %v5349_v17 = vadd.f32 %v5233_v8, %v2116_v51  ;;  %v818_v51 = vmul.f32 %v5073_v56, %v4496_v53  ;;  %v2122_v5 = vmul.f32 %v5214_v42, %v4893_v15  ;;  %v7873_v36 = vunpack.i.l.bf16 %v5130_v50 }
 0x18e   : > { %8147 = vst [vmem:[#allocation122_spill] sm:$0xff] %v5325_v63  ;;  %v7871_v63 = vunpack.i.l.bf16 %v5333_v18  ;;  %v5379_v55 = vadd.f32 %v1300_v62, %v918_v52  ;;  %v858_v39 = vadd.f32 %v5081_v48, %v803_v45  ;;  %v1016_v62 = vadd.f32 %v5111_v32, %v961_v25 }
 0x18f   : > { %8148 = vst [vmem:[#allocation123_spill] sm:$0xff] %v5328_v14  ;;  %v3605_v14 = vunpack.i.h.bf16 %v5333_v18  ;;  %v938_v25 = vmul.f32 %v4915_v31, %v5231_v24  ;;  %v8163_v24 = vunpack.i.l.bf16 %v5028_v57  ;;  %v8171_v57 = vunpack.i.h.bf16 %v5103_v37 }
 0x190   : > { %8151 = vst [vmem:[#allocation124_spill] sm:$0xff] %v5349_v17  ;;  %v5361_v27 = vsel %vm509_vm5, %v3600_v61, %v7871_v63  ;;  %v3575_v17 = vunpack.i.h.bf16 %v5177_v40  ;;  %v2105_v61 = vmul.f32 %v5286_v9, %v4496_v53 }
 0x191   : > { %v5356_v20 = vsel %vm509_vm5, %v3605_v14, %v8152_v23  ;;  %8153 = vst [vmem:[#allocation125_spill] sm:$0xff] %v5370_v43  ;;  %v5372_v23 = vadd.f32 %v1285_v30, %v903_v22  ;;  %v8155_v14 = vunpack.i.h.bf16 %v5320_v3  ;;  %v8157_v30 = vunpack.i.h.bf16 %v5017_v41 }
 0x192   : > { %8156 = vst [vmem:[#allocation127_spill] sm:$0xff] %v5379_v55  ;;  %v5395_v52 = vadd.f32 %v5301_v13, %v2105_v61  ;;  %v1216_v63 = vsel %vm509_vm5, %v3575_v17, %v7873_v36  ;;  %v8162_v36 = vld [vmem:[#allocation20_spill] sm:$0xff] }
 0x193   : > { %8154 = vst [vmem:[#allocation126_spill] sm:$0xff] %v5372_v23  ;;  %v1226_v10 = vsel %vm509_vm5, %v3614_v26, %v8155_v14  ;;  %v1206_v22 = vsel %vm509_vm5, %v3539_v4, %v8157_v30  ;;  %1735 = vrot.lane.b32.xlu2 %v5370_v43, %s3867_s30  ;;  %1707 = vrot.lane.b32.xlu0 %v5372_v23, %s3867_s30 }
 0x194   : > { %8158 = vst [vmem:[#allocation128_spill] sm:$0xff] %v5395_v52  ;;  %v871_v14 = vadd.f32 %v5126_v12, %v5206_v11  ;;  %v873_v4 = vadd.f32 %v5081_v48, %v818_v51  ;;  %v5404_v30 = vadd.f32 %v5301_v13, %v2107_v49  ;;  %v1318_v61 = vmul.f32 %v1226_v10, %v1046_v38  ;;  %v8161_v38 = vld [vmem:[#allocation62_spill] sm:$0xff] }
 0x195   : > { %v5397_v26 = vpop.permute.xlu1 %3617  ;;  %v1029_v52 = vadd.f32 %v5141_v59, %v5210_v28  ;;  %v1288_v23 = vmul.f32 %v1206_v22, %v1016_v62  ;;  %v1031_v11 = vadd.f32 %v5111_v32, %v976_v16  ;;  %v5416_v51 = vadd.f32 %v5233_v8, %v2122_v5  ;;  %v8165_v5 = vld [vmem:[#allocation46_spill] sm:$0xff] }
 0x196   : > { %8159 = vst [vmem:[#allocation129_spill] sm:$0xff] %v5404_v30  ;;  %v7875_v45 = vunpack.i.l.bf16 %v5397_v26  ;;  %v3545_v49 = vunpack.i.h.bf16 %v5065_v44  ;;  %v936_v10 = vmul.f32 %v8161_v38, %v5278_v2  ;;  %v906_v28 = vmul.f32 %v8162_v36, %v858_v39  ;;  %v8169_v38 = vld [vmem:[#allocation60_spill] sm:$0xff] }
 0x197   : > { %8160 = vst [vmem:[#allocation130_spill] sm:$0xff] %v5416_v51  ;;  %v7876_v30 = vunpack.i.l.bf16 %v5015_v58  ;;  %v8164_v16 = vunpack.i.h.bf16 %v4982_v33  ;;  %v921_v22 = vmul.f32 %v8165_v5, %v873_v4  ;;  %v1303_v62 = vmul.f32 %v1216_v63, %v1031_v11  ;;  %v8179_v5 = vld [vmem:[#allocation12_spill] sm:$0xff] }
 0x198   : > { %v1320_v17 = vmul.f32 %v7875_v45, %v5224_v34  ;;  %v5434_v43 = vadd.f32 %v1318_v61, %v936_v10  ;;  %v8168_v34 = vld [vmem:[#allocation61_spill] sm:$0xff]  ;;  %v2120_v36 = vmul.f32 %v5214_v42, %v8169_v38  ;;  %v8170_v39 = vunpack.i.l.bf16 %v5177_v40 }
 0x199   : > { %v1203_v31 = vsel %vm509_vm5, %v8164_v16, %v8163_v24  ;;  %v2118_v2 = vmul.f32 %v5214_v42, %v8168_v34  ;;  %v5445_v24 = vadd.f32 %v1288_v23, %v906_v28  ;;  %v861_v63 = vadd.f32 %v5081_v48, %v5195_v29  ;;  %v8178_v10 = vld [vmem:[#allocation37_spill] sm:$0xff] }
 0x19a   : > { %v5432_v51 = vadd.f32 %v1320_v17, %v938_v25  ;;  %8167 = vst [vmem:[#allocation20_spill] sm:$0xff] %v5434_v43  ;;  %v1215_v33 = vsel %vm509_vm5, %v8171_v57, %v8170_v39  ;;  %v5449_v4 = vadd.f32 %v1303_v62, %v921_v22  ;;  %v1208_v61 = vsel %vm509_vm5, %v3545_v49, %v7876_v30  ;;  %v8176_v25 = vld [vmem:[#allocation42_spill] sm:$0xff]  ;;  %v8177_v49 = vld [vmem:[#allocation51_spill] sm:$0xff]  ;;  %v8180_v22 = vld [vmem:[#allocation13_spill] sm:$0xff] }
 0x19b   : > { %8172 = vst [vmem:[#allocation46_spill] sm:$0xff] %v5445_v24  ;;  %1773 = vrot.lane.b32.xlu2 %v5434_v43, %s3867_s30  ;;  %v5459_v37 = vadd.f32 %v5233_v8, %v2118_v2  ;;  %v5462_v40 = vadd.f32 %v5233_v8, %v2120_v36  ;;  %1713 = vrot.lane.b32.xlu0 %v5445_v24, %s3867_s30  ;;  %v5478_v36 = vpop.permute.xlu2 %3622  ;;  %v8206_v43 = vunpack.i.l.bf16 %v5065_v44 }
 0x19c   : > { %8166 = vst [vmem:[#allocation62_spill] sm:$0xff] %v5432_v51  ;;  %1777 = vrot.lane.b32.xlu1 %v5432_v51, %s3867_s30  ;;  %v1283_v29 = vmul.f32 %v1203_v31, %v5188_v54  ;;  %v1019_v23 = vadd.f32 %v5111_v32, %v5199_v60  ;;  %v2112_v11 = vmul.f32 %v5214_v42, %v8176_v25  ;;  %v8181_v31 = vld [vmem:[#allocation19_spill] sm:$0xff]  ;;  %v8182_v60 = vld [vmem:[#allocation100_spill] sm:$0xff] }
 0x19d   : > { %8173 = vst [vmem:[#allocation131_spill] sm:$0xff] %v5449_v4  ;;  %v2114_v17 = vmul.f32 %v5214_v42, %v8177_v49  ;;  %v919_v28 = vmul.f32 %v8178_v10, %v871_v14  ;;  %v1301_v16 = vmul.f32 %v1215_v33, %v1029_v52  ;;  %v901_v62 = vmul.f32 %v8180_v22, %v8179_v5  ;;  %v8185_v14 = vld [vmem:[#allocation93_spill] sm:$0xff]  ;;  %v8186_v10 = vld [vmem:[#allocation31_spill] sm:$0xff] }
 0x19e   : > { %8174 = vst [vmem:[#allocation132_spill] sm:$0xff] %v5459_v37  ;;  %v2111_v2 = vmul.f32 %v5286_v9, %v8176_v25  ;;  %v1291_v54 = vmul.f32 %v1208_v61, %v1019_v23  ;;  %v801_v39 = vmul.f32 %v8182_v60, %v8181_v31  ;;  %v5483_v57 = vadd.f32 %v5233_v8, %v2112_v11  ;;  %v8187_v22 = vld [vmem:[#allocation101_spill] sm:$0xff] }
 0x19f   : > { %8175 = vst [vmem:[#allocation133_spill] sm:$0xff] %v5462_v40  ;;  %v5486_v45 = vadd.f32 %v5233_v8, %v2114_v17  ;;  %v3554_v33 = vunpack.i.l.bf16 %v8185_v14  ;;  %v909_v5 = vmul.f32 %v8186_v10, %v861_v63  ;;  %v959_v30 = vmul.f32 %v8187_v22, %v8181_v31  ;;  %v8188_v61 = vld [vmem:[#allocation29_spill] sm:$0xff]  ;;  %v5522_v8 = vpop.permute.xlu1 %3632 }
 0x1a0   : > { %8183 = vst [vmem:[#allocation37_spill] sm:$0xff] %v5483_v57  ;;  %v5493_v40 = vadd.f32 %v1283_v29, %v901_v62  ;;  %v809_v23 = vmul.f32 %v5073_v56, %v8188_v61  ;;  %v967_v11 = vmul.f32 %v5096_v19, %v8188_v61  ;;  %v5500_v17 = vadd.f32 %v5301_v13, %v2111_v2  ;;  %v8194_v2 = vld [vmem:[#allocation102_spill] sm:$0xff] }
 0x1a1   : > { %8184 = vst [vmem:[#allocation12_spill] sm:$0xff] %v5486_v45  ;;  %v5503_v45 = vadd.f32 %v1301_v16, %v919_v28  ;;  %v2113_v63 = vmul.f32 %v5286_v9, %v8177_v49  ;;  %v2109_v29 = vmul.f32 %v5286_v9, %v4563_v7  ;;  %v8191_v62 = vunpack.i.h.bf16 %v4970_v6  ;;  %v8201_v9 = vld [vmem:[#allocation74_spill] sm:$0xff] }
 0x1a2   : > { %8189 = vst [vmem:[#allocation13_spill] sm:$0xff] %v5500_v17  ;;  %v8192_v10 = vunpack.i.l.bf16 %v4970_v6  ;;  %v5514_v37 = vadd.f32 %v1291_v54, %v909_v5  ;;  %v8195_v17 = vld [vmem:[#allocation10_spill] sm:$0xff]  ;;  %v856_v28 = vadd.f32 %v5126_v12, %v801_v39  ;;  %v8196_v16 = vunpack.i.h.bf16 %v8185_v14 }
 0x1a3   : > { %8190 = vst [vmem:[#allocation100_spill] sm:$0xff] %v5503_v45  ;;  %v893_v51 = vadd.f32 %v8195_v17, %v8194_v2  ;;  %1739 = vrot.lane.b32.xlu2 %v5503_v45, %s3867_s30  ;;  %v1014_v6 = vadd.f32 %v5141_v59, %v959_v30  ;;  %v5530_v54 = vadd.f32 %v5301_v13, %v2113_v63 }
 0x1a4   : > { %v1205_v57 = vsel %vm509_vm5, %v8192_v10, %v8191_v62  ;;  %8193 = vst [vmem:[#allocation93_spill] sm:$0xff] %v5514_v37  ;;  %v1210_v52 = vsel %vm509_vm5, %v3554_v33, %v8196_v16  ;;  %1703 = vrot.lane.b32.xlu1 %v5493_v40, %s3867_s30  ;;  %1719 = vrot.lane.b32.xlu0 %v5514_v37, %s3867_s30  ;;  %v8199_v62 = vld [vmem:[#allocation104_spill] sm:$0xff]  ;;  %v8200_v10 = vunpack.i.h.bf16 %v5478_v36  ;;  %v5542_v16 = vpop.permute.xlu0 %3627 }
 0x1a5   : > { %8197 = vst [vmem:[#allocation31_spill] sm:$0xff] %v5530_v54  ;;  %v864_v39 = vadd.f32 %v5081_v48, %v809_v23  ;;  %v1022_v33 = vadd.f32 %v5111_v32, %v967_v11  ;;  %v5537_v5 = vadd.f32 %v5301_v13, %v2109_v29  ;;  %v1286_v30 = vmul.f32 %v1205_v57, %v1014_v6  ;;  %v8204_v37 = vld [vmem:[#allocation28_spill] sm:$0xff] }
 0x1a6   : > { %v1323_v2 = vmul.f32 %v8200_v10, %v8199_v62  ;;  %v804_v63 = vmul.f32 %v8182_v60, %v4255_v0  ;;  %v941_v42 = vmul.f32 %v8201_v9, %v893_v51  ;;  %v962_v11 = vmul.f32 %v8187_v22, %v4255_v0  ;;  %v8203_v10 = vld [vmem:[#allocation32_spill] sm:$0xff] }
 0x1a7   : > { %8198 = vst [vmem:[#allocation101_spill] sm:$0xff] %v5537_v5  ;;  %v1294_v23 = vmul.f32 %v1210_v52, %v1022_v33  ;;  %v3560_v29 = vunpack.i.h.bf16 %v5108_v21  ;;  %v8202_v5 = vld [vmem:[#allocation23_spill] sm:$0xff]  ;;  %v840_v62 = vmul.f32 %v8182_v60, %v8169_v38  ;;  %v998_v57 = vmul.f32 %v8187_v22, %v8169_v38 }
 0x1a8   : > { %v904_v13 = vmul.f32 %v8202_v5, %v856_v28  ;;  %v912_v54 = vmul.f32 %v8203_v10, %v864_v39  ;;  %v812_v9 = vmul.f32 %v5073_v56, %v8204_v37  ;;  %v970_v51 = vmul.f32 %v5096_v19, %v8204_v37 }
 0x1a9   : > { %v7891_v52 = vunpack.i.l.bf16 %v5063_v46  ;;  %v5563_v33 = vadd.f32 %v1323_v2, %v941_v42  ;;  %v859_v5 = vadd.f32 %v5126_v12, %v804_v63  ;;  %v8207_v6 = vunpack.i.h.bf16 %v5017_v41  ;;  %v8212_v63 = vld [vmem:[#allocation86_spill] sm:$0xff] }
 0x1aa   : > { %v5565_v28 = vadd.f32 %v1286_v30, %v904_v13  ;;  %v8208_v10 = vunpack.i.l.bf16 %v5522_v8  ;;  %v8209_v24 = vunpack.i.h.bf16 %v5542_v16  ;;  %v5578_v45 = vadd.f32 %v1294_v23, %v912_v54  ;;  %v8211_v30 = vld [vmem:[#allocation34_spill] sm:$0xff] }
 0x1ab   : > { %v1207_v39 = vsel %vm509_vm5, %v8207_v6, %v8206_v43  ;;  %v1017_v42 = vadd.f32 %v5141_v59, %v962_v11  ;;  %v1212_v13 = vsel %vm509_vm5, %v3560_v29, %v7891_v52  ;;  %1783 = vrot.lane.b32.xlu2 %v5563_v33, %s3867_s30  ;;  %v895_v41 = vadd.f32 %v5126_v12, %v840_v62  ;;  %v8213_v29 = vld [vmem:[#allocation9_spill] sm:$0xff]  ;;  %v8215_v52 = vld [vmem:[#allocation22_spill] sm:$0xff] }
 0x1ac   : > { %8205 = vst [vmem:[#allocation102_spill] sm:$0xff] %v5565_v28  ;;  %v1231_v31 = vsel %vm509_vm5, %v8209_v24, %v8208_v10  ;;  %1709 = vrot.lane.b32.xlu1 %v5565_v28, %s3867_s30  ;;  %v1053_v44 = vadd.f32 %v5141_v59, %v998_v57  ;;  %1725 = vrot.lane.b32.xlu0 %v5578_v45, %s3867_s30  ;;  %v8214_v10 = vld [vmem:[#allocation71_spill] sm:$0xff]  ;;  %v8216_v28 = vld [vmem:[#allocation17_spill] sm:$0xff] }
 0x1ad   : > { %8210 = vst [vmem:[#allocation10_spill] sm:$0xff] %v5578_v45  ;;  %v867_v43 = vadd.f32 %v5081_v48, %v812_v9  ;;  %v1025_v24 = vadd.f32 %v5111_v32, %v970_v51  ;;  %v1289_v2 = vmul.f32 %v1207_v39, %v1017_v42  ;;  %v981_v23 = vmul.f32 %v8212_v63, %v8211_v30  ;;  %v8217_v51 = vld [vmem:[#allocation38_spill] sm:$0xff] }
 0x1ae   : > { %v1325_v54 = vmul.f32 %v1231_v31, %v1053_v44  ;;  %v823_v6 = vmul.f32 %v8213_v29, %v8211_v30  ;;  %v943_v62 = vmul.f32 %v8214_v10, %v895_v41  ;;  %v907_v57 = vmul.f32 %v8215_v52, %v859_v5  ;;  %v8222_v30 = vld [vmem:[#allocation88_spill] sm:$0xff] }
 0x1af   : > { %v1297_v11 = vmul.f32 %v1212_v13, %v1025_v24  ;;  %v807_v45 = vmul.f32 %v8182_v60, %v8216_v28  ;;  %v965_v9 = vmul.f32 %v8187_v22, %v8216_v28  ;;  %v915_v31 = vmul.f32 %v8217_v51, %v867_v43  ;;  %v8218_v13 = vld [vmem:[#allocation113_spill] sm:$0xff] }
 0x1b0   : > { %v834_v39 = vmul.f32 %v8182_v60, %v4679_v1  ;;  %v992_v42 = vmul.f32 %v8187_v22, %v4679_v1  ;;  %v5610_v24 = vadd.f32 %v1325_v54, %v943_v62  ;;  %v5612_v41 = vadd.f32 %v1289_v2, %v907_v57 }
 0x1b1   : > { %v8220_v52 = vunpack.i.h.bf16 %v5015_v58  ;;  %v8221_v5 = vunpack.i.l.bf16 %v5015_v58  ;;  %v1036_v43 = vadd.f32 %v8222_v30, %v981_v23  ;;  %v5620_v51 = vadd.f32 %v1297_v11, %v915_v31  ;;  %v8227_v31 = vld [vmem:[#allocation58_spill] sm:$0xff] }
 0x1b2   : > { %8219 = vst [vmem:[#allocation104_spill] sm:$0xff] %v5610_v24  ;;  %v878_v28 = vadd.f32 %v8195_v17, %v823_v6  ;;  %v8224_v1 = vunpack.i.l.bf16 %v5397_v26  ;;  %v8225_v44 = vunpack.i.h.bf16 %v5320_v3  ;;  %v862_v58 = vadd.f32 %v5126_v12, %v807_v45  ;;  %v5640_v6 = vpop.permute.xlu2 %3637 }
 0x1b3   : > { %v1209_v10 = vsel %vm509_vm5, %v8221_v5, %v8220_v52  ;;  %8223 = vst [vmem:[#allocation74_spill] sm:$0xff] %v5620_v51  ;;  %1787 = vrot.lane.b32.xlu2 %v5610_v24, %s3867_s30  ;;  %v1020_v2 = vadd.f32 %v5141_v59, %v965_v9  ;;  %v889_v23 = vadd.f32 %v5126_v12, %v834_v39  ;;  %v8226_v3 = vunpack.i.l.bf16 %v8218_v13 }
 0x1b4   : > { %v1227_v54 = vsel %vm509_vm5, %v8225_v44, %v8224_v1  ;;  %1715 = vrot.lane.b32.xlu1 %v5612_v41, %s3867_s30  ;;  %1731 = vrot.lane.b32.xlu0 %v5620_v51, %s3867_s30  ;;  %v1047_v11 = vadd.f32 %v5141_v59, %v992_v42  ;;  %v842_v57 = vmul.f32 %v5073_v56, %v4893_v15  ;;  %v3635_v45 = vunpack.i.h.bf16 %v5522_v8  ;;  %v8228_v42 = vld [vmem:[#allocation30_spill] sm:$0xff] }
 0x1b5   : > { %v1308_v1 = vmul.f32 %v8226_v3, %v1036_v43  ;;  %v1292_v62 = vmul.f32 %v1209_v10, %v1020_v2  ;;  %v926_v9 = vmul.f32 %v8227_v31, %v878_v28  ;;  %v1000_v52 = vmul.f32 %v5096_v19, %v4893_v15  ;;  %v8229_v3 = vld [vmem:[#allocation64_spill] sm:$0xff] }
 0x1b6   : > { %v1319_v44 = vmul.f32 %v1227_v54, %v1047_v11  ;;  %v3620_v39 = vunpack.i.h.bf16 %v5397_v26  ;;  %v910_v5 = vmul.f32 %v8228_v42, %v862_v58  ;;  %v810_v43 = vmul.f32 %v8182_v60, %v8188_v61 }
 0x1b7   : > { %v968_v10 = vmul.f32 %v8187_v22, %v8188_v61  ;;  %v937_v51 = vmul.f32 %v8229_v3, %v889_v23  ;;  %v836_v28 = vmul.f32 %v5073_v56, %v8168_v34  ;;  %v994_v54 = vmul.f32 %v5096_v19, %v8168_v34 }
 0x1b8   : > { %v5661_v11 = vadd.f32 %v1308_v1, %v926_v9  ;;  %v5663_v58 = vadd.f32 %v1292_v62, %v910_v5  ;;  %v897_v31 = vadd.f32 %v5081_v48, %v842_v57  ;;  %v8231_v42 = vunpack.i.l.bf16 %v5108_v21  ;;  %v8236_v57 = vld [vmem:[#allocation79_spill] sm:$0xff] }
 0x1b9   : > { %v8232_v2 = vunpack.i.h.bf16 %v8185_v14  ;;  %v8233_v3 = vunpack.i.l.bf16 %v5640_v6  ;;  %v5674_v61 = vadd.f32 %v1319_v44, %v937_v51  ;;  %v1055_v26 = vadd.f32 %v5111_v32, %v1000_v52 }
 0x1ba   : > { %8230 = vst [vmem:[#allocation23_spill] sm:$0xff] %v5661_v11  ;;  %v8235_v1 = vunpack.i.l.bf16 %v5478_v36  ;;  %v865_v21 = vadd.f32 %v5126_v12, %v810_v43  ;;  %v1023_v14 = vadd.f32 %v5141_v59, %v968_v10  ;;  %v891_v51 = vadd.f32 %v5081_v48, %v836_v28 }
 0x1bb   : > { %v1211_v23 = vsel %vm509_vm5, %v8232_v2, %v8231_v42  ;;  %v1232_v24 = vsel %vm509_vm5, %v3635_v45, %v8233_v3  ;;  %8234 = vst [vmem:[#allocation32_spill] sm:$0xff] %v5674_v61  ;;  %1753 = vrot.lane.b32.xlu2 %v5661_v11, %s3867_s30  ;;  %v5687_v45 = vperm.slane %v8236_v57, 2  ;;  %v1049_v9 = vadd.f32 %v5111_v32, %v994_v54  ;;  %v8238_v2 = vld [vmem:[#allocation50_spill] sm:$0xff]  ;;  %v8239_v42 = vld [vmem:[#allocation76_spill] sm:$0xff]  ;;  %v8240_v11 = vld [vmem:[#allocation33_spill] sm:$0xff] }
 0x1bc   : > { %v1228_v62 = vsel %vm509_vm5, %v3620_v39, %v8235_v1  ;;  %1721 = vrot.lane.b32.xlu1 %v5663_v58, %s3867_s30  ;;  %1775 = vrot.lane.b32.xlu0 %v5674_v61, %s3867_s30  ;;  %v1327_v44 = vmul.f32 %v1232_v24, %v1055_v26  ;;  %v1295_v52 = vmul.f32 %v1211_v23, %v1023_v14  ;;  %v8237_v39 = vld [vmem:[#allocation8_spill] sm:$0xff]  ;;  %v8241_v23 = vld [vmem:[#allocation73_spill] sm:$0xff]  ;;  %v8245_v57 = vunpack.i.l.bf16 %v5063_v46 }
 0x1bd   : > { %v1552_v5 = vmul.f32 %v5687_v45, %v8237_v39  ;;  %v990_v43 = vmul.f32 %v8212_v63, %v8238_v2  ;;  %v945_v10 = vmul.f32 %v8239_v42, %v897_v31  ;;  %v1321_v3 = vmul.f32 %v1228_v62, %v1049_v9 }
 0x1be   : > { %v832_v1 = vmul.f32 %v8213_v29, %v8238_v2  ;;  %v913_v28 = vmul.f32 %v8240_v11, %v865_v21  ;;  %v813_v24 = vmul.f32 %v8182_v60, %v8204_v37  ;;  %v971_v54 = vmul.f32 %v8187_v22, %v8204_v37  ;;  %v8243_v11 = vld [vmem:[#allocation81_spill] sm:$0xff] }
 0x1bf   : > { %v939_v14 = vmul.f32 %v8241_v23, %v891_v51  ;;  %v819_v31 = vmul.f32 %v8182_v60, %v4496_v53  ;;  %v977_v62 = vmul.f32 %v8187_v22, %v4496_v53  ;;  %v5712_v9 = vadd.f32 %v1327_v44, %v945_v10 }
 0x1c0   : > { %v5714_v39 = vadd.f32 %v1295_v52, %v913_v28  ;;  %v5717_v21 = vperm.slane %v8243_v11, 2  ;;  %v8244_v42 = vunpack.i.h.bf16 %v5063_v46  ;;  %v1045_v51 = vadd.f32 %v8222_v30, %v990_v43 }
 0x1c1   : > { %8242 = vst [vmem:[#allocation86_spill] sm:$0xff] %v5712_v9  ;;  %v5725_v23 = vadd.f32 %v1321_v3, %v939_v14  ;;  %v887_v2 = vadd.f32 %v8195_v17, %v832_v1  ;;  %v8247_v44 = vunpack.i.h.bf16 %v5130_v50  ;;  %v8248_v52 = vunpack.i.l.bf16 %v5130_v50 }
 0x1c2   : > { %v1213_v26 = vsel %vm509_vm5, %v8245_v57, %v8244_v42  ;;  %v868_v46 = vadd.f32 %v5126_v12, %v813_v24  ;;  %v1026_v43 = vadd.f32 %v5141_v59, %v971_v54  ;;  %v8249_v3 = vunpack.i.h.bf16 %v5307_v47 }
 0x1c3   : > { %8246 = vst [vmem:[#allocation9_spill] sm:$0xff] %v5725_v23  ;;  %v1217_v10 = vsel %vm509_vm5, %v8248_v52, %v8247_v44  ;;  %1791 = vrot.lane.b32.xlu2 %v5712_v9, %s3867_s30  ;;  %v1607_v1 = vadd.f32 %v5717_v21, %v1552_v5  ;;  %v874_v28 = vadd.f32 %v5126_v12, %v819_v31  ;;  %v8250_v52 = vld [vmem:[#allocation66_spill] sm:$0xff]  ;;  %v8251_v9 = vld [vmem:[#allocation59_spill] sm:$0xff] }
 0x1c4   : > { %1727 = vrot.lane.b32.xlu1 %v5714_v39, %s3867_s30  ;;  %v1317_v57 = vmul.f32 %v8249_v3, %v1045_v51  ;;  %1779 = vrot.lane.b32.xlu0 %v5725_v23, %s3867_s30  ;;  %v1032_v14 = vadd.f32 %v5141_v59, %v977_v62  ;;  %v1298_v42 = vmul.f32 %v1213_v26, %v1026_v43  ;;  %v8252_v3 = vld [vmem:[#allocation36_spill] sm:$0xff]  ;;  %v8253_v62 = vld [vmem:[#allocation94_spill] sm:$0xff]  ;;  %v8254_v26 = vld [vmem:[#allocation45_spill] sm:$0xff] }
 0x1c5   : > { %v5746_v11 = vpop.permute.xlu2 %1705  ;;  %v935_v54 = vmul.f32 %v8250_v52, %v887_v2  ;;  %v999_v51 = vmul.f32 %v8212_v63, %v8251_v9  ;;  %v916_v61 = vmul.f32 %v8252_v3, %v868_v46  ;;  %v837_v5 = vmul.f32 %v8182_v60, %v8168_v34 }
 0x1c6   : > { %v1879_v44 = vmul.f32 %v5746_v11, %v1607_v1  ;;  %v1304_v24 = vmul.f32 %v1217_v10, %v1032_v14  ;;  %v995_v31 = vmul.f32 %v8187_v22, %v8168_v34  ;;  %v922_v43 = vmul.f32 %v8254_v26, %v874_v28 }
 0x1c7   : > { %v841_v10 = vmul.f32 %v8213_v29, %v8251_v9  ;;  %v5763_v2 = vadd.f32 %v1317_v57, %v935_v54  ;;  %v5765_v1 = vadd.f32 %v1298_v42, %v916_v61  ;;  %v8257_v46 = vunpack.i.h.bf16 %v5478_v36 }
 0x1c8   : > { %v5758_v23 = vadd.f32 %v1879_v44, %v8253_v62  ;;  %v8258_v14 = vunpack.i.l.bf16 %v5478_v36  ;;  %v5772_v3 = vadd.f32 %v1304_v24, %v922_v43  ;;  %v892_v28 = vadd.f32 %v5126_v12, %v837_v5  ;;  %v8261_v24 = vld [vmem:[#allocation27_spill] sm:$0xff]  ;;  %v8263_v43 = vld [vmem:[#allocation14_spill] sm:$0xff] }
 0x1c9   : > { %8255 = vst [vmem:[#allocation71_spill] sm:$0xff] %v5763_v2  ;;  %v1050_v57 = vadd.f32 %v5141_v59, %v995_v31  ;;  %v1054_v61 = vadd.f32 %v8222_v30, %v999_v51  ;;  %v896_v36 = vadd.f32 %v8195_v17, %v841_v10  ;;  %v978_v54 = vmul.f32 %v8212_v63, %v8261_v24  ;;  %v8264_v51 = vld [vmem:[#allocation72_spill] sm:$0xff]  ;;  %v8265_v10 = vld [vmem:[#allocation78_spill] sm:$0xff] }
 0x1ca   : > { %8256 = vst [vmem:[#allocation22_spill] sm:$0xff] %v5765_v1  ;;  %v1229_v52 = vsel %vm509_vm5, %v8258_v14, %v8257_v46  ;;  %v8262_v62 = vunpack.i.l.bf16 %v5522_v8  ;;  %v1555_v31 = vmul.f32 %v5687_v45, %v8263_v43  ;;  %v940_v46 = vmul.f32 %v8264_v51, %v892_v28  ;;  %v8266_v8 = vld [vmem:[#allocation89_spill] sm:$0xff] }
 0x1cb   : > { %8259 = vst [vmem:[#allocation38_spill] sm:$0xff] %v5772_v3  ;;  %1737 = vrot.lane.b32.xlu2 %v5379_v55, %s3867_s30  ;;  %v1322_v44 = vmul.f32 %v1229_v52, %v1050_v57  ;;  %v820_v14 = vmul.f32 %v8213_v29, %v8261_v24  ;;  %v944_v55 = vmul.f32 %v8265_v10, %v896_v36  ;;  %v8269_v28 = vunpack.i.h.bf16 %v5640_v6 }
 0x1cc   : > { %1733 = vrot.lane.b32.xlu1 %v5765_v1, %s3867_s30  ;;  %1745 = vrot.lane.b32.xlu0 %v5772_v3, %s3867_s30  ;;  %v1326_v26 = vmul.f32 %v8262_v62, %v1054_v61  ;;  %v843_v52 = vmul.f32 %v8182_v60, %v4893_v15  ;;  %v1001_v57 = vmul.f32 %v8187_v22, %v4893_v15  ;;  %v8270_v51 = vunpack.i.l.bf16 %v5640_v6 }
 0x1cd   : > { %v5784_v42 = vpop.permute.xlu2 %1711  ;;  %v1397_v61 = vmul.f32 %v8266_v8, %v8263_v43  ;;  %v5803_v62 = vadd.f32 %v1322_v44, %v940_v46  ;;  %v1033_v5 = vadd.f32 %v8222_v30, %v978_v54  ;;  %v1610_v10 = vadd.f32 %v5717_v21, %v1555_v31  ;;  %v8271_v43 = vld [vmem:[#allocation41_spill] sm:$0xff] }
 0x1ce   : > { %8260 = vst [vmem:[#allocation113_spill] sm:$0xff] %v5784_v42  ;;  %v5806_v3 = vadd.f32 %v1326_v26, %v944_v55  ;;  %v1233_v36 = vsel %vm509_vm5, %v8270_v51, %v8269_v28  ;;  %v875_v44 = vadd.f32 %v8195_v17, %v820_v14  ;;  %v987_v55 = vmul.f32 %v8212_v63, %v8271_v43  ;;  %v8273_v28 = vld [vmem:[#allocation92_spill] sm:$0xff] }
 0x1cf   : > { %8267 = vst [vmem:[#allocation88_spill] sm:$0xff] %v5803_v62  ;;  %v898_v54 = vadd.f32 %v5126_v12, %v843_v52  ;;  %v1056_v26 = vadd.f32 %v5141_v59, %v1001_v57  ;;  %v8272_v31 = vunpack.i.h.bf16 %v5130_v50  ;;  %v1452_v51 = vadd.f32 %v8273_v28, %v1397_v61 }
 0x1d0   : > { %8268 = vst [vmem:[#allocation58_spill] sm:$0xff] %v5806_v3  ;;  %v1882_v15 = vmul.f32 %v5784_v42, %v1610_v10  ;;  %v829_v14 = vmul.f32 %v8213_v29, %v8271_v43  ;;  %v839_v52 = vmul.f32 %v5073_v56, %v8169_v38  ;;  %v997_v61 = vmul.f32 %v5096_v19, %v8169_v38  ;;  %v8277_v10 = vld [vmem:[#allocation75_spill] sm:$0xff] }
 0x1d1   : > { %v1305_v46 = vmul.f32 %v8272_v31, %v1033_v5  ;;  %v1328_v34 = vmul.f32 %v1233_v36, %v1056_v26  ;;  %v8276_v5 = vld [vmem:[#allocation47_spill] sm:$0xff]  ;;  %v946_v1 = vmul.f32 %v8277_v10, %v898_v54  ;;  %v825_v43 = vmul.f32 %v8182_v60, %v4563_v7 }
 0x1d2   : > { %v923_v31 = vmul.f32 %v8276_v5, %v875_v44  ;;  %v983_v36 = vmul.f32 %v8187_v22, %v4563_v7  ;;  %v1042_v26 = vadd.f32 %v8222_v30, %v987_v55  ;;  %v8279_v44 = vunpack.i.h.bf16 %v5542_v16 }
 0x1d3   : > { %1743 = vrot.lane.b32.xlu2 %v5449_v4, %s3867_s30  ;;  %v8275_v4 = vld [vmem:[#allocation97_spill] sm:$0xff]  ;;  %v5853_v5 = vadd.f32 %v1328_v34, %v946_v1  ;;  %v894_v54 = vadd.f32 %v5081_v48, %v839_v52  ;;  %v880_v34 = vadd.f32 %v5126_v12, %v825_v43 }
 0x1d4   : > { %1781 = vrot.lane.b32.xlu1 %v5803_v62, %s3867_s30  ;;  %1789 = vrot.lane.b32.xlu0 %v5806_v3, %s3867_s30  ;;  %v3629_v62 = vunpack.i.l.bf16 %v5542_v16  ;;  %v8274_v3 = vld [vmem:[#allocation107_spill] sm:$0xff]  ;;  %v1500_v50 = vmul.f32 %v1452_v51, %v8275_v4  ;;  %v5847_v42 = vadd.f32 %v1305_v46, %v923_v31  ;;  %v884_v4 = vadd.f32 %v8195_v17, %v829_v14 }
 0x1d5   : > { %v5829_v24 = vpop.permute.xlu2 %1717  ;;  %v7920_v57 = vunpack.i.h.bf16 %v8274_v3  ;;  %8280 = vst [vmem:[#allocation64_spill] sm:$0xff] %v5853_v5  ;;  %v8281_v10 = vunpack.i.l.bf16 %v8274_v3  ;;  %v1052_v16 = vadd.f32 %v5111_v32, %v997_v61  ;;  %v1038_v1 = vadd.f32 %v5141_v59, %v983_v36  ;;  %v8283_v14 = vld [vmem:[#allocation67_spill] sm:$0xff] }
 0x1d6   : > { %v1930_v9 = vadd.f32 %v1882_v15, %v1500_v50  ;;  %8278 = vst [vmem:[#allocation30_spill] sm:$0xff] %v5847_v42  ;;  %v1230_v51 = vsel %vm509_vm5, %v3629_v62, %v8279_v44  ;;  %v8282_v15 = vunpack.i.l.bf16 %v5333_v18  ;;  %v932_v18 = vmul.f32 %v8283_v14, %v884_v4  ;;  %v8284_v50 = vld [vmem:[#allocation70_spill] sm:$0xff]  ;;  %v8286_v44 = vld [vmem:[#allocation105_spill] sm:$0xff] }
 0x1d7   : > { %v1221_v38 = vsel %vm509_vm5, %v8281_v10, %v7920_v57  ;;  %v1324_v46 = vmul.f32 %v1230_v51, %v1052_v16  ;;  %v822_v31 = vmul.f32 %v8182_v60, %v4473_v35  ;;  %v980_v61 = vmul.f32 %v8187_v22, %v4473_v35  ;;  %v8287_v10 = vld [vmem:[#allocation52_spill] sm:$0xff] }
 0x1d8   : > { %v1314_v55 = vmul.f32 %v8282_v15, %v1042_v26  ;;  %v1310_v52 = vmul.f32 %v1221_v38, %v1038_v1  ;;  %v3585_v43 = vunpack.i.h.bf16 %v8286_v44  ;;  %v928_v36 = vmul.f32 %v8287_v10, %v880_v34  ;;  %v8291_v10 = vld [vmem:[#allocation44_spill] sm:$0xff] }
 0x1d9   : > { %v828_v51 = vmul.f32 %v8182_v60, %v8176_v25  ;;  %v986_v38 = vmul.f32 %v8187_v22, %v8176_v25  ;;  %v877_v34 = vadd.f32 %v5126_v12, %v822_v31  ;;  %v1035_v1 = vadd.f32 %v5141_v59, %v980_v61  ;;  %v8290_v31 = vld [vmem:[#allocation68_spill] sm:$0xff]  ;;  %v8351_v25 = vld [vmem:[#allocation46_spill] sm:$0xff] }
 0x1da   : > { %v5879_v26 = vadd.f32 %v1314_v55, %v932_v18  ;;  %v5892_v16 = vadd.f32 %v1310_v52, %v928_v36  ;;  %v830_v55 = vmul.f32 %v5073_v56, %v8177_v49  ;;  %v1002_v61 = vmul.f32 %v8212_v63, %v8290_v31 }
 0x1db   : > { %2218 = vrot.lane.b32.xlu2 %v1930_v9, %s3867_s30  ;;  %v942_v9 = vmul.f32 %v8284_v50, %v894_v54  ;;  %v8288_v54 = vunpack.i.l.bf16 %v8218_v13  ;;  %v883_v13 = vadd.f32 %v5126_v12, %v828_v51  ;;  %v1041_v14 = vadd.f32 %v5141_v59, %v986_v38  ;;  %v8292_v51 = vld [vmem:[#allocation54_spill] sm:$0xff] }
 0x1dc   : > { %1747 = vrot.lane.b32.xlu1 %v5847_v42, %s3867_s30  ;;  %1793 = vrot.lane.b32.xlu0 %v5853_v5, %s3867_s30  ;;  %8285 = vst [vmem:[#allocation79_spill] sm:$0xff] %v5879_v26  ;;  %v925_v36 = vmul.f32 %v8291_v10, %v877_v34  ;;  %v831_v38 = vmul.f32 %v8182_v60, %v8177_v49  ;;  %v8294_v34 = vunpack.i.h.bf16 %v5307_v47 }
 0x1dd   : > { %v5871_v62 = vpop.permute.xlu2 %1723  ;;  %v5887_v4 = vadd.f32 %v1324_v46, %v942_v9  ;;  %v1219_v15 = vsel %vm509_vm5, %v3585_v43, %v8288_v54  ;;  %8289 = vst [vmem:[#allocation8_spill] sm:$0xff] %v5892_v16  ;;  %v988_v46 = vmul.f32 %v5096_v19, %v8177_v49  ;;  %v1313_v50 = vmul.f32 %v5361_v27, %v1041_v14 }
 0x1de   : > { %v1307_v52 = vmul.f32 %v1219_v15, %v1035_v1  ;;  %v885_v9 = vadd.f32 %v5081_v48, %v830_v55  ;;  %v844_v54 = vmul.f32 %v8213_v29, %v8290_v31  ;;  %v989_v27 = vmul.f32 %v8187_v22, %v8177_v49  ;;  %v8296_v22 = vld [vmem:[#allocation65_spill] sm:$0xff] }
 0x1df   : > { %v1043_v57 = vadd.f32 %v5111_v32, %v988_v46  ;;  %v8295_v14 = vunpack.i.l.bf16 %v5307_v47  ;;  %v8297_v47 = vunpack.i.h.bf16 %v5640_v6  ;;  %v821_v6 = vmul.f32 %v5073_v56, %v4473_v35 }
 0x1e0   : > { %v5921_v15 = vadd.f32 %v1307_v52, %v925_v36  ;;  %v899_v60 = vadd.f32 %v8195_v17, %v844_v54  ;;  %v933_v52 = vmul.f32 %v8296_v22, %v885_v9  ;;  %v8299_v36 = vld [vmem:[#allocation39_spill] sm:$0xff]  ;;  %v3584_v9 = vunpack.i.l.bf16 %v8286_v44 }
 0x1e1   : > { %v1315_v55 = vmul.f32 %v5356_v20, %v1043_v57  ;;  %v1225_v46 = vsel %vm509_vm5, %v8295_v14, %v8294_v34  ;;  %v886_v20 = vadd.f32 %v5126_v12, %v831_v38  ;;  %v1044_v57 = vadd.f32 %v5141_v59, %v989_v27  ;;  %v8301_v38 = vld [vmem:[#allocation63_spill] sm:$0xff] }
 0x1e2   : > { %v984_v54 = vmul.f32 %v8212_v63, %v8299_v36  ;;  %v826_v12 = vmul.f32 %v8213_v29, %v8299_v36  ;;  %v979_v27 = vmul.f32 %v5096_v19, %v4473_v35  ;;  %v1218_v44 = vsel %vm509_vm5, %v3584_v9, %v3585_v43 }
 0x1e3   : > { %v5944_v10 = vadd.f32 %v1315_v55, %v933_v52  ;;  %v934_v59 = vmul.f32 %v8301_v38, %v886_v20  ;;  %v8305_v20 = vld [vmem:[#allocation57_spill] sm:$0xff] }
 0x1e4   : > { %1785 = vrot.lane.b32.xlu1 %v5887_v4, %s3867_s30  ;;  %1757 = vrot.lane.b32.xlu0 %v5892_v16, %s3867_s30  ;;  %v931_v16 = vmul.f32 %v8292_v51, %v883_v13  ;;  %v1057_v13 = vadd.f32 %v8222_v30, %v1002_v61  ;;  %v1316_v61 = vmul.f32 %v1225_v46, %v1044_v57  ;;  %v8300_v51 = vld [vmem:[#allocation77_spill] sm:$0xff] }
 0x1e5   : > { %v5906_v18 = vpop.permute.xlu2 %1729  ;;  %8298 = vst [vmem:[#allocation33_spill] sm:$0xff] %v5944_v10  ;;  %v947_v34 = vmul.f32 %v8300_v51, %v899_v60  ;;  %v1039_v63 = vadd.f32 %v8222_v30, %v984_v54  ;;  %v881_v29 = vadd.f32 %v8195_v17, %v826_v12  ;;  %v876_v46 = vadd.f32 %v5081_v48, %v821_v6  ;;  %v8311_v6 = vld [vmem:[#allocation103_spill] sm:$0xff] }
 0x1e6   : > { %v5924_v1 = vadd.f32 %v1313_v50, %v931_v16  ;;  %v1329_v16 = vmul.f32 %v8297_v47, %v1057_v13  ;;  %v5959_v14 = vadd.f32 %v1316_v61, %v934_v59  ;;  %v1034_v13 = vadd.f32 %v5111_v32, %v979_v27  ;;  %v8306_v47 = vld [vmem:[#allocation16_spill] sm:$0xff] }
 0x1e7   : > { %v8304_v60 = vunpack.i.h.bf16 %v8274_v3  ;;  %v929_v57 = vmul.f32 %v8305_v20, %v881_v29  ;;  %v1558_v17 = vmul.f32 %v5687_v45, %v8306_v47  ;;  %v1400_v9 = vmul.f32 %v8266_v8, %v8306_v47 }
 0x1e8   : > { %8293 = vst [vmem:[#allocation76_spill] sm:$0xff] %v5924_v1  ;;  %v5957_v55 = vadd.f32 %v1329_v16, %v947_v34  ;;  %v1306_v43 = vmul.f32 %v1218_v44, %v1034_v13  ;;  %v8307_v16 = vld [vmem:[#allocation43_spill] sm:$0xff]  ;;  %v824_v47 = vmul.f32 %v5073_v56, %v4563_v7 }
 0x1e9   : > { %8303 = vst [vmem:[#allocation81_spill] sm:$0xff] %v5959_v14  ;;  %v1311_v22 = vmul.f32 %v8304_v60, %v1039_v63  ;;  %v924_v61 = vmul.f32 %v8307_v16, %v876_v46  ;;  %v1613_v3 = vadd.f32 %v5717_v21, %v1558_v17  ;;  %v1455_v38 = vadd.f32 %v8273_v28, %v1400_v9  ;;  %v8312_v63 = vld [vmem:[#allocation55_spill] sm:$0xff] }
 0x1ea   : > { %8302 = vst [vmem:[#allocation73_spill] sm:$0xff] %v5957_v55  ;;  %v1433_v44 = vmul.f32 %v8266_v8, %v8312_v63  ;;  %v1591_v29 = vmul.f32 %v5687_v45, %v8312_v63  ;;  %v982_v17 = vmul.f32 %v5096_v19, %v4563_v7  ;;  %v8315_v63 = vld [vmem:[#allocation56_spill] sm:$0xff]  ;;  %v8350_v56 = vld [vmem:[#allocation131_spill] sm:$0xff] }
 0x1eb   : > { %v5980_v54 = vadd.f32 %v1311_v22, %v929_v57  ;;  %v5984_v51 = vadd.f32 %v1306_v43, %v924_v61  ;;  %v1885_v59 = vmul.f32 %v5829_v24, %v1613_v3  ;;  %v1503_v27 = vmul.f32 %v1455_v38, %v8311_v6 }
 0x1ec   : > { %1751 = vrot.lane.b32.xlu1 %v5921_v15, %s3867_s30  ;;  %1763 = vrot.lane.b32.xlu0 %v5924_v1, %s3867_s30  ;;  %v1488_v13 = vadd.f32 %v8273_v28, %v1433_v44  ;;  %v1646_v60 = vadd.f32 %v5717_v21, %v1591_v29  ;;  %v879_v61 = vadd.f32 %v5081_v48, %v824_v47  ;;  %v6037_v29 = vld [vmem:[%s7736_s3 + $0x1] ss:$4 sm:$0x7]  ;;  %v8329_v48 = vld [vmem:[#allocation17_spill] sm:$0xff] }
 0x1ed   : > { %v5942_v50 = vpop.permute.xlu2 %1735  ;;  %8308 = vst [vmem:[#allocation66_spill] sm:$0xff] %v5980_v54  ;;  %v1933_v46 = vadd.f32 %v1885_v59, %v1503_v27  ;;  %v1037_v9 = vadd.f32 %v5111_v32, %v982_v17  ;;  %v8314_v59 = vld [vmem:[#allocation116_spill] sm:$0xff]  ;;  %v8319_v17 = vld [vmem:[#allocation82_spill] sm:$0xff] }
 0x1ee   : > { %8309 = vst [vmem:[#allocation36_spill] sm:$0xff] %v5984_v51  ;;  %v1536_v20 = vmul.f32 %v1488_v13, %v5563_v33  ;;  %v3730_v33 = vld [vmem:[%s7736_s3] ss:$4 sm:$0x7]  ;;  %v927_v44 = vmul.f32 %v8315_v63, %v879_v61 }
 0x1ef   : > { %v6026_v3 = vperm.slane %v3730_v33, 1  ;;  %v1309_v6 = vmul.f32 %v8314_v59, %v1037_v9  ;;  %v3733_v32 = vld [vmem:[%s7736_s3 + $0x3] ss:$4 sm:$0x7] }
 0x1f1   : > { %v6042_v13 = vadd.f32 %v1309_v6, %v927_v44 }
 0x1f3   : > { %8316 = vst [vmem:[#allocation14_spill] sm:$0xff] %v6042_v13 }
 0x1f4   : > { %1795 = vrot.lane.b32.xlu1 %v5957_v55, %s3867_s30  ;;  %1769 = vrot.lane.b32.xlu0 %v5959_v14, %s3867_s30 }
 0x1f5   : > { %v5972_v52 = vpop.permute.xlu0 %1741  ;;  %v5974_v30 = vpop.permute.xlu2 %1773 }
 0x1fc   : > { %1759 = vrot.lane.b32.xlu1 %v5980_v54, %s3867_s30  ;;  %1749 = vrot.lane.b32.xlu0 %v5984_v51, %s3867_s30 }
 0x1fd   : > { %v5991_v34 = vpop.permute.xlu2 %1739  ;;  %v5993_v12 = vpop.permute.xlu0 %1701 }
 0x1fe   : > { %8310 = vst [vmem:[#allocation94_spill] sm:$0xff] %v5991_v34 }
 0x204   : > { %1765 = vrot.lane.b32.xlu1 %v5879_v26, %s3867_s30  ;;  %2224 = vrot.lane.b32.xlu0 %v1933_v46, %s3867_s30  ;;  %v6040_v46 = vperm.slane %v6037_v29, 1 }
 0x205   : > { %v6007_v22 = vpop.permute.xlu2 %1783  ;;  %v6009_v43 = vpop.permute.xlu0 %1707 }
 0x206   : > { %v1918_v57 = vmul.f32 %v6007_v22, %v1646_v60  ;;  %v8317_v60 = vld [vmem:[#allocation11_spill] sm:$0xff] }
 0x207   : > { %v1393_v47 = vmul.f32 %v6026_v3, %v8317_v60 }
 0x208   : > { %v6017_v16 = vadd.f32 %v1918_v57, %v1536_v20  ;;  %v8318_v20 = vld [vmem:[#allocation80_spill] sm:$0xff] }
 0x209   : > { %v1551_v57 = vmul.f32 %v8318_v20, %v8317_v60  ;;  %v1448_v59 = vadd.f32 %v6040_v46, %v1393_v47  ;;  %v1557_v36 = vmul.f32 %v8318_v20, %v4255_v0 }
 0x20a   : > { %8313 = vst [vmem:[#allocation45_spill] sm:$0xff] %v6017_v16 }
 0x20b   : > { %v1606_v61 = vadd.f32 %v8319_v17, %v1551_v57  ;;  %v1496_v14 = vmul.f32 %v1448_v59, %v5493_v40  ;;  %v8322_v59 = vld [vmem:[#allocation110_spill] sm:$0xff] }
 0x20c   : > { %1771 = vrot.lane.b32.xlu1 %v5763_v2, %s3867_s30  ;;  %v8320_v2 = vld [vmem:[#allocation15_spill] sm:$0xff] }
 0x20d   : > { %v6031_v27 = vpop.permute.xlu0 %1713  ;;  %v6052_v63 = vpop.permute.xlu2 %1787  ;;  %v1561_v16 = vmul.f32 %v5687_v45, %v8320_v2 }
 0x20e   : > { %v6028_v38 = vpop.permute.xlu1 %1777 }
 0x20f   : > { %v1616_v47 = vadd.f32 %v5717_v21, %v1561_v16  ;;  %v8324_v16 = vld [vmem:[#allocation26_spill] sm:$0xff] }
 0x211   : > { %v1888_v49 = vmul.f32 %v5871_v62, %v1616_v47 }
 0x214   : > { %1755 = vrot.lane.b32.xlu1 %v6042_v13, %s3867_s30  ;;  %v1403_v13 = vmul.f32 %v8266_v8, %v8320_v2 }
 0x216   : > { %v1704_v9 = vpop.permute.xlu1 %1703  ;;  %v6056_v44 = vpop.permute.xlu0 %1719 }
 0x217   : > { %v1798_v6 = vsel %vm509_vm5, %v1704_v9, %v5746_v11  ;;  %v1458_v11 = vadd.f32 %v8273_v28, %v1403_v13  ;;  %v1411_v13 = vmul.f32 %v6026_v3, %v8324_v16 }
 0x218   : > { %v1878_v54 = vmul.f32 %v1798_v6, %v1606_v61  ;;  %v1569_v6 = vmul.f32 %v8318_v20, %v8324_v16 }
 0x219   : > { %v1506_v2 = vmul.f32 %v1458_v11, %v8322_v59  ;;  %v1399_v11 = vmul.f32 %v6026_v3, %v4255_v0  ;;  %v1810_v59 = vsel %vm509_vm5, %v5991_v34, %v5972_v52  ;;  %v1466_v10 = vadd.f32 %v6040_v46, %v1411_v13  ;;  %v8326_v13 = vld [vmem:[#allocation119_spill] sm:$0xff] }
 0x21a   : > { %v6063_v57 = vadd.f32 %v1878_v54, %v1496_v14  ;;  %v8323_v14 = vld [vmem:[#allocation21_spill] sm:$0xff]  ;;  %v1612_v34 = vadd.f32 %v8319_v17, %v1557_v36 }
 0x21b   : > { %v1564_v54 = vmul.f32 %v5687_v45, %v8323_v14  ;;  %v1936_v47 = vadd.f32 %v1888_v49, %v1506_v2  ;;  %v3732_v49 = vld [vmem:[%s7736_s3 + $0x2] ss:$4 sm:$0x7] }
 0x21c   : > { %8321 = vst [vmem:[#allocation72_spill] sm:$0xff] %v6063_v57  ;;  %2212 = vrot.lane.b32.xlu1 %v5758_v23, %s3867_s30  ;;  %2210 = vrot.lane.b32.xlu0 %v6063_v57, %s3867_s30  ;;  %v1406_v23 = vmul.f32 %v8266_v8, %v8323_v14  ;;  %v6083_v57 = vpop.permute.xlu2 %1753  ;;  %v1624_v14 = vadd.f32 %v8319_v17, %v1569_v6  ;;  %v6101_v2 = vperm.slane %v3732_v49, 0 }
 0x21d   : > { %v1619_v1 = vadd.f32 %v5717_v21, %v1564_v54  ;;  %v1454_v6 = vadd.f32 %v6040_v46, %v1399_v11 }
 0x21e   : > { %v6072_v61 = vpop.permute.xlu1 %1709  ;;  %v6074_v40 = vpop.permute.xlu0 %1725  ;;  %v1461_v26 = vadd.f32 %v8273_v28, %v1406_v23  ;;  %v1896_v16 = vmul.f32 %v1810_v59, %v1624_v14  ;;  %v8325_v23 = vld [vmem:[#allocation25_spill] sm:$0xff]  ;;  %v8327_v14 = vld [vmem:[#allocation100_spill] sm:$0xff]  ;;  %v1550_v11 = vmul.f32 %v6101_v2, %v8317_v60 }
 0x21f   : > { %v1891_v51 = vmul.f32 %v5906_v18, %v1619_v1  ;;  %v1567_v7 = vmul.f32 %v5687_v45, %v8325_v23  ;;  %v1502_v36 = vmul.f32 %v1454_v6, %v5612_v41  ;;  %v1514_v55 = vmul.f32 %v1466_v10, %v8327_v14 }
 0x220   : > { %v1509_v1 = vmul.f32 %v1461_v26, %v8326_v13  ;;  %v1560_v26 = vmul.f32 %v8318_v20, %v8329_v48  ;;  %v1402_v41 = vmul.f32 %v6026_v3, %v8329_v48  ;;  %v6139_v6 = vperm.slane %v6037_v29, 0 }
 0x221   : > { %v6136_v10 = vadd.f32 %v1896_v16, %v1514_v55  ;;  %v1622_v13 = vadd.f32 %v5717_v21, %v1567_v7 }
 0x222   : > { %8331 = vst [vmem:[#allocation92_spill] sm:$0xff] %v6139_v6  ;;  %v1457_v7 = vadd.f32 %v6040_v46, %v1402_v41 }
 0x223   : > { %v1894_v16 = vmul.f32 %v5942_v50, %v1622_v13 }
 0x224   : > { %2230 = vrot.lane.b32.xlu1 %v1936_v47, %s3867_s30  ;;  %v6109_v47 = vperm.slane %v3730_v33, 0  ;;  %v1409_v33 = vmul.f32 %v8266_v8, %v8325_v23  ;;  %v6141_v23 = vpop.permute.xlu2 %1791 }
 0x225   : > { %8332 = vst [vmem:[#allocation107_spill] sm:$0xff] %v6141_v23 }
 0x226   : > { %v6106_v54 = vpop.permute.xlu1 %1715  ;;  %v6116_v5 = vpop.permute.xlu0 %1731  ;;  %v1464_v29 = vadd.f32 %v8273_v28, %v1409_v33  ;;  %v8334_v33 = vld [vmem:[#allocation24_spill] sm:$0xff] }
 0x227   : > { %v1802_v49 = vsel %vm509_vm5, %v6106_v54, %v5829_v24  ;;  %v6128_v24 = vperm.slane %v3733_v32, 0  ;;  %v1392_v32 = vmul.f32 %v6109_v47, %v8317_v60  ;;  %v1570_v13 = vmul.f32 %v5687_v45, %v8334_v33 }
 0x228   : > { %v1884_v59 = vmul.f32 %v1802_v49, %v1612_v34  ;;  %v1939_v34 = vadd.f32 %v1891_v51, %v1509_v1  ;;  %v1797_v51 = vsel %vm509_vm5, %v5993_v12, %v1704_v9  ;;  %v1615_v1 = vadd.f32 %v8319_v17, %v1560_v26 }
 0x229   : > { %8328 = vst [vmem:[#allocation78_spill] sm:$0xff] %v6128_v24  ;;  %v1605_v55 = vadd.f32 %v6128_v24, %v1550_v11  ;;  %v1447_v14 = vadd.f32 %v6139_v6, %v1392_v32  ;;  %v8333_v11 = vld [vmem:[#allocation125_spill] sm:$0xff]  ;;  %v1505_v26 = vmul.f32 %v1457_v7, %v5663_v58  ;;  %v1412_v41 = vmul.f32 %v8266_v8, %v8334_v33 }
 0x22a   : > { %v6132_v49 = vadd.f32 %v1884_v59, %v1502_v36  ;;  %v8338_v32 = vld [vmem:[#allocation29_spill] sm:$0xff]  ;;  %v1625_v7 = vadd.f32 %v5717_v21, %v1570_v13 }
 0x22b   : > { %v1877_v36 = vmul.f32 %v1797_v51, %v1605_v55  ;;  %v8335_v51 = vld [vmem:[#allocation19_spill] sm:$0xff] }
 0x22c   : > { %8330 = vst [vmem:[#allocation89_spill] sm:$0xff] %v6132_v49  ;;  %2236 = vrot.lane.b32.xlu1 %v1939_v34, %s3867_s30  ;;  %2222 = vrot.lane.b32.xlu2 %v6132_v49, %s3867_s30  ;;  %v1512_v34 = vmul.f32 %v1464_v29, %v8333_v11  ;;  %v1553_v55 = vmul.f32 %v6101_v2, %v8335_v51  ;;  %v8336_v49 = vld [vmem:[#allocation115_spill] sm:$0xff] }
 0x22d   : > { %v1563_v29 = vmul.f32 %v8318_v20, %v8338_v32  ;;  %v1405_v11 = vmul.f32 %v6026_v3, %v8338_v32  ;;  %v1395_v58 = vmul.f32 %v6109_v47, %v8335_v51 }
 0x22e   : > { %v6155_v59 = vpop.permute.xlu1 %1721  ;;  %v6161_v9 = vpop.permute.xlu0 %1775  ;;  %v1942_v23 = vadd.f32 %v1894_v16, %v1512_v34 }
 0x22f   : > { %v1804_v12 = vsel %vm509_vm5, %v6155_v59, %v5871_v62  ;;  %v1495_v62 = vmul.f32 %v1447_v14, %v8336_v49  ;;  %v1799_v49 = vsel %vm509_vm5, %v6009_v43, %v6072_v61  ;;  %v6191_v16 = vpop.permute.xlu2 %1737  ;;  %v1618_v14 = vadd.f32 %v8319_v17, %v1563_v29 }
 0x230   : > { %v1887_v60 = vmul.f32 %v1804_v12, %v1615_v1  ;;  %8340 = vst [vmem:[#allocation75_spill] sm:$0xff] %v6191_v16  ;;  %v1897_v12 = vmul.f32 %v5972_v52, %v1625_v7  ;;  %v1460_v43 = vadd.f32 %v6040_v46, %v1405_v11  ;;  %v1554_v52 = vmul.f32 %v8318_v20, %v8335_v51  ;;  %v8349_v16 = vld [vmem:[#allocation22_spill] sm:$0xff] }
 0x231   : > { %v6179_v1 = vadd.f32 %v1877_v36, %v1495_v62  ;;  %v1467_v36 = vadd.f32 %v8273_v28, %v1412_v41  ;;  %v1413_v11 = vmul.f32 %v6109_v47, %v4496_v53  ;;  %v1556_v7 = vmul.f32 %v6101_v2, %v4255_v0 }
 0x232   : > { %v6173_v19 = vadd.f32 %v1887_v60, %v1505_v26  ;;  %v1608_v60 = vadd.f32 %v6128_v24, %v1553_v55  ;;  %v1450_v26 = vadd.f32 %v6139_v6, %v1395_v58  ;;  %v8341_v55 = vld [vmem:[#allocation109_spill] sm:$0xff]  ;;  %v1508_v29 = vmul.f32 %v1460_v43, %v5714_v39 }
 0x233   : > { %8339 = vst [vmem:[#allocation47_spill] sm:$0xff] %v6179_v1  ;;  %v1515_v62 = vmul.f32 %v1467_v36, %v8341_v55  ;;  %v1566_v36 = vmul.f32 %v8318_v20, %v8204_v37  ;;  %v1408_v39 = vmul.f32 %v6026_v3, %v8204_v37  ;;  %v1609_v55 = vadd.f32 %v8319_v17, %v1554_v52  ;;  %v8347_v52 = vld [vmem:[#allocation59_spill] sm:$0xff] }
 0x234   : > { %8337 = vst [vmem:[#allocation97_spill] sm:$0xff] %v6173_v19  ;;  %2242 = vrot.lane.b32.xlu1 %v1942_v23, %s3867_s30  ;;  %2228 = vrot.lane.b32.xlu0 %v6173_v19, %s3867_s30  ;;  %v1880_v23 = vmul.f32 %v1799_v49, %v1608_v60  ;;  %v8342_v49 = vld [vmem:[#allocation126_spill] sm:$0xff]  ;;  %v1396_v60 = vmul.f32 %v6026_v3, %v8335_v51 }
 0x235   : > { %2208 = vrot.lane.b32.xlu2 %v6179_v1, %s3867_s30  ;;  %v1945_v58 = vadd.f32 %v1897_v12, %v1515_v62  ;;  %v1398_v12 = vmul.f32 %v6109_v47, %v4255_v0  ;;  %v1801_v62 = vsel %vm509_vm5, %v6031_v27, %v6106_v54  ;;  %v1621_v27 = vadd.f32 %v8319_v17, %v1566_v36 }
 0x236   : > { %v6198_v34 = vpop.permute.xlu1 %1727  ;;  %v6204_v13 = vpop.permute.xlu0 %1779 }
 0x237   : > { %v1806_v33 = vsel %vm509_vm5, %v6198_v34, %v5906_v18  ;;  %v1498_v18 = vmul.f32 %v1450_v26, %v8342_v49  ;;  %v1571_v26 = vmul.f32 %v6101_v2, %v4496_v53  ;;  %v1436_v49 = vmul.f32 %v8266_v8, %v8347_v52 }
 0x238   : > { %v1890_v41 = vmul.f32 %v1806_v33, %v1618_v14  ;;  %v8344_v14 = vld [vmem:[#allocation113_spill] sm:$0xff]  ;;  %v1453_v19 = vadd.f32 %v6139_v6, %v1398_v12 }
 0x239   : > { %v1800_v43 = vsel %vm509_vm5, %v6072_v61, %v8344_v14  ;;  %v6227_v33 = vadd.f32 %v1880_v23, %v1498_v18  ;;  %v1468_v61 = vadd.f32 %v6139_v6, %v1413_v11  ;;  %v1611_v23 = vadd.f32 %v6128_v24, %v1556_v7  ;;  %v1744_v7 = vpop.permute.xlu2 %1743 }
 0x23a   : > { %v6218_v1 = vadd.f32 %v1890_v41, %v1508_v29  ;;  %v8346_v41 = vld [vmem:[#allocation49_spill] sm:$0xff]  ;;  %v1881_v18 = vmul.f32 %v1800_v43, %v1609_v55  ;;  %v1463_v11 = vadd.f32 %v6040_v46, %v1408_v39  ;;  %v8348_v55 = vld [vmem:[#allocation102_spill] sm:$0xff] }
 0x23b   : > { %8345 = vst [vmem:[#allocation70_spill] sm:$0xff] %v6227_v33  ;;  %v1586_v29 = vmul.f32 %v6101_v2, %v8346_v41  ;;  %v1883_v14 = vmul.f32 %v1801_v62, %v1611_v23  ;;  %v1516_v39 = vmul.f32 %v1468_v61, %v8350_v56  ;;  %v1587_v62 = vmul.f32 %v8318_v20, %v8346_v41 }
 0x23c   : > { %8343 = vst [vmem:[#allocation67_spill] sm:$0xff] %v6218_v1  ;;  %2248 = vrot.lane.b32.xlu1 %v1945_v58, %s3867_s30  ;;  %2234 = vrot.lane.b32.xlu0 %v6218_v1, %s3867_s30  ;;  %v1451_v58 = vadd.f32 %v6040_v46, %v1396_v60  ;;  %v1511_v60 = vmul.f32 %v1463_v11, %v8349_v16 }
 0x23d   : > { %2214 = vrot.lane.b32.xlu2 %v6227_v33, %s3867_s30  ;;  %v1626_v33 = vadd.f32 %v6128_v24, %v1571_v26  ;;  %v1428_v12 = vmul.f32 %v6109_v47, %v8346_v41  ;;  %v1821_v56 = vsel %vm509_vm5, %v5974_v30, %v6161_v9  ;;  %v1642_v30 = vadd.f32 %v8319_v17, %v1587_v62 }
 0x23e   : > { %v6249_v54 = vpop.permute.xlu1 %1733  ;;  %v1746_v51 = vpop.permute.xlu0 %1745  ;;  %v1499_v0 = vmul.f32 %v1451_v58, %v8348_v55  ;;  %v1559_v62 = vmul.f32 %v6101_v2, %v8329_v48 }
 0x23f   : > { %v1808_v1 = vsel %vm509_vm5, %v6249_v54, %v5942_v50  ;;  %v1811_v36 = vsel %vm509_vm5, %v1744_v7, %v1746_v51  ;;  %v1501_v50 = vmul.f32 %v1453_v19, %v8351_v25  ;;  %v1641_v19 = vadd.f32 %v6128_v24, %v1586_v29 }
 0x240   : > { %v1893_v43 = vmul.f32 %v1808_v1, %v1621_v27  ;;  %v1898_v23 = vmul.f32 %v1811_v36, %v1626_v33  ;;  %v6265_v42 = vadd.f32 %v1881_v18, %v1499_v0  ;;  %v1594_v1 = vmul.f32 %v5687_v45, %v8347_v52 }
 0x241   : > { %v6278_v61 = vadd.f32 %v1883_v14, %v1501_v50  ;;  %v1429_v0 = vmul.f32 %v6026_v3, %v8346_v41  ;;  %v1822_v25 = vsel %vm509_vm5, %v6161_v9, %v6028_v38  ;;  %v1913_v33 = vmul.f32 %v1821_v56, %v1641_v19  ;;  %v8353_v14 = vld [vmem:[#allocation61_spill] sm:$0xff] }
 0x242   : > { %v6267_v26 = vadd.f32 %v1893_v43, %v1511_v60  ;;  %v6276_v16 = vadd.f32 %v1898_v23, %v1516_v39  ;;  %v1491_v18 = vadd.f32 %v8273_v28, %v1436_v49  ;;  %v1649_v29 = vadd.f32 %v5717_v21, %v1594_v1  ;;  %v8354_v43 = vld [vmem:[#allocation58_spill] sm:$0xff]  ;;  %v8355_v60 = vld [vmem:[#allocation20_spill] sm:$0xff] }
 0x243   : > { %v1483_v27 = vadd.f32 %v6139_v6, %v1428_v12  ;;  %v1914_v9 = vmul.f32 %v1822_v25, %v1642_v30  ;;  %v1484_v11 = vadd.f32 %v6040_v46, %v1429_v0  ;;  %v1590_v7 = vmul.f32 %v8318_v20, %v8353_v14  ;;  %v8356_v49 = vld [vmem:[#allocation32_spill] sm:$0xff] }
 0x244   : > { %8352 = vst [vmem:[#allocation105_spill] sm:$0xff] %v6276_v16  ;;  %2216 = vrot.lane.b32.xlu1 %v6265_v42, %s3867_s30  ;;  %2240 = vrot.lane.b32.xlu0 %v6267_v26, %s3867_s30  ;;  %v1539_v36 = vmul.f32 %v1491_v18, %v8354_v43  ;;  %v1572_v50 = vmul.f32 %v8318_v20, %v4496_v53 }
 0x245   : > { %2220 = vrot.lane.b32.xlu2 %v6278_v61, %s3867_s30  ;;  %v1531_v39 = vmul.f32 %v1483_v27, %v8355_v60  ;;  %v1532_v23 = vmul.f32 %v1484_v11, %v8356_v49  ;;  %v1432_v56 = vmul.f32 %v6026_v3, %v8353_v14  ;;  %v1414_v0 = vmul.f32 %v6026_v3, %v4496_v53  ;;  %v8358_v60 = vld [vmem:[#allocation88_spill] sm:$0xff] }
 0x246   : > { %v1782_v52 = vpop.permute.xlu1 %1781  ;;  %v1790_v58 = vpop.permute.xlu0 %1789  ;;  %v1401_v30 = vmul.f32 %v6109_v47, %v8329_v48  ;;  %v1803_v20 = vsel %vm509_vm5, %v6056_v44, %v6155_v59  ;;  %v1614_v18 = vadd.f32 %v6128_v24, %v1559_v62  ;;  %v1589_v49 = vmul.f32 %v6101_v2, %v8353_v14 }
 0x247   : > { %v1921_v55 = vmul.f32 %v1790_v58, %v1649_v29  ;;  %v6308_v12 = vadd.f32 %v1913_v33, %v1531_v39  ;;  %v1824_v19 = vsel %vm509_vm5, %v1782_v52, %v6007_v22  ;;  %v6316_v25 = vadd.f32 %v1914_v9, %v1532_v23  ;;  %v8359_v39 = vld [vmem:[#allocation38_spill] sm:$0xff]  ;;  %v8360_v23 = vld [vmem:[#allocation93_spill] sm:$0xff] }
 0x248   : > { %v1645_v33 = vadd.f32 %v8319_v17, %v1590_v7  ;;  %v1627_v29 = vadd.f32 %v8319_v17, %v1572_v50  ;;  %v1487_v44 = vadd.f32 %v6040_v46, %v1432_v56  ;;  %v1469_v59 = vadd.f32 %v6040_v46, %v1414_v0 }
 0x249   : > { %v6306_v1 = vadd.f32 %v1921_v55, %v1539_v36  ;;  %8357 = vst [vmem:[#allocation52_spill] sm:$0xff] %v6316_v25  ;;  %v1886_v9 = vmul.f32 %v1803_v20, %v1614_v18  ;;  %v1456_v43 = vadd.f32 %v6139_v6, %v1401_v30  ;;  %v1562_v36 = vmul.f32 %v6101_v2, %v8338_v32 }
 0x24a   : > { %v1917_v22 = vmul.f32 %v1824_v19, %v1645_v33  ;;  %v1535_v17 = vmul.f32 %v1487_v44, %v8358_v60  ;;  %v1517_v62 = vmul.f32 %v1469_v59, %v8359_v39  ;;  %v1404_v0 = vmul.f32 %v6109_v47, %v8338_v32  ;;  %v8362_v19 = vld [vmem:[#allocation60_spill] sm:$0xff]  ;;  %v8364_v39 = vld [vmem:[#allocation10_spill] sm:$0xff] }
 0x24b   : > { %v1504_v50 = vmul.f32 %v1456_v43, %v8360_v23  ;;  %v1435_v30 = vmul.f32 %v6026_v3, %v8362_v19  ;;  %v1805_v20 = vsel %vm509_vm5, %v6074_v40, %v6198_v34  ;;  %v1826_v33 = vsel %vm509_vm5, %v6052_v63, %v1790_v58  ;;  %v8363_v58 = vld [vmem:[#allocation87_spill] sm:$0xff] }
 0x24c   : > { %2246 = vrot.lane.b32.xlu0 %v6136_v10, %s3867_s30  ;;  %2280 = vrot.lane.b32.xlu1 %v6308_v12, %s3867_s30  ;;  %v6348_v56 = vadd.f32 %v1917_v22, %v1535_v17  ;;  %v1431_v22 = vmul.f32 %v6109_v47, %v8353_v14  ;;  %v1823_v44 = vsel %vm509_vm5, %v6204_v13, %v1782_v52 }
 0x24d   : > { %2282 = vrot.lane.b32.xlu2 %v6316_v25, %s3867_s30  ;;  %v6361_v18 = vadd.f32 %v1886_v9, %v1504_v50  ;;  %v1644_v40 = vadd.f32 %v6128_v24, %v1589_v49  ;;  %v1920_v59 = vmul.f32 %v1826_v33, %v8363_v58  ;;  %v1490_v43 = vadd.f32 %v6040_v46, %v1435_v30  ;;  %v8365_v49 = vld [vmem:[#allocation104_spill] sm:$0xff]  ;;  %v8366_v50 = vld [vmem:[#allocation27_spill] sm:$0xff] }
 0x24e   : > { %v6332_v27 = vpop.permute.xlu1 %1747  ;;  %v6338_v7 = vpop.permute.xlu0 %1793  ;;  %8361 = vst [vmem:[#allocation68_spill] sm:$0xff] %v6348_v56  ;;  %v1407_v13 = vmul.f32 %v6109_v47, %v8204_v37  ;;  %v1565_v60 = vmul.f32 %v6101_v2, %v8204_v37  ;;  %v1592_v17 = vmul.f32 %v6101_v2, %v8362_v19  ;;  %v1573_v30 = vmul.f32 %v5687_v45, %v8366_v50 }
 0x24f   : > { %v1812_v11 = vsel %vm509_vm5, %v1746_v51, %v6332_v27  ;;  %v1916_v52 = vmul.f32 %v1823_v44, %v1644_v40  ;;  %v1538_v23 = vmul.f32 %v1490_v43, %v8365_v49  ;;  %v1434_v44 = vmul.f32 %v6109_v47, %v8362_v19 }
 0x250   : > { %v1899_v55 = vmul.f32 %v1812_v11, %v1627_v29  ;;  %v1617_v29 = vadd.f32 %v6128_v24, %v1562_v36  ;;  %v1459_v11 = vadd.f32 %v6139_v6, %v1404_v0  ;;  %v1415_v0 = vmul.f32 %v8266_v8, %v8366_v50 }
 0x251   : > { %v1417_v40 = vmul.f32 %v6026_v3, %v4473_v35  ;;  %v1462_v58 = vadd.f32 %v6139_v6, %v1407_v13  ;;  %v8371_v13 = vld [vmem:[#allocation34_spill] sm:$0xff]  ;;  %v1489_v49 = vadd.f32 %v6139_v6, %v1434_v44 }
 0x252   : > { %v6350_v51 = vadd.f32 %v1899_v55, %v1517_v62  ;;  %v1889_v34 = vmul.f32 %v1805_v20, %v1617_v29  ;;  %v1486_v55 = vadd.f32 %v6139_v6, %v1431_v22  ;;  %v1507_v62 = vmul.f32 %v1459_v11, %v8364_v39  ;;  %v8367_v20 = vld [vmem:[#allocation9_spill] sm:$0xff] }
 0x253   : > { %v6396_v22 = vadd.f32 %v1920_v59, %v1538_v23  ;;  %v1807_v11 = vsel %vm509_vm5, %v6116_v5, %v6249_v54  ;;  %v1620_v39 = vadd.f32 %v6128_v24, %v1565_v60  ;;  %v1418_v5 = vmul.f32 %v8266_v8, %v8371_v13 }
 0x254   : > { %2288 = vrot.lane.b32.xlu0 %v6348_v56, %s3867_s30  ;;  %2252 = vrot.lane.b32.xlu1 %v6350_v51, %s3867_s30  ;;  %v1534_v33 = vmul.f32 %v1486_v55, %v8367_v20  ;;  %v6394_v29 = vadd.f32 %v1889_v34, %v1507_v62  ;;  %v8370_v34 = vld [vmem:[#allocation69_spill] sm:$0xff]  ;;  %v1647_v62 = vadd.f32 %v6128_v24, %v1592_v17  ;;  %v8376_v56 = vld [vmem:[#allocation95_spill] sm:$0xff] }
 0x255   : > { %2226 = vrot.lane.b32.xlu2 %v6361_v18, %s3867_s30  ;;  %8369 = vst [vmem:[#allocation54_spill] sm:$0xff] %v6396_v22  ;;  %v1437_v59 = vmul.f32 %v6109_v47, %v8370_v34  ;;  %v1470_v54 = vadd.f32 %v8273_v28, %v1415_v0  ;;  %v1472_v23 = vadd.f32 %v6040_v46, %v1417_v40 }
 0x256   : > { %v1786_v9 = vpop.permute.xlu1 %1785  ;;  %v6380_v36 = vpop.permute.xlu0 %1757  ;;  %8368 = vst [vmem:[#allocation44_spill] sm:$0xff] %v6394_v29  ;;  %v6408_v55 = vadd.f32 %v1916_v52, %v1534_v33  ;;  %v1892_v52 = vmul.f32 %v1807_v11, %v1620_v39  ;;  %v1595_v20 = vmul.f32 %v6101_v2, %v8370_v34  ;;  %v1439_v33 = vmul.f32 %v8266_v8, %v8290_v31  ;;  %v8372_v11 = vld [vmem:[#allocation74_spill] sm:$0xff]  ;;  %v8373_v39 = vld [vmem:[#allocation84_spill] sm:$0xff] }
 0x257   : > { %v1825_v43 = vsel %vm509_vm5, %v1786_v9, %v6052_v63  ;;  %v1576_v63 = vmul.f32 %v5687_v45, %v8371_v13  ;;  %v1628_v9 = vadd.f32 %v5717_v21, %v1573_v30  ;;  %v1537_v40 = vmul.f32 %v1489_v49, %v5887_v4 }
 0x258   : > { %v1919_v60 = vmul.f32 %v1825_v43, %v1647_v62  ;;  %v1510_v43 = vmul.f32 %v1462_v58, %v8372_v11  ;;  %v8374_v62 = vld [vmem:[#allocation30_spill] sm:$0xff]  ;;  %v1438_v58 = vmul.f32 %v6026_v3, %v8370_v34  ;;  %v1492_v49 = vadd.f32 %v6139_v6, %v1437_v59 }
 0x259   : > { %v1900_v50 = vmul.f32 %v6332_v27, %v1628_v9  ;;  %v1520_v27 = vmul.f32 %v1472_v23, %v5921_v15  ;;  %v1518_v13 = vmul.f32 %v1470_v54, %v8374_v62  ;;  %v1597_v9 = vmul.f32 %v5687_v45, %v8290_v31  ;;  %v8381_v54 = vld [vmem:[#allocation107_spill] sm:$0xff]  ;;  %v8382_v23 = vld [vmem:[#allocation96_spill] sm:$0xff]  ;;  %v8409_v34 = vld [vmem:[#allocation90_spill] sm:$0xff] }
 0x25a   : > { %v6453_v11 = vadd.f32 %v1892_v52, %v1510_v43  ;;  %v1827_v31 = vsel %vm509_vm5, %v8381_v54, %v6338_v7  ;;  %v1494_v52 = vadd.f32 %v8273_v28, %v1439_v33  ;;  %v8383_v43 = vld [vmem:[#allocation99_spill] sm:$0xff]  ;;  %v8387_v54 = vld [vmem:[#allocation86_spill] sm:$0xff] }
 0x25b   : > { %v1948_v15 = vadd.f32 %v1900_v50, %v1518_v13 }
 0x25c   : > { %2232 = vrot.lane.b32.xlu0 %v6394_v29, %s3867_s30  ;;  %2294 = vrot.lane.b32.xlu1 %v6396_v22, %s3867_s30  ;;  %v8375_v22 = vld [vmem:[#allocation42_spill] sm:$0xff]  ;;  %8378 = vst [vmem:[#allocation65_spill] sm:$0xff] %v6453_v11 }
 0x25d   : > { %2286 = vrot.lane.b32.xlu2 %v6408_v55, %s3867_s30  ;;  %v827_v25 = vmul.f32 %v8376_v56, %v8375_v22  ;;  %v8377_v29 = vld [vmem:[#allocation98_spill] sm:$0xff]  ;;  %v1631_v56 = vadd.f32 %v5717_v21, %v1576_v63  ;;  %v1493_v63 = vadd.f32 %v6040_v46, %v1438_v58 }
 0x25e   : > { %v6426_v17 = vpop.permute.xlu1 %1751  ;;  %v6436_v30 = vpop.permute.xlu0 %1763  ;;  %v985_v19 = vmul.f32 %v8377_v29, %v8375_v22  ;;  %v1650_v29 = vadd.f32 %v6128_v24, %v1595_v20  ;;  %v1473_v20 = vadd.f32 %v8273_v28, %v1418_v5 }
 0x25f   : > { %v1814_v0 = vsel %vm509_vm5, %v6426_v17, %v6083_v57  ;;  %v882_v50 = vadd.f32 %v8382_v23, %v827_v25  ;;  %v8388_v23 = vld [vmem:[#allocation64_spill] sm:$0xff] }
 0x260   : > { %v1902_v44 = vmul.f32 %v1814_v0, %v8373_v39  ;;  %v6455_v0 = vadd.f32 %v1919_v60, %v1537_v40  ;;  %v1652_v60 = vadd.f32 %v5717_v21, %v1597_v9  ;;  %v1040_v59 = vadd.f32 %v8383_v43, %v985_v19  ;;  %v8386_v9 = vld [vmem:[#allocation114_spill] sm:$0xff]  ;;  %v8389_v43 = vld [vmem:[#allocation23_spill] sm:$0xff] }
 0x261   : > { %v1903_v39 = vmul.f32 %v6083_v57, %v1631_v56  ;;  %v1540_v19 = vmul.f32 %v1492_v49, %v8387_v54  ;;  %v1541_v58 = vmul.f32 %v1493_v63, %v8388_v23  ;;  %v1521_v5 = vmul.f32 %v1473_v20, %v8389_v43  ;;  %v8392_v56 = vld [vmem:[#allocation53_spill] sm:$0xff] }
 0x262   : > { %8379 = vst [vmem:[#allocation77_spill] sm:$0xff] %v6455_v0  ;;  %v6457_v4 = vadd.f32 %v1902_v44, %v1520_v27  ;;  %v1922_v44 = vmul.f32 %v1827_v31, %v1650_v29  ;;  %v8384_v27 = vld [vmem:[#allocation73_spill] sm:$0xff]  ;;  %v1312_v25 = vmul.f32 %v8386_v9, %v1040_v59  ;;  %v930_v29 = vmul.f32 %v8392_v56, %v882_v50  ;;  %v8398_v9 = vld [vmem:[#allocation26_spill] sm:$0xff] }
 0x263   : > { %v1542_v62 = vmul.f32 %v1494_v52, %v8384_v27  ;;  %v8393_v52 = vld [vmem:[#allocation40_spill] sm:$0xff]  ;;  %v1416_v49 = vmul.f32 %v6109_v47, %v4473_v35  ;;  %v8399_v54 = vld [vmem:[#allocation85_spill] sm:$0xff] }
 0x264   : > { %8380 = vst [vmem:[#allocation63_spill] sm:$0xff] %v6457_v4  ;;  %2292 = vrot.lane.b32.xlu0 %v6455_v0, %s3867_s30  ;;  %2238 = vrot.lane.b32.xlu1 %v6453_v11, %s3867_s30  ;;  %v8390_v11 = vld [vmem:[#allocation83_spill] sm:$0xff]  ;;  %v6498_v59 = vadd.f32 %v1312_v25, %v930_v29  ;;  %v1568_v25 = vmul.f32 %v6101_v2, %v8398_v9 }
 0x265   : > { %2254 = vrot.lane.b32.xlu2 %v1948_v15, %s3867_s30  ;;  %v1471_v20 = vadd.f32 %v6139_v6, %v1416_v49 }
 0x266   : > { %v1796_v40 = vpop.permute.xlu1 %1795  ;;  %v6480_v15 = vpop.permute.xlu0 %1769  ;;  %8396 = vst [vmem:[#allocation55_spill] sm:$0xff] %v6498_v59 }
 0x267   : > { %v1828_v13 = vsel %vm509_vm5, %v6338_v7, %v1796_v40  ;;  %v1924_v33 = vmul.f32 %v1796_v40, %v1652_v60  ;;  %8385 = vst [vmem:[#allocation57_spill] sm:$0xff] %v6480_v15  ;;  %v1420_v7 = vmul.f32 %v6026_v3, %v8393_v52  ;;  %v1951_v60 = vadd.f32 %v1903_v39, %v1521_v5 }
 0x268   : > { %v1923_v57 = vmul.f32 %v1828_v13, %v8390_v11  ;;  %v6492_v40 = vadd.f32 %v1922_v44, %v1540_v19  ;;  %v1574_v11 = vmul.f32 %v6101_v2, %v4473_v35  ;;  %v8397_v13 = vld [vmem:[#allocation8_spill] sm:$0xff] }
 0x269   : > { %v6487_v31 = vadd.f32 %v1924_v33, %v1542_v62  ;;  %v1475_v50 = vadd.f32 %v6040_v46, %v1420_v7  ;;  %v1410_v7 = vmul.f32 %v6109_v47, %v8398_v9 }
 0x26a   : > { %8394 = vst [vmem:[#allocation43_spill] sm:$0xff] %v6492_v40  ;;  %v6494_v27 = vadd.f32 %v1923_v57, %v1541_v58  ;;  %v1629_v44 = vadd.f32 %v6128_v24, %v1574_v11  ;;  %v8400_v58 = vld [vmem:[#allocation36_spill] sm:$0xff]  ;;  %v8401_v57 = vld [vmem:[#allocation41_spill] sm:$0xff]  ;;  %v8403_v11 = vld [vmem:[#allocation94_spill] sm:$0xff] }
 0x26b   : > { %8391 = vst [vmem:[#allocation16_spill] sm:$0xff] %v6487_v31  ;;  %v1523_v33 = vmul.f32 %v1475_v50, %v8397_v13  ;;  %v1519_v43 = vmul.f32 %v1471_v20, %v8400_v58  ;;  %v1424_v56 = vmul.f32 %v8266_v8, %v8401_v57  ;;  %v1582_v29 = vmul.f32 %v5687_v45, %v8401_v57  ;;  %v8404_v50 = vld [vmem:[#allocation75_spill] sm:$0xff] }
 0x26c   : > { %8395 = vst [vmem:[#allocation103_spill] sm:$0xff] %v6494_v27  ;;  %2260 = vrot.lane.b32.xlu0 %v1951_v60, %s3867_s30  ;;  %2298 = vrot.lane.b32.xlu1 %v6492_v40, %s3867_s30  ;;  %v1423_v60 = vmul.f32 %v6026_v3, %v8375_v22  ;;  %v8407_v57 = vld [vmem:[#allocation127_spill] sm:$0xff] }
 0x26d   : > { %1761 = vrot.lane.b32.xlu2 %v6498_v59, %s3867_s30  ;;  %v1637_v13 = vadd.f32 %v5717_v21, %v1582_v29 }
 0x26e   : > { %v1760_v63 = vpop.permute.xlu1 %1759  ;;  %v1750_v62 = vpop.permute.xlu0 %1749 }
 0x26f   : > { %v1816_v39 = vsel %vm509_vm5, %v6380_v36, %v1760_v63  ;;  %v1813_v23 = vsel %vm509_vm5, %v1750_v62, %v6426_v17  ;;  %v1809_v17 = vsel %vm509_vm5, %v8404_v50, %v8403_v11  ;;  %v1479_v62 = vadd.f32 %v8273_v28, %v1424_v56  ;;  %v8408_v50 = vld [vmem:[#allocation76_spill] sm:$0xff] }
 0x270   : > { %v1905_v19 = vmul.f32 %v1816_v39, %v8399_v54  ;;  %v1901_v5 = vmul.f32 %v1813_v23, %v1629_v44  ;;  %v1623_v39 = vadd.f32 %v6128_v24, %v1568_v25  ;;  %v8405_v44 = vld [vmem:[#allocation33_spill] sm:$0xff]  ;;  %v1478_v54 = vadd.f32 %v6040_v46, %v1423_v60  ;;  %v8406_v25 = vld [vmem:[#allocation79_spill] sm:$0xff] }
 0x271   : > { %v1527_v58 = vmul.f32 %v1479_v62, %v8406_v25 }
 0x272   : > { %v6527_v49 = vadd.f32 %v1905_v19, %v1523_v33  ;;  %v6532_v20 = vadd.f32 %v1901_v5, %v1519_v43  ;;  %v1465_v33 = vadd.f32 %v6139_v6, %v1410_v7  ;;  %v1895_v19 = vmul.f32 %v1809_v17, %v1623_v39 }
 0x273   : > { %v1526_v40 = vmul.f32 %v1478_v54, %v8408_v50  ;;  %v8416_v50 = vld [vmem:[#allocation18_spill] sm:$0xff] }
 0x274   : > { %8402 = vst [vmem:[#allocation116_spill] sm:$0xff] %v6527_v49  ;;  %1767 = vrot.lane.b32.xlu0 %v8405_v44, %s3867_s30  ;;  %2264 = vrot.lane.b32.xlu1 %v6527_v49, %s3867_s30  ;;  %v1513_v11 = vmul.f32 %v1465_v33, %v8407_v57  ;;  %v8410_v44 = vld [vmem:[#allocation39_spill] sm:$0xff] }
 0x275   : > { %2258 = vrot.lane.b32.xlu2 %v6457_v4, %s3867_s30  ;;  %v1579_v29 = vmul.f32 %v5687_v45, %v8410_v44  ;;  %v8411_v49 = vld [vmem:[#allocation51_spill] sm:$0xff]  ;;  %v1421_v62 = vmul.f32 %v8266_v8, %v8410_v44 }
 0x276   : > { %v1766_v23 = vpop.permute.xlu1 %1765  ;;  %v1426_v60 = vmul.f32 %v6026_v3, %v8411_v49  ;;  %v6555_v17 = vadd.f32 %v1895_v19, %v1513_v11  ;;  %v6591_v57 = vld [vmem:[%s7737_s4 + $0x1] ss:$4 sm:$0x3] }
 0x277   : > { %v1818_v43 = vsel %vm509_vm5, %v6436_v30, %v1766_v23  ;;  %v1909_v5 = vmul.f32 %v1766_v23, %v1637_v13  ;;  %v1634_v13 = vadd.f32 %v5717_v21, %v1579_v29  ;;  %v1476_v33 = vadd.f32 %v8273_v28, %v1421_v62  ;;  %v8413_v23 = vld [vmem:[#allocation81_spill] sm:$0xff] }
 0x278   : > { %v1908_v56 = vmul.f32 %v1818_v43, %v8409_v34  ;;  %8412 = vst [vmem:[#allocation56_spill] sm:$0xff] %v6555_v17  ;;  %v6567_v34 = vld [vmem:[%s7737_s4] ss:$4 sm:$0x3]  ;;  %v1481_v3 = vadd.f32 %v6040_v46, %v1426_v60  ;;  %v1419_v46 = vmul.f32 %v6109_v47, %v8393_v52  ;;  %v1577_v62 = vmul.f32 %v6101_v2, %v8393_v52 }
 0x279   : > { %v1957_v7 = vadd.f32 %v1909_v5, %v1527_v58  ;;  %v1906_v54 = vmul.f32 %v1760_v63, %v1634_v13  ;;  %v6583_v58 = vperm.slane %v6567_v34, 1  ;;  %v8414_v43 = vld [vmem:[#allocation91_spill] sm:$0xff]  ;;  %v8415_v63 = vld [vmem:[#allocation66_spill] sm:$0xff] }
 0x27a   : > { %v6557_v39 = vadd.f32 %v1908_v56, %v1526_v40  ;;  %v6573_v40 = vpop.permute.xlu2 %2218  ;;  %v1529_v25 = vmul.f32 %v1481_v3, %v8413_v23  ;;  %v1524_v11 = vmul.f32 %v1476_v33, %v8415_v63  ;;  %v6603_v3 = vperm.slane %v6591_v57, 1 }
 0x27b   : > { %v1990_v56 = vmul.f32 %v6583_v58, %v8416_v50  ;;  %v1474_v33 = vadd.f32 %v6139_v6, %v1419_v46  ;;  %v1632_v63 = vadd.f32 %v6128_v24, %v1577_v62  ;;  %v8434_v24 = vld [vmem:[#allocation120_spill] sm:$0xff] }
 0x27c   : > { %2244 = vrot.lane.b32.xlu0 %v6555_v17, %s3867_s30  ;;  %2272 = vrot.lane.b32.xlu1 %v1957_v7, %s3867_s30  ;;  %v8418_v7 = vld [vmem:[#allocation106_spill] sm:$0xff]  ;;  %v1954_v13 = vadd.f32 %v1906_v54, %v1524_v11 }
 0x27d   : > { %2300 = vrot.lane.b32.xlu2 %v6494_v27, %s3867_s30  ;;  %v2096_v60 = vmul.f32 %v8418_v7, %v8416_v50  ;;  %v2027_v23 = vadd.f32 %v6603_v3, %v1990_v56  ;;  %v8420_v17 = vld [vmem:[#allocation14_spill] sm:$0xff]  ;;  %v8422_v56 = vld [vmem:[#allocation11_spill] sm:$0xff] }
 0x27e   : > { %v6575_v44 = vpop.permute.xlu1 %1771  ;;  %v2092_v62 = vmul.f32 %v8418_v7, %v8422_v56 }
 0x27f   : > { %v1820_v19 = vsel %vm509_vm5, %v6480_v15, %v6575_v44  ;;  %v1522_v15 = vmul.f32 %v1474_v33, %v8420_v17 }
 0x280   : > { %v1911_v5 = vmul.f32 %v1820_v19, %v8414_v43  ;;  %v2225_v19 = vpop.permute.xlu0 %2224  ;;  %v8419_v43 = vld [vmem:[#allocation108_spill] sm:$0xff] }
 0x282   : > { %v6596_v29 = vadd.f32 %v1911_v5, %v1529_v25  ;;  %v2133_v25 = vadd.f32 %v8419_v43, %v2096_v60  ;;  %v1986_v60 = vmul.f32 %v6583_v58, %v8422_v56 }
 0x284   : > { %8417 = vst [vmem:[#allocation80_spill] sm:$0xff] %v6596_v29 }
 0x285   : > { %2266 = vrot.lane.b32.xlu2 %v1954_v13, %s3867_s30  ;;  %v8421_v13 = vld [vmem:[#allocation89_spill] sm:$0xff] }
 0x286   : > { %v6609_v5 = vpop.permute.xlu2 %2222  ;;  %v1756_v27 = vpop.permute.xlu1 %1755  ;;  %v2059_v49 = vmul.f32 %v2027_v23, %v8421_v13  ;;  %v8426_v13 = vld [vmem:[#allocation45_spill] sm:$0xff] }
 0x287   : > { %v2309_v54 = vsel %vm509_vm5, %v6609_v5, %v2225_v19  ;;  %v1815_v11 = vsel %vm509_vm5, %v1756_v27, %v6380_v36  ;;  %v2023_v19 = vadd.f32 %v6603_v3, %v1986_v60  ;;  %v2129_v27 = vadd.f32 %v8419_v43, %v2092_v62 }
 0x288   : > { %v2373_v46 = vmul.f32 %v2309_v54, %v2133_v25  ;;  %v1904_v52 = vmul.f32 %v1815_v11, %v1632_v63  ;;  %v8424_v25 = vld [vmem:[#allocation48_spill] sm:$0xff] }
 0x289   : > { %v1588_v63 = vmul.f32 %v5687_v45, %v8424_v25  ;;  %v1430_v54 = vmul.f32 %v8266_v8, %v8424_v25 }
 0x28a   : > { %v2405_v4 = vadd.f32 %v2373_v46, %v2059_v49  ;;  %v6620_v35 = vadd.f32 %v1904_v52, %v1522_v15  ;;  %v8425_v49 = vld [vmem:[#allocation72_spill] sm:$0xff] }
 0x28b   : > { %v2055_v15 = vmul.f32 %v2023_v19, %v8425_v49  ;;  %v1485_v46 = vadd.f32 %v8273_v28, %v1430_v54  ;;  %v8427_v19 = vld [vmem:[#allocation62_spill] sm:$0xff] }
 0x28c   : > { %8423 = vst [vmem:[#allocation82_spill] sm:$0xff] %v6620_v35  ;;  %2794 = vrot.lane.b32.xlu1 %v2405_v4, %s3865_s27  ;;  %v1643_v4 = vadd.f32 %v5717_v21, %v1588_v63  ;;  %v1992_v63 = vmul.f32 %v6583_v58, %v8329_v48 }
 0x28e   : > { %v2213_v36 = vpop.permute.xlu1 %2212  ;;  %v2211_v17 = vpop.permute.xlu0 %2210  ;;  %v1915_v60 = vmul.f32 %v6028_v38, %v1643_v4  ;;  %v2029_v38 = vadd.f32 %v6603_v3, %v1992_v63 }
 0x28f   : > { %v2305_v33 = vsel %vm509_vm5, %v2211_v17, %v2213_v36  ;;  %v2209_v23 = vpop.permute.xlu2 %2208 }
 0x290   : > { %v2369_v52 = vmul.f32 %v2305_v33, %v2129_v27  ;;  %v1533_v27 = vmul.f32 %v1485_v46, %v8427_v19  ;;  %v8428_v46 = vld [vmem:[#allocation97_spill] sm:$0xff] }
 0x292   : > { %v2401_v11 = vadd.f32 %v2369_v52, %v2055_v15  ;;  %v1963_v33 = vadd.f32 %v1915_v60, %v1533_v27  ;;  %v2098_v15 = vmul.f32 %v8418_v7, %v8329_v48  ;;  %v2061_v60 = vmul.f32 %v2029_v38, %v8428_v46 }
 0x293   : > { %v6661_v27 = vperm.slane %v6567_v34, 0 }
 0x294   : > { %2290 = vrot.lane.b32.xlu1 %v8426_v13, %s3867_s30  ;;  %2786 = vrot.lane.b32.xlu2 %v2401_v11, %s3865_s27  ;;  %v2135_v54 = vadd.f32 %v8419_v43, %v2098_v15  ;;  %v2100_v15 = vmul.f32 %v8418_v7, %v8338_v32 }
 0x296   : > { %v2231_v62 = vpop.permute.xlu1 %2230  ;;  %v2137_v46 = vadd.f32 %v8419_v43, %v2100_v15  ;;  %v1996_v15 = vmul.f32 %v6583_v58, %v8204_v37 }
 0x297   : > { %v6639_v36 = vpop.permute.xlu2 %2214 }
 0x29c   : > { %2284 = vrot.lane.b32.xlu2 %v1963_v33, %s3867_s30  ;;  %v1994_v33 = vmul.f32 %v6583_v58, %v8338_v32  ;;  %v8433_v32 = vld [vmem:[#allocation117_spill] sm:$0xff] }
 0x29d   : > { %v2091_v59 = vmul.f32 %v8433_v32, %v8422_v56 }
 0x29e   : > { %v2237_v25 = vpop.permute.xlu1 %2236  ;;  %v2031_v38 = vadd.f32 %v6603_v3, %v1994_v33 }
 0x29f   : > { %v6643_v49 = vpop.permute.xlu2 %2220 }
 0x2a4   : > { %2250 = vrot.lane.b32.xlu2 %v6276_v16, %s3867_s30  ;;  %v6671_v16 = vperm.slane %v6591_v57, 0 }
 0x2a6   : > { %v2243_v52 = vpop.permute.xlu1 %2242  ;;  %v6653_v11 = vpop.permute.xlu0 %2228 }
 0x2a7   : > { %v2311_v4 = vsel %vm509_vm5, %v6653_v11, %v2231_v62  ;;  %v6657_v13 = vpop.permute.xlu2 %2282  ;;  %v1985_v62 = vmul.f32 %v6661_v27, %v8422_v56  ;;  %v2304_v56 = vsel %vm509_vm5, %v2209_v23, %v2211_v17  ;;  %v8435_v17 = vld [vmem:[#allocation47_spill] sm:$0xff]  ;;  %v8436_v23 = vld [vmem:[#allocation70_spill] sm:$0xff] }
 0x2a8   : > { %v2375_v19 = vmul.f32 %v2311_v4, %v2135_v54  ;;  %v8429_v54 = vld [vmem:[#allocation50_spill] sm:$0xff] }
 0x2a9   : > { %v1427_v34 = vmul.f32 %v8266_v8, %v8429_v54  ;;  %v1585_v57 = vmul.f32 %v5687_v45, %v8429_v54  ;;  %v8432_v8 = vld [vmem:[#allocation67_spill] sm:$0xff]  ;;  %v2022_v54 = vadd.f32 %v6671_v16, %v1985_v62 }
 0x2aa   : > { %v2407_v63 = vadd.f32 %v2375_v19, %v2061_v60  ;;  %v8431_v19 = vld [vmem:[#allocation19_spill] sm:$0xff]  ;;  %v2063_v31 = vmul.f32 %v2031_v38, %v8432_v8 }
 0x2ab   : > { %v1988_v35 = vmul.f32 %v6583_v58, %v8431_v19  ;;  %v2093_v29 = vmul.f32 %v8433_v32, %v8431_v19  ;;  %v2094_v45 = vmul.f32 %v8418_v7, %v8431_v19  ;;  %v1482_v8 = vadd.f32 %v8273_v28, %v1427_v34  ;;  %v8437_v34 = vld [vmem:[#allocation71_spill] sm:$0xff] }
 0x2ac   : > { %2798 = vrot.lane.b32.xlu2 %v2407_v63, %s3865_s27  ;;  %v1987_v63 = vmul.f32 %v6661_v27, %v8431_v19  ;;  %v1640_v37 = vadd.f32 %v5717_v21, %v1585_v57  ;;  %v2128_v7 = vadd.f32 %v8434_v24, %v2091_v59  ;;  %v2095_v28 = vmul.f32 %v8433_v32, %v8416_v50 }
 0x2ad   : > { %v2130_v21 = vadd.f32 %v8434_v24, %v2093_v29  ;;  %v1530_v59 = vmul.f32 %v1482_v8, %v8437_v34 }
 0x2ae   : > { %v6676_v4 = vpop.permute.xlu1 %2248  ;;  %v6679_v60 = vpop.permute.xlu0 %2234  ;;  %v2024_v38 = vadd.f32 %v6671_v16, %v1987_v63  ;;  %v2368_v19 = vmul.f32 %v2304_v56, %v2128_v7  ;;  %v1989_v56 = vmul.f32 %v6661_v27, %v8416_v50  ;;  %v2132_v50 = vadd.f32 %v8434_v24, %v2095_v28 }
 0x2af   : > { %8430 = vst [vmem:[#allocation15_spill] sm:$0xff] %v6679_v60  ;;  %v2313_v33 = vsel %vm509_vm5, %v6679_v60, %v2237_v25  ;;  %v6689_v0 = vpop.permute.xlu2 %2226  ;;  %v1998_v25 = vmul.f32 %v6583_v58, %v8398_v9  ;;  %v2097_v28 = vmul.f32 %v8433_v32, %v8329_v48 }
 0x2b0   : > { %v2377_v6 = vmul.f32 %v2313_v33, %v2137_v46  ;;  %v2025_v46 = vadd.f32 %v6603_v3, %v1988_v35  ;;  %v2033_v33 = vadd.f32 %v6603_v3, %v1996_v15  ;;  %v2054_v35 = vmul.f32 %v2022_v54, %v8435_v17 }
 0x2b1   : > { %v2056_v62 = vmul.f32 %v2024_v38, %v8436_v23  ;;  %v8438_v38 = vld [vmem:[#allocation111_spill] sm:$0xff] }
 0x2b2   : > { %v2409_v60 = vadd.f32 %v2377_v6, %v2063_v31  ;;  %v1912_v6 = vmul.f32 %v6575_v44, %v1640_v37  ;;  %v2131_v31 = vadd.f32 %v8419_v43, %v2094_v45  ;;  %v2057_v57 = vmul.f32 %v2025_v46, %v6265_v42 }
 0x2b3   : > { %v2065_v15 = vmul.f32 %v2033_v33, %v6267_v26  ;;  %v2009_v42 = vmul.f32 %v6661_v27, %v8346_v41  ;;  %v6738_v46 = vadd.f32 %v2368_v19, %v2054_v35  ;;  %v2308_v33 = vsel %vm509_vm5, %v6643_v49, %v6609_v5 }
 0x2b4   : > { %2802 = vrot.lane.b32.xlu1 %v2409_v60, %s3865_s27  ;;  %2256 = vrot.lane.b32.xlu2 %v6532_v20, %s3867_s30  ;;  %v2372_v35 = vmul.f32 %v2308_v33, %v2132_v50  ;;  %v1580_v50 = vmul.f32 %v6101_v2, %v8375_v22 }
 0x2b5   : > { %v2046_v17 = vadd.f32 %v6671_v16, %v2009_v42 }
 0x2b6   : > { %v2217_v60 = vpop.permute.xlu1 %2216  ;;  %v6721_v63 = vpop.permute.xlu0 %2240 }
 0x2b7   : > { %v2306_v37 = vsel %vm509_vm5, %v6639_v36, %v2217_v60  ;;  %v2307_v44 = vsel %vm509_vm5, %v2217_v60, %v6573_v40  ;;  %v2315_v29 = vsel %vm509_vm5, %v6721_v63, %v2243_v52  ;;  %v2287_v43 = vpop.permute.xlu2 %2286  ;;  %v1960_v36 = vadd.f32 %v1912_v6, %v1530_v59 }
 0x2b8   : > { %v2370_v45 = vmul.f32 %v2306_v37, %v2130_v21  ;;  %v2371_v54 = vmul.f32 %v2307_v44, %v2131_v31  ;;  %v2379_v8 = vmul.f32 %v2315_v29, %v8438_v38  ;;  %v2115_v40 = vmul.f32 %v8433_v32, %v8346_v41  ;;  %v8439_v37 = vld [vmem:[#allocation112_spill] sm:$0xff] }
 0x2b9   : > { %v2026_v6 = vadd.f32 %v6671_v16, %v1989_v56  ;;  %v2035_v31 = vadd.f32 %v6603_v3, %v1998_v25  ;;  %v2078_v60 = vmul.f32 %v2046_v17, %v6308_v12  ;;  %v1991_v29 = vmul.f32 %v6661_v27, %v8329_v48 }
 0x2ba   : > { %v6740_v52 = vadd.f32 %v2370_v45, %v2056_v62  ;;  %v2403_v7 = vadd.f32 %v2371_v54, %v2057_v57  ;;  %v6742_v26 = vadd.f32 %v2379_v8, %v2065_v15  ;;  %v2152_v23 = vadd.f32 %v8434_v24, %v2115_v40 }
 0x2bb   : > { %v2058_v49 = vmul.f32 %v2026_v6, %v6278_v61  ;;  %v2067_v19 = vmul.f32 %v2035_v31, %v6136_v10  ;;  %v2000_v61 = vmul.f32 %v6583_v58, %v4496_v53  ;;  %v2011_v15 = vmul.f32 %v6661_v27, %v8353_v14 }
 0x2bc   : > { %v3641_v21 = vpack.i.bf16 %v6740_v52, %v6738_v46  ;;  %2790 = vrot.lane.b32.xlu0 %v2403_v7, %s3865_s27  ;;  %2278 = vrot.lane.b32.xlu1 %v1960_v36, %s3867_s30  ;;  %v2117_v10 = vmul.f32 %v8433_v32, %v8353_v14  ;;  %v2310_v12 = vsel %vm509_vm5, %v6689_v0, %v6653_v11  ;;  %v8450_v46 = vld [vmem:[#allocation77_spill] sm:$0xff] }
 0x2bd   : > { %v2404_v45 = vadd.f32 %v2372_v35, %v2058_v49  ;;  %v2134_v38 = vadd.f32 %v8434_v24, %v2097_v28  ;;  %v2028_v48 = vadd.f32 %v6671_v16, %v1991_v29  ;;  %v2037_v56 = vadd.f32 %v6603_v3, %v2000_v61  ;;  %v8440_v35 = vld [vmem:[#allocation118_spill] sm:$0xff] }
 0x2be   : > { %v2281_v62 = vpop.permute.xlu1 %2280  ;;  %v6756_v5 = vpop.permute.xlu0 %2246  ;;  %v2048_v42 = vadd.f32 %v6671_v16, %v2011_v15  ;;  %v2154_v0 = vadd.f32 %v8434_v24, %v2117_v10  ;;  %v6838_v15 = vld [vmem:[%s7738_s5 + $0x100] sm:$0xff]  ;;  %v8445_v10 = vld [vmem:[#allocation29_spill] sm:$0xff] }
 0x2bf   : > { %v2328_v34 = vsel %vm509_vm5, %v2281_v62, %v6657_v13  ;;  %v2317_v25 = vsel %vm509_vm5, %v6756_v5, %v6676_v4  ;;  %v2255_v59 = vpop.permute.xlu2 %2254  ;;  %v2374_v36 = vmul.f32 %v2310_v12, %v2134_v38  ;;  %v2060_v7 = vmul.f32 %v2028_v48, %v6361_v18  ;;  %v8446_v48 = vld [vmem:[#allocation60_spill] sm:$0xff] }
 0x2c0   : > { %v2392_v57 = vmul.f32 %v2328_v34, %v2152_v23  ;;  %v2381_v44 = vmul.f32 %v2317_v25, %v8439_v37  ;;  %v2069_v31 = vmul.f32 %v2037_v56, %v6350_v51  ;;  %v2080_v17 = vmul.f32 %v2048_v42, %v6408_v55  ;;  %v6816_v51 = vld [vmem:[%s7738_s5 + $0x110] sm:$0xff]  ;;  %v8443_v37 = vld [vmem:[#allocation92_spill] sm:$0xff] }
 0x2c1   : > { %v1422_v18 = vmul.f32 %v6109_v47, %v8375_v22  ;;  %v2406_v49 = vadd.f32 %v2374_v36, %v2060_v7  ;;  %v2099_v12 = vmul.f32 %v8433_v32, %v8445_v10  ;;  %v2013_v56 = vmul.f32 %v6661_v27, %v8446_v48 }
 0x2c2   : > { %v2424_v54 = vadd.f32 %v2392_v57, %v2078_v60  ;;  %v6775_v4 = vadd.f32 %v2381_v44, %v2067_v19  ;;  %v8442_v60 = vld [vmem:[#allocation80_spill] sm:$0xff]  ;;  %v2119_v36 = vmul.f32 %v8433_v32, %v8446_v48 }
 0x2c3   : > { %v6828_v57 = vld [vmem:[%s7738_s5 + $0x108] sm:$0xff]  ;;  %v1477_v44 = vadd.f32 %v8443_v37, %v1422_v18 }
 0x2c4   : > { %v3646_v8 = vpack.i.bf16 %v2424_v54, %v2404_v45  ;;  %2270 = vrot.lane.b32.xlu0 %v6557_v39, %s3867_s30  ;;  %2296 = vrot.lane.b32.xlu1 %v6306_v1, %s3867_s30  ;;  %v8444_v45 = vld [vmem:[#allocation55_spill] sm:$0xff]  ;;  %v8449_v18 = vld [vmem:[#allocation44_spill] sm:$0xff] }
 0x2c5   : > { %v1525_v54 = vmul.f32 %v1477_v44, %v8444_v45 }
 0x2c6   : > { %v6790_v40 = vpop.permute.xlu1 %2252  ;;  %v6793_v11 = vpop.permute.xlu0 %2288  ;;  %3647 = vrot.lane.b32.xlu2 %v3646_v8, %s3865_s27  ;;  %v1993_v8 = vmul.f32 %v6661_v27, %v8445_v10  ;;  %v8452_v10 = vld [vmem:[#allocation63_spill] sm:$0xff] }
 0x2c7   : > { %v2319_v1 = vsel %vm509_vm5, %v6790_v40, %v2255_v59  ;;  %v2330_v33 = vsel %vm509_vm5, %v2287_v43, %v6793_v11  ;;  %v1762_v6 = vpop.permute.xlu2 %1761  ;;  %v6811_v43 = vld [vmem:[%s7738_s5 + $0x118] sm:$0xff] }
 0x2c8   : > { %v2383_v23 = vmul.f32 %v2319_v1, %v8440_v35  ;;  %v2394_v62 = vmul.f32 %v2330_v33, %v2154_v0  ;;  %v1817_v55 = vsel %vm509_vm5, %v1762_v6, %v6436_v30  ;;  %3122 = vmatpush.msra.mxu2 %v6811_v43  ;;  %v8441_v59 = vld [vmem:[#allocation78_spill] sm:$0xff]  ;;  %v8447_v0 = vld [vmem:[#allocation15_spill] sm:$0xff]  ;;  %v2136_v1 = vadd.f32 %v8434_v24, %v2099_v12 }
 0x2c9   : > { %v1635_v19 = vadd.f32 %v8441_v59, %v1580_v50  ;;  %v2030_v33 = vadd.f32 %v6671_v16, %v1993_v8  ;;  %v2050_v50 = vadd.f32 %v6671_v16, %v2013_v56  ;;  %v8453_v8 = vld [vmem:[#allocation121_spill] sm:$0xff] }
 0x2ca   : > { %v2415_v28 = vadd.f32 %v2383_v23, %v2069_v31  ;;  %v2426_v34 = vadd.f32 %v2394_v62, %v2080_v17  ;;  %3123 = vmatpush.msra.mxu2 %v6816_v51  ;;  %v2156_v17 = vadd.f32 %v8434_v24, %v2119_v36  ;;  %v8448_v23 = vld [vmem:[#allocation16_spill] sm:$0xff] }
 0x2cb   : > { %v1907_v30 = vmul.f32 %v1817_v55, %v1635_v19  ;;  %v2082_v52 = vmul.f32 %v2050_v50, %v8450_v46 }
 0x2cc   : > { %v3651_v25 = vpack.i.bf16 %v2426_v34, %v2406_v49  ;;  %2276 = vrot.lane.b32.xlu0 %v8442_v60, %s3867_s30  ;;  %2814 = vrot.lane.b32.xlu1 %v2415_v28, %s3865_s27  ;;  %v2062_v49 = vmul.f32 %v2030_v33, %v8449_v18  ;;  %v8451_v28 = vld [vmem:[#allocation35_spill] sm:$0xff] }
 0x2cd   : > { %3124 = vmatpush.msra.mxu2 %v6828_v57  ;;  %v6851_v42 = vadd.f32 %v1907_v30, %v1525_v54  ;;  %v2002_v34 = vmul.f32 %v6583_v58, %v8451_v28 }
 0x2ce   : > { %v6832_v61 = vpop.permute.xlu1 %2294  ;;  %v2233_v29 = vpop.permute.xlu0 %2232  ;;  %3652 = vrot.lane.b32.xlu2 %v3651_v25, %s3865_s27 }
 0x2cf   : > { %v6844_v38 = vpop.permute.xlu2 %2258  ;;  %3125 = vmatpush.msra.mxu2 %v6838_v15  ;;  %v2312_v7 = vsel %vm509_vm5, %v2233_v29, %v8447_v0  ;;  %v2039_v30 = vadd.f32 %v6603_v3, %v2002_v34  ;;  %v8454_v0 = vld [vmem:[#allocation40_spill] sm:$0xff]  ;;  %v8459_v34 = vld [vmem:[#allocation33_spill] sm:$0xff] }
 0x2d0   : > { %v2376_v6 = vmul.f32 %v2312_v7, %v2136_v1  ;;  %v2004_v7 = vmul.f32 %v6583_v58, %v8454_v0  ;;  %v8455_v1 = vld [vmem:[#allocation51_spill] sm:$0xff] }
 0x2d1   : > { %v2071_v12 = vmul.f32 %v2039_v30, %v8452_v10  ;;  %v1425_v33 = vmul.f32 %v6109_v47, %v8455_v1  ;;  %v2926_v10 = vld [vmem:[%s7738_s5 + $0x70] sm:$0xff] }
 0x2d2   : > { %v6877_v55 = vadd.f32 %v2376_v6, %v2062_v49  ;;  %v2927_v6 = vld [vmem:[%s7738_s5 + $0x78] sm:$0xff]  ;;  %v8457_v49 = vld [vmem:[#allocation116_spill] sm:$0xff] }
 0x2d3   : > { %3413 = vmatpush.msra.mxu3 %v2927_v6  ;;  %2980 = vmatpush.msra.mxu0 %v2927_v6  ;;  %v2923_v6 = vld [vmem:[%s7738_s5 + $0x58] sm:$0xff] }
 0x2d4   : > { %2268 = vrot.lane.b32.xlu1 %v6851_v42, %s3867_s30  ;;  %3642 = vrot.lane.b32.xlu0 %v3641_v21, %s3865_s27 }
 0x2d5   : > { %3414 = vmatpush.msra.mxu3 %v2926_v10  ;;  %2981 = vmatpush.msra.mxu0 %v2926_v10 }
 0x2d6   : > { %v6866_v31 = vpop.permute.xlu1 %2238  ;;  %v2293_v35 = vpop.permute.xlu0 %2292  ;;  %2302 = vrot.lane.b32.xlu2 %v8448_v23, %s3867_s30  ;;  %v1480_v23 = vadd.f32 %v8443_v37, %v1425_v33 }
 0x2d7   : > { %v2332_v62 = vsel %vm509_vm5, %v2293_v35, %v6832_v61  ;;  %v6881_v19 = vpop.permute.xlu2 %2300 }
 0x2d8   : > { %v2396_v21 = vmul.f32 %v2332_v62, %v2156_v17  ;;  %v2041_v17 = vadd.f32 %v6603_v3, %v2004_v7  ;;  %v1528_v30 = vmul.f32 %v1480_v23, %v8459_v34  ;;  %v6937_v7 = vld [vmem:[%s3968_s20 + $0x60] sm:$0xff]  ;;  %v2010_v34 = vmul.f32 %v6583_v58, %v8346_v41 }
 0x2d9   : > { %v3387_v33 = vmul.f32 -1.442695, %v6937_v7  ;;  %v8466_v41 = vld [vmem:[#allocation43_spill] sm:$0xff] }
 0x2da   : > { %v6879_v25 = vadd.f32 %v2396_v21, %v2082_v52  ;;  %v2073_v46 = vmul.f32 %v2041_v17, %v8457_v49  ;;  %v8458_v52 = vld [vmem:[#allocation122_spill] sm:$0xff]  ;;  %v8462_v17 = vld [vmem:[#allocation28_spill] sm:$0xff] }
 0x2db   : > { %v2101_v23 = vmul.f32 %v8433_v32, %v8462_v17  ;;  %3666 = vpow2.f32 %v3387_v33 }
 0x2dc   : > { %v3656_v44 = vpack.i.bf16 %v6879_v25, %v6877_v55  ;;  %2806 = vrot.lane.b32.xlu0 %v6742_v26, %s3865_s27  ;;  %v1583_v26 = vmul.f32 %v6101_v2, %v8455_v1  ;;  %v2919_v55 = vld [vmem:[%s7738_s5 + $0x38] sm:$0xff] }
 0x2de   : > { %v2299_v29 = vpop.permute.xlu1 %2298  ;;  %v2261_v45 = vpop.permute.xlu0 %2260  ;;  %v1638_v47 = vadd.f32 %v8441_v59, %v1583_v26  ;;  %v1997_v59 = vmul.f32 %v6661_v27, %v8398_v9  ;;  %v8460_v9 = vld [vmem:[#allocation69_spill] sm:$0xff] }
 0x2df   : > { %v2321_v54 = vsel %vm509_vm5, %v6844_v38, %v2261_v45  ;;  %v2267_v50 = vpop.permute.xlu2 %2266 }
 0x2e0   : > { %v2385_v56 = vmul.f32 %v2321_v54, %v8453_v8  ;;  %v2924_v8 = vld [vmem:[%s7738_s5 + $0x60] sm:$0xff]  ;;  %v2034_v26 = vadd.f32 %v6671_v16, %v1997_v59  ;;  %v2922_v59 = vld [vmem:[%s7738_s5 + $0x50] sm:$0xff] }
 0x2e1   : > { %v3667_v25 = vpop.eup %3666 }
 0x2e2   : > { %v2417_v36 = vadd.f32 %v2385_v56, %v2071_v12  ;;  %v2925_v12 = vld [vmem:[%s7738_s5 + $0x68] sm:$0xff]  ;;  %v2121_v56 = vmul.f32 %v8433_v32, %v8460_v9  ;;  %v1995_v32 = vmul.f32 %v6661_v27, %v8462_v17 }
 0x2e3   : > { %3415 = vmatpush.msra.mxu3 %v2925_v12  ;;  %2982 = vmatpush.msra.mxu0 %v2925_v12 }
 0x2e4   : > { %2818 = vrot.lane.b32.xlu2 %v2417_v36, %s3865_s27  ;;  %2810 = vrot.lane.b32.xlu0 %v6775_v4, %s3865_s27  ;;  %v8456_v4 = vld [vmem:[#allocation57_spill] sm:$0xff]  ;;  %v8461_v36 = vld [vmem:[#allocation82_spill] sm:$0xff] }
 0x2e5   : > { %3416 = vmatpush.msra.mxu3 %v2924_v8  ;;  %2983 = vmatpush.msra.mxu0 %v2924_v8 }
 0x2e6   : > { %v6905_v35 = vpop.permute.xlu1 %2264  ;;  %v1768_v62 = vpop.permute.xlu0 %1767 }
 0x2e7   : > { %v2323_v2 = vsel %vm509_vm5, %v6905_v35, %v2267_v50  ;;  %v1819_v18 = vsel %vm509_vm5, %v1768_v62, %v8456_v4  ;;  %v2334_v4 = vsel %vm509_vm5, %v2299_v29, %v6881_v19  ;;  %3417 = vmatpush.msra.mxu3 %v2923_v6  ;;  %2984 = vmatpush.msra.mxu0 %v2923_v6 }
 0x2e8   : > { %v2387_v21 = vmul.f32 %v2323_v2, %v8458_v52  ;;  %v1910_v45 = vmul.f32 %v1819_v18, %v1638_v47  ;;  %v2015_v47 = vmul.f32 %v6661_v27, %v8460_v9  ;;  %v8463_v18 = vld [vmem:[#allocation56_spill] sm:$0xff] }
 0x2e9   : > { %v2066_v49 = vmul.f32 %v2034_v26, %v8463_v18  ;;  %3418 = vmatpush.msra.mxu3 %v2922_v59  ;;  %2985 = vmatpush.msra.mxu0 %v2922_v59  ;;  %v2047_v26 = vadd.f32 %v6603_v3, %v2010_v34  ;;  %v8469_v18 = vld [vmem:[#allocation124_spill] sm:$0xff] }
 0x2ea   : > { %v2419_v37 = vadd.f32 %v2387_v21, %v2073_v46  ;;  %v6916_v54 = vadd.f32 %v1910_v45, %v1528_v30  ;;  %v8464_v46 = vld [vmem:[#allocation123_spill] sm:$0xff]  ;;  %v2158_v21 = vadd.f32 %v8434_v24, %v2121_v56  ;;  %v2138_v30 = vadd.f32 %v8434_v24, %v2101_v23  ;;  %v6988_v56 = vld [vmem:[%s3968_s20 + $0x68] sm:$0xff] }
 0x2eb   : > { %v2052_v45 = vadd.f32 %v6671_v16, %v2015_v47  ;;  %v2920_v24 = vld [vmem:[%s7738_s5 + $0x40] sm:$0xff]  ;;  %v3388_v33 = vmul.f32 -1.442695, %v6988_v56 }
 0x2ec   : > { %2274 = vrot.lane.b32.xlu1 %v6916_v54, %s3867_s30  ;;  %2822 = vrot.lane.b32.xlu2 %v2419_v37, %s3865_s27  ;;  %v2398_v37 = vmul.f32 %v2334_v4, %v2158_v21  ;;  %v8468_v47 = vld [vmem:[#allocation52_spill] sm:$0xff]  ;;  %v1999_v21 = vmul.f32 %v6661_v27, %v4496_v53 }
 0x2ed   : > { %2262 = vrot.lane.b32.xlu0 %v8461_v36, %s3867_s30  ;;  %v2084_v12 = vmul.f32 %v2052_v45, %v8466_v41  ;;  %3668 = vpow2.f32 %v3388_v33  ;;  %v2916_v34 = vld [vmem:[%s7738_s5 + $0x20] sm:$0xff]  ;;  %v2012_v33 = vmul.f32 %v6583_v58, %v8353_v14  ;;  %s3207_s30 = sshll.u32 %s3204_s14, 4  ;;  %s3208_s30 = int_to_ptr.hbm [resolvable:$true] %s3207_s30 }
 0x2ee   : > { %v2245_v50 = vpop.permute.xlu0 %2244  ;;  %v6950_v2 = vpop.permute.xlu2 %2786  ;;  %v2036_v53 = vadd.f32 %v6671_v16, %v1999_v21  ;;  %v8471_v41 = vld [vmem:[#allocation128_spill] sm:$0xff]  ;;  %s3794_s17 = sshra.s32 %s3208_s30, 4  ;;  %s3795_s17 = int_to_ptr.hbm [resolvable:$true] %s3794_s17 }
 0x2ef   : > { %v2316_v62 = vsel %vm509_vm5, %v2245_v50, %v6756_v5  ;;  %3391 = vmatmul.msk.f32.vlgmr.msra.gmra.mxu2 %vm8465_vm11, %v6950_v2  ;;  %v2314_v5 = vsel %vm509_vm5, %v6866_v31, %v6721_v63  ;;  %v2921_v63 = vld [vmem:[%s7738_s5 + $0x48] sm:$0xff]  ;;  %v2032_v31 = vadd.f32 %v6671_v16, %v1995_v32  ;;  %v6985_v8 = vpop.permute.xlu1 %2272  ;;  %v2430_v17 = vadd.f32 %v2398_v37, %v2084_v12  ;;  %v2915_v37 = vld [vmem:[%s7738_s5 + $0x18] sm:$0xff]  ;;  %s3796_s24 = scalar_lea.hbm %s3795_s17, 128  ;;  %p3801_p5 = scmp.lt.s32.totalorder %s3795_s17, %s7739_s6 }
 0x2f0   : > { %v2380_v52 = vmul.f32 %v2316_v62, %v8464_v46  ;;  %v2378_v10 = vmul.f32 %v2314_v5, %v2138_v30  ;;  %3419 = vmatpush.msra.mxu3 %v2921_v63  ;;  %2986 = vmatpush.msra.mxu0 %v2921_v63  ;;  %v8467_v50 = vld [vmem:[#allocation65_spill] sm:$0xff]  ;;  %v2079_v62 = vmul.f32 %v2047_v26, %v8468_v47  ;;  %v7008_v5 = vadd.f32 1.0, %v3667_v25  ;;  %v8473_v47 = vld [vmem:[#allocation132_spill] sm:$0xff]  ;;  %p3797_p1 = scmp.ne.s32.totalorder %s3795_s17, %s3796_s24  ;;  %p3802_p6 = scmp.lt.s32.totalorder %s3800_s28, %s3796_s24 }
 0x2f1   : > { %v2064_v6 = vmul.f32 %v2032_v31, %v8467_v50  ;;  %v2918_v46 = vld [vmem:[%s7738_s5 + $0x30] sm:$0xff]  ;;  %v2049_v14 = vadd.f32 %v6603_v3, %v2012_v33  ;;  %v2941_v21 = vld [vmem:[%s7738_s5 + $0xe8] sm:$0xff] }
 0x2f2   : > { %v6964_v29 = vadd.f32 %v2380_v52, %v2066_v49  ;;  %3420 = vmatpush.msra.mxu3 %v2920_v24  ;;  %2987 = vmatpush.msra.mxu0 %v2920_v24  ;;  %3670 = vrcp.f32 %v7008_v5  ;;  %v8470_v31 = vld [vmem:[#allocation105_spill] sm:$0xff]  ;;  %vm2681_vm14 = vweird.f32 %v7008_v5  ;;  %v2685_v33 = vand.u32 2147483647, %v7008_v5  ;;  %p3798_p2 = pnand %p3797_p1, %p3946_p4  ;;  %p3803_p7 = por %p3802_p6, %p3801_p5 }
 0x2f3   : > { %v2410_v4 = vadd.f32 %v2378_v10, %v2064_v6  ;;  %v3669_v63 = vpop.eup %3668  ;;  %v2068_v10 = vmul.f32 %v2036_v53, %v8470_v31  ;;  %v2914_v24 = vld [vmem:[%s7738_s5 + $0x10] sm:$0xff]  ;;  %v2912_v6 = vld [vmem:[%s7738_s5] sm:$0xff] }
 0x2f4   : > { %3421 = vmatpush.msra.mxu3 %v2919_v55  ;;  %2988 = vmatpush.msra.mxu0 %v2919_v55  ;;  %v7034_v50 = vadd.f32 1.0, %v3669_v63  ;;  %vm2686_vm8 = vcmp.eq.f32.partialorder %v2685_v33, 8.507059e+37  ;;  %p3799_p3 = pneg %p3798_p2 }
 0x2f5   : > { %3657 = vrot.lane.b32.xlu0 %v3656_v44, %s3865_s27  ;;  %v3661_v52 = vpack.i.bf16 %v2430_v17, %v2410_v4 }
 0x2f6   : > { %v2285_v23 = vpop.permute.xlu2 %2284  ;;  %3422 = vmatpush.msra.mxu3 %v2918_v46  ;;  %2989 = vmatpush.msra.mxu0 %v2918_v46  ;;  %3672 = vrcp.f32 %v7034_v50  ;;  %v2942_v46 = vld [vmem:[%s7738_s5 + $0xf0] sm:$0xff]  ;;  %vm2696_vm10 = vweird.f32 %v7034_v50  ;;  %p3804_p9 = pnand %p3803_p7, %p3799_p3 }
 0x2f7   : > { %v2329_v44 = vsel %vm509_vm5, %v6657_v13, %v2285_v23  ;;  %v2917_v13 = vld [vmem:[%s7738_s5 + $0x28] sm:$0xff] }
 0x2f8   : > { %v2393_v49 = vmul.f32 %v2329_v44, %v8469_v18  ;;  %3423 = vmatpush.msra.mxu3 %v2917_v13  ;;  %2990 = vmatpush.msra.mxu0 %v2917_v13  ;;  %v7041_v17 = vpop.eup %3670  ;;  %v8472_v44 = vld [vmem:[#allocation68_spill] sm:$0xff]  ;;  %v2943_v18 = vld [vmem:[%s7738_s5 + $0xf8] sm:$0xff] }
 0x2f9   : > { %v2677_v4 = vmul.f32 %v7041_v17, %v7008_v5  ;;  %3045 = vmatpush.msra.mxu1 %v2943_v18  ;;  %vm2682_vm9 = vweird.f32 %v7041_v17 }
 0x2fa   : > { %v2425_v32 = vadd.f32 %v2393_v49, %v2079_v62  ;;  %3424 = vmatpush.msra.mxu3 %v2916_v34  ;;  %2991 = vmatpush.msra.mxu0 %v2916_v34  ;;  %vm7092_vm6 = vmor %vm2681_vm14, %vm2682_vm9 }
 0x2fb   : > { %3046 = vmatpush.msra.mxu1 %v2942_v46  ;;  %vm8492_vm9 = vmmov %vm8481_vm1 }
 0x2fc   : > { %2834 = vrot.lane.b32.xlu1 %v2425_v32, %s3865_s27  ;;  %3425 = vmatpush.msra.mxu3 %v2915_v37  ;;  %v7063_v32 = vpop.eup %3672 }
 0x2fd   : > { %3662 = vrot.lane.b32.xlu0 %v3661_v52, %s3865_s27  ;;  %2992 = vmatpush.msra.mxu0 %v2915_v37  ;;  %v2678_v52 = vsub.f32 1.0, %v2677_v4  ;;  %v2692_v63 = vmul.f32 %v7063_v32, %v7034_v50  ;;  %vm2697_vm7 = vweird.f32 %v7063_v32  ;;  %v2935_v4 = vld [vmem:[%s7738_s5 + $0xb8] sm:$0xff] }
 0x2fe   : > { %v7015_v30 = vpop.permute.xlu1 %2794  ;;  %v2251_v45 = vpop.permute.xlu2 %2250  ;;  %3426 = vmatpush.msra.mxu3 %v2914_v24  ;;  %3047 = vmatpush.msra.mxu1 %v2941_v21  ;;  %vm7121_vm0 = vmor %vm2696_vm10, %vm2697_vm7 }
 0x2ff   : > { %v2318_v59 = vsel %vm509_vm5, %v2251_v45, %v6790_v40  ;;  %v2913_v40 = vld [vmem:[%s7738_s5 + $0x8] sm:$0xff]  ;;  %2993 = vmatpush.msra.mxu0 %v2914_v24 }
 0x300   : > { %v2382_v12 = vmul.f32 %v2318_v59, %v8471_v41  ;;  %3427 = vmatpush.msra.mxu3 %v2913_v40  ;;  %v8474_v45 = vld [vmem:[#allocation129_spill] sm:$0xff]  ;;  %v2679_v59 = vmul.f32 %v7041_v17, %v2678_v52  ;;  %v7086_v41 = vld [vmem:[%s3968_s20] sm:$0xff] }
 0x301   : > { %2994 = vmatpush.msra.mxu0 %v2913_v40 }
 0x302   : > { %v2414_v26 = vadd.f32 %v2382_v12, %v2068_v10  ;;  %3428 = vmatpush.msra.mxu3 %v2912_v6  ;;  %v2687_v10 = vand.u32 2147483648, %v7008_v5  ;;  %v3375_v12 = vmul.f32 -1.442695, %v7086_v41  ;;  %v2680_v24 = vadd.f32 %v7041_v17, %v2679_v59 }
 0x303   : > { %2995 = vmatpush.msra.mxu0 %v2912_v6  ;;  %v2938_v6 = vld [vmem:[%s7738_s5 + $0xd0] sm:$0xff] }
 0x304   : > { %3429 = vmatpush.msrb.mxu3 %v2943_v18  ;;  %3674 = vpow2.f32 %v3375_v12  ;;  %v2684_v5 = vsel %vm7092_vm6, %v7041_v17, %v2680_v24 }
 0x305   : > { %2808 = vrot.lane.b32.xlu0 %v6964_v29, %s3865_s27  ;;  %v2081_v29 = vmul.f32 %v2049_v14, %v8472_v44  ;;  %v2688_v14 = vor.u32 1.1754944e-38, %v2687_v10  ;;  %v2936_v44 = vld [vmem:[%s7738_s5 + $0xc0] sm:$0xff] }
 0x306   : > { %v2291_v23 = vpop.permute.xlu1 %2290  ;;  %v7046_v25 = vpop.permute.xlu2 %2798  ;;  %3430 = vmatpush.msrb.mxu3 %v2942_v46  ;;  %v2934_v46 = vld [vmem:[%s7738_s5 + $0xb0] sm:$0xff] }
 0x307   : > { %v2331_v55 = vsel %vm509_vm5, %v6793_v11, %v2291_v23  ;;  %v2001_v11 = vmul.f32 %v6661_v27, %v8451_v28  ;;  %v2689_v17 = vsel %vm2686_vm8, %v2688_v14, %v2684_v5  ;;  %v2929_v14 = vld [vmem:[%s7738_s5 + $0x88] sm:$0xff] }
 0x308   : > { %v2395_v62 = vmul.f32 %v2331_v55, %v8473_v47  ;;  %3431 = vmatpush.msrb.mxu3 %v2941_v21  ;;  %v2937_v55 = vld [vmem:[%s7738_s5 + $0xc8] sm:$0xff]  ;;  %v2748_v21 = vmul.f32 %v6937_v7, %v2689_v17  ;;  %v2932_v7 = vld [vmem:[%s7738_s5 + $0xa0] sm:$0xff] }
 0x309   : > { %v2038_v28 = vadd.f32 %v6671_v16, %v2001_v11 }
 0x30a   : > { %v2427_v49 = vadd.f32 %v2395_v62, %v2081_v29  ;;  %v7110_v29 = vld [vmem:[%s3968_s20 + $0x8] sm:$0xff]  ;;  %v2702_v62 = vand.u32 2147483648, %v7034_v50  ;;  %v3675_v52 = vpop.eup %3674 }
 0x30b   : > { %v2070_v53 = vmul.f32 %v2038_v28, %v6532_v20  ;;  %v2939_v20 = vld [vmem:[%s7738_s5 + $0xd8] sm:$0xff]  ;;  %v3376_v47 = vmul.f32 -1.442695, %v7110_v29 }
 0x30c   : > { %2838 = vrot.lane.b32.xlu1 %v2427_v49, %s3865_s27  ;;  %v2700_v49 = vand.u32 2147483647, %v7034_v50 }
 0x30d   : > { %2812 = vrot.lane.b32.xlu0 %v2414_v26, %s3865_s27  ;;  %v2693_v26 = vsub.f32 1.0, %v2692_v63  ;;  %3676 = vpow2.f32 %v3376_v47 }
 0x30e   : > { %v2257_v13 = vpop.permute.xlu2 %2256  ;;  %vm2701_vm3 = vcmp.eq.f32.partialorder %v2700_v49, 8.507059e+37 }
 0x30f   : > { %v2320_v34 = vsel %vm509_vm5, %v2257_v13, %v6844_v38  ;;  %v2940_v38 = vld [vmem:[%s7738_s5 + $0xe0] sm:$0xff]  ;;  %v2694_v23 = vmul.f32 %v7063_v32, %v2693_v26  ;;  %v2703_v13 = vor.u32 1.1754944e-38, %v2702_v62  ;;  %v7165_v26 = vld [vmem:[%s3968_s20 + $0x18] sm:$0xff] }
 0x310   : > { %v2384_v37 = vmul.f32 %v2320_v34, %v8474_v45  ;;  %3048 = vmatpush.msra.mxu1 %v2940_v38  ;;  %3432 = vmatpush.msrb.mxu3 %v2940_v38  ;;  %v2933_v45 = vld [vmem:[%s7738_s5 + $0xa8] sm:$0xff]  ;;  %v3378_v40 = vmul.f32 -1.442695, %v7165_v26  ;;  %v7188_v62 = vld [vmem:[%s3968_s20 + $0x20] sm:$0xff] }
 0x311   : > { %v2695_v18 = vadd.f32 %v7063_v32, %v2694_v23 }
 0x312   : > { %v2416_v31 = vadd.f32 %v2384_v37, %v2070_v53  ;;  %3049 = vmatpush.msra.mxu1 %v2939_v20  ;;  %3433 = vmatpush.msrb.mxu3 %v2939_v20  ;;  %v7135_v53 = vadd.f32 1.0, %v3675_v52  ;;  %v7144_v37 = vld [vmem:[%s3968_s20 + $0x10] sm:$0xff] }
 0x313   : > { %v2699_v34 = vsel %vm7121_vm0, %v7063_v32, %v2695_v18  ;;  %v3377_v59 = vmul.f32 -1.442695, %v7144_v37  ;;  %v3677_v10 = vpop.eup %3676  ;;  %v2930_v20 = vld [vmem:[%s7738_s5 + $0x90] sm:$0xff]  ;;  %vm8498_vm0 = vmmov %vm8481_vm1 }
 0x314   : > { %3050 = vmatpush.msra.mxu1 %v2938_v6  ;;  %3434 = vmatpush.msrb.mxu3 %v2938_v6  ;;  %v2704_v63 = vsel %vm2701_vm3, %v2703_v13, %v2699_v34  ;;  %3678 = vrcp.f32 %v7135_v53  ;;  %v7160_v24 = vadd.f32 1.0, %v3677_v10  ;;  %v8482_v13 = vld [vmem:[#allocation103_spill] sm:$0xff]  ;;  %vm2501_vm15 = vweird.f32 %v7135_v53 }
 0x315   : > { %2816 = vrot.lane.b32.xlu0 %v2416_v31, %s3865_s27  ;;  %v2931_v31 = vld [vmem:[%s7738_s5 + $0x98] sm:$0xff]  ;;  %3680 = vpow2.f32 %v3377_v59  ;;  %v2749_v12 = vmul.f32 %v6988_v56, %v2704_v63  ;;  %v2928_v56 = vld [vmem:[%s7738_s5 + $0x80] sm:$0xff]  ;;  %v2006_v59 = vmul.f32 %v6583_v58, %v8375_v22 }
 0x316   : > { %3051 = vmatpush.msra.mxu1 %v2937_v55  ;;  %3435 = vmatpush.msrb.mxu3 %v2937_v55  ;;  %3682 = vrcp.f32 %v7160_v24  ;;  %v2016_v55 = vmul.f32 %v6583_v58, %v8460_v9  ;;  %vm2516_vm6 = vweird.f32 %v7160_v24 }
 0x317   : > { %3684 = vpow2.f32 %v3378_v40 }
 0x318   : > { %3052 = vmatpush.msra.mxu1 %v2936_v44  ;;  %3436 = vmatpush.msrb.mxu3 %v2936_v44  ;;  %v2053_v49 = vadd.f32 %v6603_v3, %v2016_v55 }
 0x31a   : > { %3053 = vmatpush.msra.mxu1 %v2935_v4  ;;  %3437 = vmatpush.msrb.mxu3 %v2935_v4  ;;  %v7178_v23 = vpop.eup %3678  ;;  %v3379_v4 = vmul.f32 -1.442695, %v7188_v62  ;;  %v2085_v34 = vmul.f32 %v2053_v49, %v8482_v13 }
 0x31b   : > { %v3681_v44 = vpop.eup %3680  ;;  %v2497_v18 = vmul.f32 %v7178_v23, %v7135_v53  ;;  %vm2502_vm2 = vweird.f32 %v7178_v23 }
 0x31c   : > { %3054 = vmatpush.msra.mxu1 %v2934_v46  ;;  %3438 = vmatpush.msrb.mxu3 %v2934_v46  ;;  %v7195_v9 = vadd.f32 1.0, %v3681_v44  ;;  %v7201_v52 = vpop.eup %3682  ;;  %3686 = vpow2.f32 %v3379_v4  ;;  %v8486_v44 = vld [vmem:[#allocation133_spill] sm:$0xff]  ;;  %vm7262_vm11 = vmor %vm2501_vm15, %vm2502_vm2 }
 0x31d   : > { %v2498_v63 = vsub.f32 1.0, %v2497_v18  ;;  %v8487_v18 = vld [vmem:[#allocation37_spill] sm:$0xff]  ;;  %vm2517_vm8 = vweird.f32 %v7201_v52  ;;  %vm8504_vm2 = vmmov %vm8498_vm0 }
 0x31e   : > { %3055 = vmatpush.msra.mxu1 %v2933_v45  ;;  %3439 = vmatpush.msrb.mxu3 %v2933_v45  ;;  %v8483_v45 = vld [vmem:[#allocation130_spill] sm:$0xff]  ;;  %3688 = vrcp.f32 %v7195_v9  ;;  %vm7307_vm10 = vmor %vm2516_vm6, %vm2517_vm8  ;;  %vm2531_vm3 = vweird.f32 %v7195_v9 }
 0x31f   : > { %vm8506_vm6 = vmmov %vm8498_vm0 }
 0x320   : > { %v7129_v28 = vpop.permute.xlu2 %3647  ;;  %3056 = vmatpush.msra.mxu1 %v2932_v7  ;;  %3440 = vmatpush.msrb.mxu3 %v2932_v7 }
 0x321   : > { %v3650_v50 = vunpack.i.h.bf16 %v7129_v28 }
 0x322   : > { %3057 = vmatpush.msra.mxu1 %v2931_v31  ;;  %3441 = vmatpush.msrb.mxu3 %v2931_v31 }
 0x323   : > { %v2908_v32 = vsel %vm8479_vm13, %v2748_v21, %v3650_v50  ;;  %v2014_v21 = vmul.f32 %v6583_v58, %v8446_v48  ;;  %v2512_v48 = vmul.f32 %v7201_v52, %v7160_v24 }
 0x324   : > { %3032 = vmatmul.f32.vlgmr.msra.gmra.mxu3 %v2908_v32  ;;  %3058 = vmatpush.msra.mxu1 %v2930_v20  ;;  %v3685_v32 = vpop.eup %3684 }
 0x325   : > { %3442 = vmatpush.msrb.mxu3 %v2930_v20  ;;  %v7218_v10 = vadd.f32 1.0, %v3685_v32  ;;  %v2051_v20 = vadd.f32 %v6603_v3, %v2014_v21 }
 0x326   : > { %v7154_v38 = vpop.permute.xlu1 %2802  ;;  %3059 = vmatpush.msra.mxu1 %v2929_v14 }
 0x327   : > { %3443 = vmatpush.msrb.mxu3 %v2929_v14 }
 0x328   : > { %v7162_v33 = vpop.permute.xlu2 %3652  ;;  %3060 = vmatpush.msra.mxu1 %v2928_v56 }
 0x329   : > { %v3655_v6 = vunpack.i.h.bf16 %v7162_v33  ;;  %3444 = vmatpush.msrb.mxu3 %v2928_v56  ;;  %v2499_v56 = vmul.f32 %v7178_v23, %v2498_v63 }
 0x32b   : > { %v2909_v5 = vsel %vm8480_vm4, %v2749_v12, %v3655_v6  ;;  %3445 = vmatpush.msra.mxu3 %v6811_v43  ;;  %v7211_v43 = vld [vmem:[%s3968_s20 + $0x70] sm:$0xff]  ;;  %v2043_v12 = vadd.f32 %v6603_v3, %v2006_v59  ;;  %vm8500_vm4 = vmmov %vm8498_vm0 }
 0x32c   : > { %3035 = vmatmul.f32.gmra.mxu3 %v2909_v5  ;;  %v8485_v5 = vld [vmem:[#allocation54_spill] sm:$0xff] }
 0x32d   : > { %3446 = vmatpush.msra.mxu3 %v6816_v51  ;;  %v2083_v55 = vmul.f32 %v2051_v20, %v8485_v5  ;;  %v7253_v59 = vld [vmem:[%s3968_s20 + $0x30] sm:$0xff] }
 0x32e   : > { %v7183_v47 = vpop.permute.xlu1 %2278  ;;  %v7185_v17 = vpop.permute.xlu0 %2790  ;;  %v3381_v32 = vmul.f32 -1.442695, %v7253_v59  ;;  %v8499_v5 = vld [vmem:[#allocation13_spill] sm:$0xff] }
 0x32f   : > { %3392 = vmatmul.msk.f32.gmra.mxu2 %vm8481_vm1, %v7185_v17  ;;  %3447 = vmatpush.msra.mxu3 %v6828_v57  ;;  %vm8501_vm1 = vmmov %vm8498_vm0 }
 0x330   : > { %v2303_v11 = vpop.permute.xlu2 %2302 }
 0x331   : > { %v2335_v46 = vsel %vm509_vm5, %v6881_v19, %v2303_v11  ;;  %v3389_v19 = vmul.f32 -1.442695, %v7211_v43  ;;  %3448 = vmatpush.msra.mxu3 %v6838_v15  ;;  %v2075_v15 = vmul.f32 %v2043_v12, %v6557_v39  ;;  %v2008_v11 = vmul.f32 %v6583_v58, %v8455_v1 }
 0x332   : > { %v2399_v7 = vmul.f32 %v2335_v46, %v8483_v45  ;;  %v2507_v39 = vand.u32 2147483648, %v7135_v53  ;;  %v2500_v45 = vadd.f32 %v7178_v23, %v2499_v56  ;;  %v2005_v56 = vmul.f32 %v6661_v27, %v8375_v22 }
 0x333   : > { %3690 = vpow2.f32 %v3389_v19  ;;  %v7326_v19 = vld [vmem:[%s3968_s20 + $0x38] sm:$0xff] }
 0x334   : > { %v2431_v31 = vadd.f32 %v2399_v7, %v2085_v34  ;;  %v2505_v34 = vand.u32 2147483647, %v7135_v53  ;;  %v7248_v7 = vld [vmem:[%s3968_s20 + $0x28] sm:$0xff]  ;;  %3692 = vrcp.f32 %v7218_v10 }
 0x335   : > { %v3380_v58 = vmul.f32 -1.442695, %v7248_v7 }
 0x336   : > { %v2297_v51 = vpop.permute.xlu1 %2296  ;;  %v7222_v40 = vpop.permute.xlu0 %2270  ;;  %2846 = vrot.lane.b32.xlu0 %v2431_v31, %s3865_s27  ;;  %vm7282_vm14 = vcmp.eq.f32.partialorder %v2505_v34, 8.507059e+37 }
 0x337   : > { %v2333_v57 = vsel %vm509_vm5, %v6832_v61, %v2297_v51  ;;  %v2325_v14 = vsel %vm509_vm5, %v7222_v40, %v6985_v8  ;;  %3393 = vmatmul.msk.f32.gmra.mxu2 %vm8484_vm12, %v7015_v30  ;;  %v3687_v61 = vpop.eup %3686  ;;  %v2513_v8 = vsub.f32 1.0, %v2512_v48  ;;  %v7269_v48 = vld [vmem:[%s3968_s20 + $0x78] sm:$0xff]  ;;  %3694 = vpow2.f32 %v3380_v58 }
 0x338   : > { %v2397_v4 = vmul.f32 %v2333_v57, %v8486_v44  ;;  %v2389_v49 = vmul.f32 %v2325_v14, %v8487_v18  ;;  %v7242_v46 = vpop.eup %3688  ;;  %v7266_v31 = vadd.f32 1.0, %v3687_v61  ;;  %v3390_v20 = vmul.f32 -1.442695, %v7269_v48 }
 0x339   : > { %v3691_v63 = vpop.eup %3690  ;;  %v2514_v51 = vmul.f32 %v7201_v52, %v2513_v8  ;;  %v2527_v12 = vmul.f32 %v7242_v46, %v7195_v9  ;;  %v2045_v57 = vadd.f32 %v6603_v3, %v2008_v11  ;;  %v2504_v3 = vsel %vm7262_vm11, %v7178_v23, %v2500_v45 }
 0x33a   : > { %v2429_v21 = vadd.f32 %v2397_v4, %v2083_v55  ;;  %v2421_v13 = vadd.f32 %v2389_v49, %v2075_v15  ;;  %v2508_v55 = vor.u32 1.1754944e-38, %v2507_v39  ;;  %v8493_v4 = vld [vmem:[#allocation12_spill] sm:$0xff]  ;;  %v2520_v18 = vand.u32 2147483647, %v7160_v24  ;;  %v7301_v11 = vpop.eup %3692 }
 0x33b   : > { %v2077_v22 = vmul.f32 %v2045_v57, %v8442_v60  ;;  %v2522_v49 = vand.u32 2147483648, %v7160_v24  ;;  %v2528_v61 = vsub.f32 1.0, %v2527_v12  ;;  %v7303_v23 = vadd.f32 1.0, %v3691_v63 }
 0x33c   : > { %2826 = vrot.lane.b32.xlu2 %v2421_v13, %s3865_s27  ;;  %2842 = vrot.lane.b32.xlu1 %v2429_v21, %s3865_s27  ;;  %3696 = vpow2.f32 %v3390_v20  ;;  %v2509_v60 = vsel %vm7282_vm14, %v2508_v55, %v2504_v3  ;;  %v2042_v24 = vadd.f32 %v6671_v16, %v2005_v56  ;;  %vm7314_vm7 = vcmp.eq.f32.partialorder %v2520_v18, 8.507059e+37 }
 0x33d   : > { %3698 = vpow2.f32 %v3381_v32  ;;  %v2523_v34 = vor.u32 1.1754944e-38, %v2522_v49  ;;  %v2736_v39 = vmul.f32 %v7086_v41, %v2509_v60  ;;  %v2529_v58 = vmul.f32 %v7242_v46, %v2528_v61  ;;  %v3695_v41 = vpop.eup %3694 }
 0x33e   : > { %v7276_v14 = vpop.permute.xlu0 %2276  ;;  %v7278_v53 = vpop.permute.xlu1 %2814  ;;  %3700 = vrcp.f32 %v7266_v31  ;;  %v2542_v32 = vmul.f32 %v7301_v11, %v7218_v10  ;;  %v3382_v63 = vmul.f32 -1.442695, %v7326_v19  ;;  %vm2532_vm13 = vweird.f32 %v7242_v46 }
 0x33f   : > { %v2327_v44 = vsel %vm509_vm5, %v7276_v14, %v7183_v47  ;;  %3394 = vmatmul.msk.f32.gmra.mxu2 %vm8492_vm9, %v7046_v25  ;;  %v2515_v47 = vadd.f32 %v7201_v52, %v2514_v51  ;;  %3702 = vrcp.f32 %v7303_v23  ;;  %v2074_v51 = vmul.f32 %v2042_v24, %v6851_v42  ;;  %vm7354_vm12 = vmor %vm2531_vm3, %vm2532_vm13 }
 0x340   : > { %v2391_v15 = vmul.f32 %v2327_v44, %v8493_v4  ;;  %v2535_v42 = vand.u32 2147483647, %v7195_v9  ;;  %v2537_v3 = vand.u32 2147483648, %v7195_v9  ;;  %v2543_v18 = vsub.f32 1.0, %v2542_v32  ;;  %vm8505_vm9 = vmmov %vm8498_vm0 }
 0x341   : > { %v2519_v45 = vsel %vm7307_vm10, %v7201_v52, %v2515_v47  ;;  %v7348_v47 = vadd.f32 1.0, %v3695_v41  ;;  %3704 = vpow2.f32 %v3382_v63  ;;  %vm2546_vm11 = vweird.f32 %v7218_v10 }
 0x342   : > { %v2423_v8 = vadd.f32 %v2391_v15, %v2077_v22  ;;  %v3697_v56 = vpop.eup %3696  ;;  %v2524_v44 = vsel %vm7314_vm7, %v2523_v34, %v2519_v45  ;;  %v2530_v15 = vadd.f32 %v7242_v46, %v2529_v58  ;;  %vm2536_vm15 = vcmp.eq.f32.partialorder %v2535_v42, 8.507059e+37  ;;  %v7372_v45 = vld [vmem:[%s3968_s20 + $0x40] sm:$0xff]  ;;  %vm8509_vm7 = vmmov %vm8498_vm0 }
 0x343   : > { %v3699_v22 = vpop.eup %3698  ;;  %v2737_v21 = vmul.f32 %v7110_v29, %v2524_v44  ;;  %v2538_v24 = vor.u32 1.1754944e-38, %v2537_v3  ;;  %v2544_v34 = vmul.f32 %v7301_v11, %v2543_v18  ;;  %3706 = vrcp.f32 %v7348_v47 }
 0x344   : > { %2830 = vrot.lane.b32.xlu2 %v2423_v8, %s3865_s27  ;;  %v7346_v49 = vpop.eup %3700  ;;  %v2534_v9 = vsel %vm7354_vm12, %v7242_v46, %v2530_v15  ;;  %v3383_v58 = vmul.f32 -1.442695, %v7372_v45  ;;  %vm2547_vm14 = vweird.f32 %v7301_v11  ;;  %v2550_v63 = vand.u32 2147483647, %v7218_v10 }
 0x345   : > { %v7360_v60 = vpop.eup %3702  ;;  %v2539_v46 = vsel %vm2536_vm15, %v2538_v24, %v2534_v9  ;;  %v2545_v41 = vadd.f32 %v7301_v11, %v2544_v34  ;;  %vm7395_vm8 = vmor %vm2546_vm11, %vm2547_vm14  ;;  %vm2561_vm3 = vweird.f32 %v7266_v31  ;;  %vm2562_vm13 = vweird.f32 %v7346_v49 }
 0x346   : > { %v2269_v20 = vpop.permute.xlu1 %2268  ;;  %v3643_v12 = vpop.permute.xlu0 %3642  ;;  %v2707_v29 = vmul.f32 %v7360_v60, %v7303_v23  ;;  %vm2551_vm10 = vcmp.eq.f32.partialorder %v2550_v63, 8.507059e+37  ;;  %v2565_v9 = vand.u32 2147483647, %v7266_v31  ;;  %vm2712_vm12 = vweird.f32 %v7360_v60  ;;  %vm7437_vm15 = vmor %vm2561_vm3, %vm2562_vm13 }
 0x347   : > { %v2324_v57 = vsel %vm509_vm5, %v2269_v20, %v7222_v40  ;;  %v3644_v52 = vunpack.i.l.bf16 %v3643_v12  ;;  %3395 = vmatmul.msk.f32.gmra.mxu2 %vm8498_vm0, %v7154_v38  ;;  %v3645_v13 = vunpack.i.h.bf16 %v3643_v12  ;;  %v2552_v20 = vand.u32 2147483648, %v7218_v10  ;;  %vm8515_vm14 = vmmov %vm8498_vm0 }
 0x348   : > { %v2388_v55 = vmul.f32 %v2324_v57, %v8499_v5  ;;  %v3649_v5 = vunpack.i.l.bf16 %v7129_v28  ;;  %v2708_v44 = vsub.f32 1.0, %v2707_v29  ;;  %v3654_v34 = vunpack.i.l.bf16 %v7162_v33 }
 0x349   : > { %v2896_v40 = vsel %vm8500_vm4, %v2736_v39, %v3644_v52  ;;  %v2848_v4 = vsel %vm8501_vm1, %v3644_v52, %v6950_v2  ;;  %v7358_v2 = vadd.f32 1.0, %v3697_v56  ;;  %v2557_v39 = vmul.f32 %v7346_v49, %v7266_v31  ;;  %v3705_v52 = vpop.eup %3704  ;;  %vm8510_vm4 = vmmov %vm8498_vm0 }
 0x34a   : > { %v2420_v61 = vadd.f32 %v2388_v55, %v2074_v51  ;;  %2996 = vmatmul.f32.vlgmr.msra.gmra.mxu0 %v2896_v40  ;;  %3061 = vmatmul.f32.vlgmr.msra.gmra.mxu1 %v2848_v4  ;;  %v2897_v51 = vsel %vm8505_vm9, %v2737_v21, %v3645_v13  ;;  %v2849_v12 = vsel %vm8506_vm6, %v3645_v13, %v7185_v17  ;;  %v7390_v56 = vadd.f32 1.0, %v3699_v22  ;;  %v7399_v42 = vpop.eup %3706  ;;  %vm8518_vm6 = vmmov %vm8498_vm0 }
 0x34b   : > { %3708 = vrcp.f32 %v7358_v2  ;;  %v2558_v57 = vsub.f32 1.0, %v2557_v39  ;;  %v2738_v17 = vmul.f32 %v7144_v37, %v2539_v46  ;;  %v2553_v3 = vor.u32 1.1754944e-38, %v2552_v20 }
 0x34c   : > { %2824 = vrot.lane.b32.xlu1 %v2420_v61, %s3865_s27  ;;  %3710 = vpow2.f32 %v3383_v58  ;;  %v2549_v22 = vsel %vm7395_vm8, %v7301_v11, %v2545_v41  ;;  %v7408_v4 = vadd.f32 1.0, %v3705_v52  ;;  %v2850_v18 = vsel %vm8509_vm7, %v3649_v5, %v7015_v30  ;;  %vm8519_vm8 = vmmov %vm8498_vm0 }
 0x34d   : > { %v2559_v10 = vmul.f32 %v7346_v49, %v2558_v57  ;;  %3712 = vrcp.f32 %v7390_v56  ;;  %v2003_v37 = vmul.f32 %v6661_v27, %v8454_v0  ;;  %v2709_v11 = vmul.f32 %v7360_v60, %v2708_v44 }
 0x34e   : > { %v7375_v32 = vpop.permute.xlu0 %2806  ;;  %v2572_v61 = vmul.f32 %v7399_v42, %v7348_v47  ;;  %v2898_v8 = vsel %vm8510_vm4, %v2738_v17, %v3649_v5  ;;  %v2554_v21 = vsel %vm2551_vm10, %v2553_v3, %v2549_v22  ;;  %v2567_v30 = vand.u32 2147483648, %v7266_v31 }
 0x34f   : > { %3396 = vmatmul.msk.f32.gmra.mxu2 %vm8504_vm2, %v7375_v32  ;;  %v2560_v13 = vadd.f32 %v7346_v49, %v2559_v10  ;;  %vm2711_vm1 = vweird.f32 %v7303_v23  ;;  %v2715_v58 = vand.u32 2147483647, %v7303_v23  ;;  %v2717_v29 = vand.u32 2147483648, %v7303_v23 }
 0x350   : > { %v2739_v46 = vmul.f32 %v7165_v26, %v2554_v21  ;;  %v2710_v63 = vadd.f32 %v7360_v60, %v2709_v11  ;;  %v2573_v20 = vsub.f32 1.0, %v2572_v61  ;;  %v2040_v41 = vadd.f32 %v6671_v16, %v2003_v37  ;;  %vm7452_vm2 = vmor %vm2711_vm1, %vm2712_vm12  ;;  %v8520_v37 = vld [vmem:[#allocation101_spill] sm:$0xff] }
 0x351   : > { %v7402_v40 = vpop.eup %3708  ;;  %v2568_v31 = vor.u32 1.1754944e-38, %v2567_v30  ;;  %3714 = vrcp.f32 %v7408_v4  ;;  %v2007_v26 = vmul.f32 %v6661_v27, %v8455_v1  ;;  %v2564_v5 = vsel %vm7437_vm15, %v7346_v49, %v2560_v13  ;;  %vm8530_vm12 = vmmov %vm8518_vm6 }
 0x352   : > { %2999 = vmatmul.f32.gmra.mxu0 %v2897_v51  ;;  %3064 = vmatmul.f32.gmra.mxu1 %v2849_v12  ;;  %v2722_v0 = vmul.f32 %v7402_v40, %v7358_v2  ;;  %v3711_v24 = vpop.eup %3710  ;;  %vm2566_vm11 = vcmp.eq.f32.partialorder %v2565_v9, 8.507059e+37  ;;  %v2072_v55 = vmul.f32 %v2040_v41, %v8461_v36  ;;  %v2851_v23 = vsel %vm8515_vm14, %v3654_v34, %v7046_v25  ;;  %v7495_v9 = vpop.permute.xlu2 %2818  ;;  %vm8532_vm14 = vmmov %vm8518_vm6 }
 0x353   : > { %v7445_v51 = vpop.eup %3712  ;;  %v7447_v12 = vadd.f32 1.0, %v3711_v24  ;;  %vm7465_vm9 = vcmp.eq.f32.partialorder %v2715_v58, 8.507059e+37  ;;  %v2718_v17 = vor.u32 1.1754944e-38, %v2717_v29  ;;  %v2899_v27 = vsel %vm8519_vm8, %v2739_v46, %v3654_v34 }
 0x354   : > { %v2723_v52 = vsub.f32 1.0, %v2722_v0  ;;  %v2714_v1 = vsel %vm7452_vm2, %v7360_v60, %v2710_v63  ;;  %v2574_v36 = vmul.f32 %v7399_v42, %v2573_v20  ;;  %v2587_v25 = vmul.f32 %v7445_v51, %v7390_v56 }
 0x355   : > { %v2569_v22 = vsel %vm2566_vm11, %v2568_v31, %v2564_v5  ;;  %vm2576_vm10 = vweird.f32 %v7348_v47  ;;  %vm2577_vm7 = vweird.f32 %v7399_v42  ;;  %v2580_v60 = vand.u32 2147483647, %v7348_v47  ;;  %vm8531_vm11 = vmmov %vm8518_vm6 }
 0x356   : > { %v7411_v15 = vpop.permute.xlu0 %2810  ;;  %v2724_v10 = vmul.f32 %v7402_v40, %v2723_v52  ;;  %v2582_v61 = vand.u32 2147483648, %v7348_v47  ;;  %vm2727_vm3 = vweird.f32 %v7402_v40  ;;  %v2575_v0 = vadd.f32 %v7399_v42, %v2574_v36  ;;  %vm7503_vm13 = vmor %vm2576_vm10, %vm2577_vm7 }
 0x357   : > { %3397 = vmatmul.msk.f32.gmra.mxu2 %vm8498_vm0, %v7411_v15  ;;  %vm2726_vm0 = vweird.f32 %v7358_v2  ;;  %v7491_v21 = vpop.eup %3714  ;;  %v2732_v24 = vand.u32 2147483648, %v7358_v2  ;;  %v2588_v13 = vsub.f32 1.0, %v2587_v25  ;;  %3716 = vrcp.f32 %v7447_v12 }
 0x358   : > { %v2725_v58 = vadd.f32 %v7402_v40, %v2724_v10  ;;  %v2044_v29 = vadd.f32 %v6671_v16, %v2007_v26  ;;  %v2740_v46 = vmul.f32 %v7188_v62, %v2569_v22  ;;  %vm7521_vm4 = vcmp.eq.f32.partialorder %v2580_v60, 8.507059e+37  ;;  %v8529_v62 = vld [vmem:[#allocation31_spill] sm:$0xff] }
 0x359   : > { %v2583_v20 = vor.u32 1.1754944e-38, %v2582_v61  ;;  %v2589_v57 = vmul.f32 %v7445_v51, %v2588_v13  ;;  %vm2591_vm15 = vweird.f32 %v7390_v56  ;;  %vm2592_vm2 = vweird.f32 %v7445_v51 }
 0x35a   : > { %3002 = vmatmul.f32.gmra.mxu0 %v2898_v8  ;;  %3067 = vmatmul.f32.gmra.mxu1 %v2850_v18  ;;  %v2719_v8 = vsel %vm7465_vm9, %v2718_v17, %v2714_v1  ;;  %vm8533_vm9 = vmmov %vm8518_vm6  ;;  %v2597_v25 = vand.u32 2147483648, %v7390_v56  ;;  %v7570_v22 = vpop.permute.xlu2 %2822  ;;  %vm2606_vm7 = vweird.f32 %v7408_v4  ;;  %v2610_v13 = vand.u32 2147483647, %v7408_v4 }
 0x35b   : > { %v2750_v47 = vmul.f32 %v7211_v43, %v2719_v8  ;;  %v2579_v43 = vsel %vm7503_vm13, %v7399_v42, %v2575_v0  ;;  %v2595_v42 = vand.u32 2147483647, %v7390_v56  ;;  %v2590_v36 = vadd.f32 %v7445_v51, %v2589_v57 }
 0x35c   : > { %v2612_v0 = vand.u32 2147483648, %v7408_v4 }
 0x35d   : > { %vm2596_vm10 = vcmp.eq.f32.partialorder %v2595_v42, 8.507059e+37 }
 0x35e   : > { %v2275_v18 = vpop.permute.xlu1 %2274 }
 0x35f   : > { %v2263_v3 = vpop.permute.xlu0 %2262  ;;  %3398 = vmatmul.msk.f32.gmra.mxu2 %vm8518_vm6, %v7278_v53  ;;  %v2326_v34 = vsel %vm509_vm5, %v2275_v18, %v7276_v14  ;;  %vm7565_vm6 = vmor %vm2591_vm15, %vm2592_vm2  ;;  %vm2621_vm2 = vweird.f32 %v7447_v12 }
 0x360   : > { %v2322_v49 = vsel %vm509_vm5, %v2263_v3, %v6905_v35  ;;  %v2730_v35 = vand.u32 2147483647, %v7358_v2  ;;  %vm7516_vm5 = vmor %vm2726_vm0, %vm2727_vm3  ;;  %v2390_v41 = vmul.f32 %v2326_v34, %v8529_v62  ;;  %v2733_v2 = vor.u32 1.1754944e-38, %v2732_v24 }
 0x361   : > { %v2386_v11 = vmul.f32 %v2322_v49, %v8520_v37  ;;  %v2729_v5 = vsel %vm7516_vm5, %v7402_v40, %v2725_v58  ;;  %v2584_v3 = vsel %vm7521_vm4, %v2583_v20, %v2579_v43  ;;  %v2594_v56 = vsel %vm7565_vm6, %v7445_v51, %v2590_v36  ;;  %vm8536_vm0 = vmmov %vm8519_vm8 }
 0x362   : > { %3005 = vmatmul.f32.gmra.mxu0 %v2899_v27  ;;  %3070 = vmatmul.f32.gmra.mxu1 %v2851_v23  ;;  %vm7525_vm1 = vcmp.eq.f32.partialorder %v2730_v35, 8.507059e+37  ;;  %v2076_v23 = vmul.f32 %v2044_v29, %v6916_v54  ;;  %v7557_v27 = vpop.eup %3716  ;;  %v2741_v10 = vmul.f32 %v7248_v7, %v2584_v3  ;;  %vm8537_vm3 = vmmov %vm8536_vm0  ;;  %vm2607_vm5 = vweird.f32 %v7491_v21 }
 0x363   : > { %v2418_v30 = vadd.f32 %v2386_v11, %v2072_v55  ;;  %v2602_v55 = vmul.f32 %v7491_v21, %v7408_v4  ;;  %v2734_v1 = vsel %vm7525_vm1, %v2733_v2, %v2729_v5  ;;  %v2598_v11 = vor.u32 1.1754944e-38, %v2597_v25  ;;  %vm8538_vm13 = vmmov %vm8536_vm0 }
 0x364   : > { %v2422_v54 = vadd.f32 %v2390_v41, %v2076_v23  ;;  %v2751_v18 = vmul.f32 %v7269_v48, %v2734_v1  ;;  %v2617_v7 = vmul.f32 %v7557_v27, %v7447_v12  ;;  %vm7597_vm4 = vmor %vm2606_vm7, %vm2607_vm5  ;;  %vm2611_vm1 = vcmp.eq.f32.partialorder %v2610_v13, 8.507059e+37  ;;  %v3747_v23 = vld [vmem:[%s3968_s20 + $0x48] sm:$0xff] }
 0x365   : > { %2820 = vrot.lane.b32.xlu2 %v2418_v30, %s3865_s27  ;;  %v2603_v49 = vsub.f32 1.0, %v2602_v55  ;;  %v2599_v30 = vsel %vm2596_vm10, %v2598_v11, %v2594_v56  ;;  %vm8542_vm15 = vmmov %vm8536_vm0  ;;  %v2625_v62 = vand.u32 2147483647, %v7447_v12  ;;  %v3384_v42 = vmul.f32 -1.442695, %v3747_v23 }
 0x366   : > { %v2618_v34 = vsub.f32 1.0, %v2617_v7  ;;  %v2742_v58 = vmul.f32 %v7253_v59, %v2599_v30  ;;  %vm8545_vm10 = vmmov %vm8536_vm0 }
 0x367   : > { %v7530_v31 = vpop.permute.xlu0 %3657  ;;  %3399 = vmatmul.msk.f32.gmra.mxu2 %vm8530_vm12, %v7495_v9  ;;  %v2604_v8 = vmul.f32 %v7491_v21, %v2603_v49  ;;  %vm8541_vm12 = vmmov %vm8536_vm0  ;;  %vm2626_vm6 = vcmp.eq.f32.partialorder %v2625_v62, 8.507059e+37  ;;  %3718 = vpow2.f32 %v3384_v42 }
 0x368   : > { %v3660_v52 = vunpack.i.h.bf16 %v7530_v31  ;;  %v3659_v26 = vunpack.i.l.bf16 %v7530_v31  ;;  %vm8546_vm7 = vmmov %vm8536_vm0 }
 0x369   : > { %v2605_v24 = vadd.f32 %v7491_v21, %v2604_v8  ;;  %vm8549_vm5 = vmmov %vm8536_vm0 }
 0x36a   : > { %v2900_v44 = vsel %vm8531_vm11, %v2740_v46, %v3659_v26  ;;  %v2910_v17 = vsel %vm8532_vm14, %v2750_v47, %v3660_v52  ;;  %v2852_v40 = vsel %vm8533_vm9, %v3659_v26, %v7154_v38  ;;  %v2613_v46 = vor.u32 1.1754944e-38, %v2612_v0  ;;  %vm8543_vm14 = vmmov %vm8536_vm0 }
 0x36b   : > { %3008 = vmatmul.f32.gmra.mxu0 %v2900_v44  ;;  %3038 = vmatmul.f32.gmra.mxu3 %v2910_v17  ;;  %v2609_v14 = vsel %vm7597_vm4, %v7491_v21, %v2605_v24  ;;  %v2619_v47 = vmul.f32 %v7557_v27, %v2618_v34  ;;  %vm2622_vm11 = vweird.f32 %v7557_v27  ;;  %v2627_v21 = vand.u32 2147483648, %v7447_v12  ;;  %vm8550_vm4 = vmmov %vm8536_vm0 }
 0x36c   : > { %3073 = vmatmul.f32.gmra.mxu1 %v2852_v40  ;;  %v2614_v20 = vsel %vm2611_vm1, %v2613_v46, %v2609_v14  ;;  %vm2623_vm9 = vmor %vm2621_vm2, %vm2622_vm11  ;;  %v7639_v40 = vld [vmem:[%s3968_s20 + $0x58] sm:$0xff] }
 0x36d   : > { %2828 = vrot.lane.b32.xlu2 %v2422_v54, %s3865_s27  ;;  %v2620_v16 = vadd.f32 %v7557_v27, %v2619_v47  ;;  %v2743_v28 = vmul.f32 %v7326_v19, %v2614_v20  ;;  %v2628_v43 = vor.u32 1.1754944e-38, %v2627_v21  ;;  %v3719_v44 = vpop.eup %3718  ;;  %vm8551_vm1 = vmmov %vm8536_vm0 }
 0x36f   : > { %v7574_v37 = vpop.permute.xlu0 %3662  ;;  %3400 = vmatmul.msk.f32.gmra.mxu2 %vm8519_vm8, %v7570_v22  ;;  %v2624_v2 = vsel %vm2623_vm9, %v7557_v27, %v2620_v16  ;;  %vm8544_vm8 = vmmov %vm8536_vm0 }
 0x370   : > { %v3665_v60 = vunpack.i.h.bf16 %v7574_v37  ;;  %v3664_v61 = vunpack.i.l.bf16 %v7574_v37  ;;  %v2629_v19 = vsel %vm2626_vm6, %v2628_v43, %v2624_v2  ;;  %vm8553_vm9 = vmmov %vm8536_vm0 }
 0x371   : > { %v2744_v26 = vmul.f32 %v7372_v45, %v2629_v19  ;;  %v2489_v45 = vadd.f32 1.0, %v3719_v44  ;;  %vm8554_vm6 = vmmov %vm8536_vm0 }
 0x372   : > { %v2901_v48 = vsel %vm8536_vm0, %v2741_v10, %v3664_v61  ;;  %v2911_v35 = vsel %vm8537_vm3, %v2751_v18, %v3665_v60  ;;  %v2853_v51 = vsel %vm8538_vm13, %v3664_v61, %v7375_v32  ;;  %v2835_v32 = vpop.permute.xlu1 %2834  ;;  %vm8547_vm3 = vmmov %vm8536_vm0 }
 0x373   : > { %3011 = vmatmul.f32.gmra.mxu0 %v2901_v48  ;;  %3041 = vmatmul.f32.gmra.mxu3 %v2911_v35  ;;  %v2860_v4 = vsel %vm8542_vm15, %v3650_v50, %v2835_v32  ;;  %vm8548_vm13 = vmmov %vm8536_vm0  ;;  %vm2636_vm15 = vweird.f32 %v2489_v45  ;;  %v2642_v8 = vand.u32 2147483648, %v2489_v45  ;;  %v2640_v48 = vand.u32 2147483647, %v2489_v45 }
 0x374   : > { %3076 = vmatmul.f32.gmra.mxu1 %v2853_v51 }
 0x375   : > { %v2643_v0 = vor.u32 1.1754944e-38, %v2642_v8 }
 0x377   : > { %v2809_v29 = vpop.permute.xlu0 %2808 }
 0x378   : > { %v2902_v63 = vsel %vm8541_vm12, %v2742_v58, %v2809_v29  ;;  %v2854_v59 = vsel %vm8543_vm14, %v2809_v29, %v7411_v15  ;;  %vm8552_vm12 = vmmov %vm8536_vm0  ;;  %vm2641_vm14 = vcmp.eq.f32.partialorder %v2640_v48, 8.507059e+37  ;;  %v3127_v58 = vpop.f32.mrf.mxu2 }
 0x37b   : > { %3014 = vmatmul.f32.gmra.mxu0 %v2902_v63  ;;  %3097 = vmatmul.f32.vlgmr.msrb.gmra.mxu3 %v2860_v4 }
 0x37c   : > { %3079 = vmatmul.f32.gmra.mxu1 %v2854_v59 }
 0x37e   : > { %v2839_v50 = vpop.permute.xlu1 %2838 }
 0x37f   : > { %v2813_v41 = vpop.permute.xlu0 %2812  ;;  %v2861_v57 = vsel %vm8545_vm10, %v3655_v6, %v2839_v50  ;;  %v7631_v6 = vld [vmem:[%s3968_s20 + $0x50] sm:$0xff]  ;;  %s285_s20 = sand.u32 1, %s3846_s22  }
 0x380   : > { %v2903_v15 = vsel %vm8544_vm8, %v2743_v28, %v2813_v41  ;;  %v2855_v12 = vsel %vm8546_vm7, %v2813_v41, %v7278_v53  ;;  %v3385_v53 = vmul.f32 -1.442695, %v7631_v6  ;;  %s3315_s27 = sshll.u32 %s285_s20, 7  ;;  %s3192_s16 = scalar_lea.sflag [#allocation4], %s285_s20 }
 0x381   : > { %s7673_s8 = scalar_lea.vmem [#allocation5], %s3315_s27 }
 0x382   : > { %3720 = vpow2.f32 %v3385_v53  ;;  %s3205_s15 = sshll.u32 %s7673_s8, 4  ;;  %s3206_s15 = int_to_ptr.vmem [resolvable:$true] %s3205_s15 }
 0x383   : > { %3017 = vmatmul.f32.gmra.mxu0 %v2903_v15  ;;  %3100 = vmatmul.f32.gmra.mxu3 %v2861_v57  ;;  %3722 = vrcp.f32 %v2489_v45 }
 0x384   : > { %3082 = vmatmul.f32.gmra.mxu1 %v2855_v12 }
 0x387   : > { %v2817_v5 = vpop.permute.xlu0 %2816 }
 0x388   : > { %v2904_v55 = vsel %vm8536_vm0, %v2744_v26, %v2817_v5  ;;  %v2856_v33 = vsel %vm8547_vm3, %v2817_v5, %v7495_v9  ;;  %v3386_v9 = vmul.f32 -1.442695, %v7639_v40  ;;  %v3721_v3 = vpop.eup %3720  ;;  %vm8555_vm3 = vmmov %vm8551_vm1 }
 0x389   : > { %v2490_v54 = vadd.f32 1.0, %v3721_v3  ;;  %v3723_v1 = vpop.eup %3722 }
 0x38a   : > { %3724 = vpow2.f32 %v3386_v9  ;;  %v2632_v25 = vmul.f32 %v3723_v1, %v2489_v45  ;;  %vm2637_vm2 = vweird.f32 %v3723_v1 }
 0x38b   : > { %3020 = vmatmul.f32.gmra.mxu0 %v2904_v55  ;;  %3726 = vrcp.f32 %v2490_v54  ;;  %vm2638_vm11 = vmor %vm2636_vm15, %vm2637_vm2  ;;  %vm2651_vm8 = vweird.f32 %v2490_v54  ;;  %v2657_v39 = vand.u32 2147483648, %v2490_v54  ;;  %v2655_v29 = vand.u32 2147483647, %v2490_v54 }
 0x38c   : > { %3085 = vmatmul.f32.gmra.mxu1 %v2856_v33  ;;  %v2633_v49 = vsub.f32 1.0, %v2632_v25  ;;  %vm8560_vm2 = vmmov %vm8555_vm3 }
 0x38d   : > { %v2658_v47 = vor.u32 1.1754944e-38, %v2657_v39  ;;  %vm2656_vm0 = vcmp.eq.f32.partialorder %v2655_v29, 8.507059e+37 }
 0x38e   : > { %v2634_v56 = vmul.f32 %v3723_v1, %v2633_v49 }
 0x390   : > { %v3725_v36 = vpop.eup %3724  ;;  %v2635_v7 = vadd.f32 %v3723_v1, %v2634_v56 }
 0x391   : > { %v2491_v38 = vadd.f32 1.0, %v3725_v36  ;;  %v3727_v10 = vpop.eup %3726 }
 0x392   : > { %v2647_v11 = vmul.f32 %v3727_v10, %v2490_v54  ;;  %v2639_v24 = vsel %vm2638_vm11, %v3723_v1, %v2635_v7  ;;  %vm2652_vm10 = vweird.f32 %v3727_v10  ;;  %vm8561_vm11 = vmmov %vm8560_vm2 }
 0x393   : > { %3728 = vrcp.f32 %v2491_v38  ;;  %vm2653_vm7 = vmor %vm2651_vm8, %vm2652_vm10  ;;  %v2672_v21 = vand.u32 2147483648, %v2491_v38  ;;  %v2670_v28 = vand.u32 2147483647, %v2491_v38 }
 0x394   : > { %v2648_v35 = vsub.f32 1.0, %v2647_v11 }
 0x395   : > { %v2673_v43 = vor.u32 1.1754944e-38, %v2672_v21  ;;  %vm2671_vm15 = vcmp.eq.f32.partialorder %v2670_v28, 8.507059e+37 }
 0x396   : > { %v7634_v17 = vpop.permute.xlu2 %2826  ;;  %v2649_v13 = vmul.f32 %v3727_v10, %v2648_v35 }
 0x397   : > { %3401 = vmatmul.msk.f32.gmra.mxu2 %vm8548_vm13, %v7634_v17  ;;  %vm8556_vm13 = vmmov %vm8551_vm1 }
 0x399   : > { %v3729_v51 = vpop.eup %3728 }
 0x39a   : > { %v2662_v34 = vmul.f32 %v3729_v51, %v2491_v38 }
 0x39c   : > { %v2663_v46 = vsub.f32 1.0, %v2662_v34 }
 0x39e   : > { %v7642_v27 = vpop.permute.xlu2 %2830  ;;  %v2664_v4 = vmul.f32 %v3729_v51, %v2663_v46 }
 0x39f   : > { %3402 = vmatmul.msk.f32.gmra.mxu2 %vm8549_vm5, %v7642_v27  ;;  %vm8557_vm5 = vmmov %vm8551_vm1 }
 0x3a0   : > { %v2665_v62 = vadd.f32 %v3729_v51, %v2664_v4 }
 0x3a7   : > { %3403 = vmatmul.msk.f32.gmra.mxu2 %vm8550_vm4, %v2835_v32  ;;  %v2650_v32 = vadd.f32 %v3727_v10, %v2649_v13  ;;  %vm2666_vm4 = vweird.f32 %v2491_v38  ;;  %v3033_v34 = vpop.f32.mrf.mxu3 }
 0x3a8   : > { %v2847_v30 = vpop.permute.xlu0 %2846 }
 0x3a9   : > { %v2863_v31 = vsel %vm8554_vm6, %v3665_v60, %v2847_v30  ;;  %v2654_v63 = vsel %vm2653_vm7, %v3727_v10, %v2650_v32 }
 0x3aa   : > { %v2659_v20 = vsel %vm2656_vm0, %v2658_v47, %v2654_v63 }
 0x3ab   : > { %v2746_v41 = vmul.f32 %v7631_v6, %v2659_v20 }
 0x3ae   : > { %v2843_v18 = vpop.permute.xlu1 %2842 }
 0x3af   : > { %3404 = vmatmul.msk.f32.gmra.mxu2 %vm8551_vm1, %v2839_v50  ;;  %v2862_v61 = vsel %vm8552_vm12, %v3660_v52, %v2843_v18  ;;  %v2644_v52 = vsel %vm2641_vm14, %v2643_v0, %v2639_v24  ;;  %vm2667_vm1 = vweird.f32 %v3729_v51  ;;  %vm8562_vm14 = vmmov %vm8560_vm2  ;;  %v3036_v46 = vpop.f32.mrf.mxu3 }
 0x3b0   : > { %3103 = vmatmul.f32.gmra.mxu3 %v2862_v61  ;;  %v2745_v14 = vmul.f32 %v3747_v23, %v2644_v52  ;;  %vm7659_vm12 = vmor %vm2666_vm4, %vm2667_vm1 }
 0x3b1   : > { %v2669_v2 = vsel %vm7659_vm12, %v3729_v51, %v2665_v62 }
 0x3b2   : > { %v3130_v16 = vpop.f32.mrf.mxu2  ;;  %v2674_v5 = vsel %vm2671_vm15, %v2673_v43, %v2669_v2 }
 0x3b3   : > { %v2747_v23 = vmul.f32 %v7639_v40, %v2674_v5 }
 0x3b7   : > { %3405 = vmatmul.msk.f32.gmra.mxu2 %vm8553_vm9, %v2843_v18  ;;  %vm8563_vm9 = vmmov %vm8560_vm2 }
 0x3b8   : > { %3106 = vmatmul.f32.gmra.mxu3 %v2863_v31 }
 0x3ba   : > { %v3133_v33 = vpop.f32.mrf.mxu2 }
 0x3bf   : > { %v2821_v59 = vpop.permute.xlu2 %2820 }
 0x3c0   : > { %v2905_v37 = vsel %vm8555_vm3, %v2745_v14, %v2821_v59  ;;  %v2857_v60 = vsel %vm8556_vm13, %v2821_v59, %v7570_v22  ;;  %3406 = vmatmul.msk.f32.vlgmr.msra.gmra.mxu3 %vm8557_vm5, %v2847_v30  ;;  %v2825_v22 = vpop.permute.xlu1 %2824 }
 0x3c1   : > { %3023 = vmatmul.f32.gmra.mxu0 %v2905_v37  ;;  %3088 = vmatmul.f32.gmra.mxu1 %v2857_v60  ;;  %v2906_v12 = vsel %vm8560_vm2, %v2746_v41, %v2825_v22  ;;  %v2858_v19 = vsel %vm8561_vm11, %v2825_v22, %v7634_v17 }
 0x3c2   : > { %v3136_v40 = vpop.f32.mrf.mxu2 }
 0x3c7   : > { %v2997_v15 = vpop.f32.mrf.mxu0  ;;  %v3062_v57 = vpop.f32.mrf.mxu1 }
 0x3c8   : > { %v3063_v26 = vadd.f32 %v3062_v57, %v2997_v15  ;;  %v2829_v42 = vpop.permute.xlu2 %2828 }
 0x3c9   : > { %3026 = vmatmul.f32.gmra.mxu0 %v2906_v12  ;;  %3091 = vmatmul.f32.gmra.mxu1 %v2858_v19  ;;  %v2907_v44 = vsel %vm8562_vm14, %v2747_v23, %v2829_v42  ;;  %v2859_v17 = vsel %vm8563_vm9, %v2829_v42, %v7642_v27 }
 0x3ca   : > { %v3128_v55 = vadd.f32 %v3127_v58, %v3063_v26  ;;  %v3139_v38 = vpop.f32.mrf.mxu2 }
 0x3cc   : > { %3175 = vst [vmem:[%s7673_s8] sm:$0xff] %v3128_v55 }
 0x3cf   : > { %v3000_v6 = vpop.f32.mrf.mxu0  ;;  %v3065_v53 = vpop.f32.mrf.mxu1 }
 0x3d0   : > { %v3066_v45 = vadd.f32 %v3065_v53, %v3000_v6 }
 0x3d1   : > { %3029 = vmatmul.f32.gmra.mxu0 %v2907_v44  ;;  %3094 = vmatmul.f32.gmra.mxu1 %v2859_v17 }
 0x3d2   : > { %v3131_v9 = vadd.f32 %v3130_v16, %v3066_v45  ;;  %v3142_v11 = vpop.f32.mrf.mxu2 }
 0x3d4   : > { %3176 = vst [vmem:[%s7673_s8 + $0x8] sm:$0xff] %v3131_v9 }
 0x3d7   : > { %v3003_v3 = vpop.f32.mrf.mxu0  ;;  %v3068_v54 = vpop.f32.mrf.mxu1 }
 0x3d8   : > { %v3069_v1 = vadd.f32 %v3068_v54, %v3003_v3 }
 0x3da   : > { %v3134_v36 = vadd.f32 %v3133_v33, %v3069_v1  ;;  %v3145_v51 = vpop.f32.mrf.mxu2 }
 0x3dc   : > { %3177 = vst [vmem:[%s7673_s8 + $0x10] sm:$0xff] %v3134_v36 }
 0x3df   : > { %v3006_v25 = vpop.f32.mrf.mxu0  ;;  %v3071_v49 = vpop.f32.mrf.mxu1 }
 0x3e0   : > { %v3072_v10 = vadd.f32 %v3071_v49, %v3006_v25 }
 0x3e2   : > { %v3137_v18 = vadd.f32 %v3136_v40, %v3072_v10  ;;  %v3148_v52 = vpop.f32.mrf.mxu2 }
 0x3e4   : > { %3178 = vst [vmem:[%s7673_s8 + $0x18] sm:$0xff] %v3137_v18 }
 0x3e8   : > { %v3009_v27 = vpop.f32.mrf.mxu0 }
 0x3e9   : > { %v3074_v56 = vpop.f32.mrf.mxu1 }
 0x3ea   : > { %v3075_v61 = vadd.f32 %v3074_v56, %v3009_v27  ;;  %v3151_v14 = vpop.f32.mrf.mxu2 }
 0x3ec   : > { %v3140_v8 = vadd.f32 %v3139_v38, %v3075_v61 }
 0x3ee   : > { %3179 = vst [vmem:[%s7673_s8 + $0x20] sm:$0xff] %v3140_v8  ;;  %v3039_v37 = vpop.f32.mrf.mxu3 }
 0x3f0   : > { %v3012_v7 = vpop.f32.mrf.mxu0 }
 0x3f1   : > { %v3077_v48 = vpop.f32.mrf.mxu1 }
 0x3f2   : > { %v3078_v35 = vadd.f32 %v3077_v48, %v3012_v7  ;;  %v3154_v60 = vpop.f32.mrf.mxu2 }
 0x3f4   : > { %v3143_v30 = vadd.f32 %v3142_v11, %v3078_v35 }
 0x3f6   : > { %3180 = vst [vmem:[%s7673_s8 + $0x28] sm:$0xff] %v3143_v30  ;;  %v3042_v20 = vpop.f32.mrf.mxu3 }
 0x3f8   : > { %v3015_v0 = vpop.f32.mrf.mxu0 }
 0x3f9   : > { %v3080_v24 = vpop.f32.mrf.mxu1 }
 0x3fa   : > { %v3081_v13 = vadd.f32 %v3080_v24, %v3015_v0 }
 0x3fc   : > { %v3146_v31 = vadd.f32 %v3145_v51, %v3081_v13 }
 0x3fe   : > { %3181 = vst [vmem:[%s7673_s8 + $0x30] sm:$0xff] %v3146_v31  ;;  %v3098_v16 = vpop.f32.mrf.mxu3 }
 0x3ff   : > { %v3099_v28 = vadd.f32 %v3098_v16, %v3033_v34 }
 0x400   : > { %v3018_v39 = vpop.f32.mrf.mxu0 }
 0x401   : > { %v3083_v58 = vpop.f32.mrf.mxu1 }
 0x402   : > { %v3084_v32 = vadd.f32 %v3083_v58, %v3018_v39 }
 0x404   : > { %v3149_v29 = vadd.f32 %v3148_v52, %v3084_v32 }
 0x406   : > { %3182 = vst [vmem:[%s7673_s8 + $0x38] sm:$0xff] %v3149_v29  ;;  %v3101_v41 = vpop.f32.mrf.mxu3 }
 0x407   : > { %v3102_v43 = vadd.f32 %v3101_v41, %v3036_v46 }
 0x408   : > { %v3021_v47 = vpop.f32.mrf.mxu0 }
 0x409   : > { %v3086_v63 = vpop.f32.mrf.mxu1 }
 0x40a   : > { %v3087_v4 = vadd.f32 %v3086_v63, %v3021_v47 }
 0x40c   : > { %v3152_v59 = vadd.f32 %v3151_v14, %v3087_v4 }
 0x40e   : > { %3183 = vst [vmem:[%s7673_s8 + $0x40] sm:$0xff] %v3152_v59 }
 0x41a   : > { %v3157_v21 = vpop.f32.mrf.mxu2 }
 0x422   : > { %v3160_v62 = vpop.f32.mrf.mxu2 }
 0x42a   : > { %v3163_v50 = vpop.f32.mrf.mxu2 }
 0x42b   : > { %v3164_v22 = vadd.f32 %v3163_v50, %v3099_v28 }
 0x42d   : > { %3187 = vst [vmem:[%s7673_s8 + $0x60] sm:$0xff] %v3164_v22 }
 0x432   : > { %v3166_v2 = vpop.f32.mrf.mxu2 }
 0x433   : > { %v3167_v15 = vadd.f32 %v3166_v2, %v3102_v43  ;;  %v3104_v57 = vpop.f32.mrf.mxu3 }
 0x434   : > { %v3105_v12 = vadd.f32 %v3104_v57, %v3039_v37 }
 0x435   : > { %3188 = vst [vmem:[%s7673_s8 + $0x68] sm:$0xff] %v3167_v15 }
 0x43a   : > { %v3169_v19 = vpop.f32.mrf.mxu2 }
 0x43b   : > { %v3170_v26 = vadd.f32 %v3169_v19, %v3105_v12  ;;  %v3107_v5 = vpop.f32.mrf.mxu3 }
 0x43c   : > { %v3108_v6 = vadd.f32 %v3107_v5, %v3042_v20 }
 0x43d   : > { %3189 = vst [vmem:[%s7673_s8 + $0x70] sm:$0xff] %v3170_v26 }
 0x43e   : > { %v3024_v55 = vpop.f32.mrf.mxu0  ;;  %v3089_v33 = vpop.f32.mrf.mxu1 }
 0x43f   : > { %v3090_v23 = vadd.f32 %v3089_v33, %v3024_v55 }
 0x441   : > { %v3155_v42 = vadd.f32 %v3154_v60, %v3090_v23 }
 0x443   : > { %3184 = vst [vmem:[%s7673_s8 + $0x48] sm:$0xff] %v3155_v42  ;;  %v3172_v53 = vpop.f32.mrf.mxu3 }
 0x444   : > { %v3173_v44 = vadd.f32 %v3172_v53, %v3108_v6 }
 0x446   : > { %3190 = vst [vmem:[%s7673_s8 + $0x78] sm:$0xff] %v3173_v44  ;;  %v3027_v17 = vpop.f32.mrf.mxu0  ;;  %v3092_v45 = vpop.f32.mrf.mxu1 }
 0x447   : > { %v3093_v9 = vadd.f32 %v3092_v45, %v3027_v17 }
 0x449   : > { %v3158_v40 = vadd.f32 %v3157_v21, %v3093_v9 }
 0x44b   : > { %3185 = vst [vmem:[%s7673_s8 + $0x50] sm:$0xff] %v3158_v40 }
 0x44e   : > { %v3030_v3 = vpop.f32.mrf.mxu0  ;;  %v3095_v54 = vpop.f32.mrf.mxu1 }
 0x44f   : > { %v3096_v1 = vadd.f32 %v3095_v54, %v3030_v3 }
 0x451   : > { %v3161_v36 = vadd.f32 %v3160_v62, %v3096_v1 }
 0x453   : > { %3186 = vst [vmem:[%s7673_s8 + $0x58] sm:$0xff] %v3161_v36 }
 0x454   : > { %3807 = shalt.err (!%p3804_p9)
}
 0x455   : > { %s3869_s20 = smov 128   ;;  %s3870_s8 = smov 8  }
 0x456   : > { %3453 = dma.vmem_to_hbm [thread:$0]  (%p3946_p4), %s3206_s15, 2048, %s3208_s30, %s3192_s16, %s3869_s20, %s3869_s20, %s3870_s8  }
 0x457 PF: > { %p3465_p10 = scmp.ge.s32.totalorder %s3862_s26, 2  ;;  %s3222_s12 = sand.u32 1, %s3842_s21  }
 0x458   : > { %s3223_s13 = scalar_lea.sflag [#allocation4], %s3222_s12 }
 0x459   : > { %p3460_p11 = pnand %p3465_p10, %p3953_p8 }
 0x45b   : > { %p3461_p12 = pneg %p3460_p11 }
 0x45d   : > { %3837 = dma.done.wait (%p3461_p12), %s3223_s13, 2048  }
 0x45e   : > { %3839 = vsyncadd (%p3461_p12), %s3223_s13, 4294965248  ;;  %s20_s26 = sadd.s32 1, %s3862_s26   ;;  %s8564_s21 = smov %s3846_s22 }
 0x45f   : > { %p17_p13 = scmp.ge.s32.totalorder %s20_s26, 4   ;;  %s8565_s22 = smov %s3850_s23 }
 0x460   : > { %s8566_s23 = smov %s3959_s10  ;;  %s8567_s24 = smov %s3858_s25 }
 0x461   : > { %s8568_s25 = smov %s8570_s29  ;;  %19 = sbr.rel (!%p17_p13) target bundleno = 5 (0x5), region = 97 }
 0x466   :  { %3229 = vsyncpa [#allocation3], 1 }
 0x467   :  { %3231 = vsyncpa [#allocation3 + $0x1], 1 }
 0x468   :  { %3232 = vsyncpa [#allocation4], 1 }
 0x469   :  { %3234 = vsyncpa [#allocation4 + $0x1], 1 }

</bundles_post_ra>
